<compile_context>
chip_gen: v5e
topology: v5e:2x2
jax: 0.10.0
libtpu: 0.0.40
codegen_flags: <defaults>
</compile_context>

<pallas_src>
import jax
import jax.numpy as jnp
from jax.experimental import pallas as pl
from jax.experimental.pallas import tpu as pltpu


def _vmem_capacity_bytes():
    """Per-TensorCore VMEM capacity; conservative (v7x-sized) fallback."""
    try:
        cap = getattr(pltpu.get_tpu_info(), "vmem_capacity_bytes", None)
        if cap:
            return int(cap)
    except Exception:
        pass
    return 64 * 1024 * 1024


def _pick_row_tile(H, W, r, max_scatter_bytes=8 * 1024 * 1024, max_lanes=1024):
    """Rows of H per grid step.

    Prefers the largest th dividing H such that
      * th*W is a multiple of 128 (lane-dense loads and one dense store), and
      * the fully-interleaved scatter (r^2, th*W, th*W*r^2) stays small.
    Falls back to the largest size-feasible th (correct, possibly lane-masked).
    """
    best_dense, best_any = None, None
    for th in range(1, H + 1):
        if H % th:
            continue
        K = th * W
        if K > max_lanes:
            continue
        scat_bytes = (r * r) * K * (K * r * r) * 4
        if scat_bytes > max_scatter_bytes:
            continue
        best_any = th
        if K % 128 == 0:
            best_dense = th
    if best_dense is not None:
        return best_dense
    if best_any is not None:
        return best_any
    # TODO(synk): for very large W, tile the flattened spatial dim itself in
    # 128-multiples instead of whole input rows.
    return 1


def _make_kernel(n_groups, cdst):
    """Fused conv1x1 + full pixel-shuffle (row+column interleave) kernel."""

    def kernel(x_ref, w_ref, b_ref, s_ref, o_ref):
        # x_ref: (Cin, K)          NCHW slab, K = th*W flattened spatial (lanes)
        # w_ref: (Cout, Cin)       rows permuted to (g=i*r+j, cdst) order
        # b_ref: (Cout, 1)         permuted bias, f32
        # s_ref: (r^2, K, K*r^2)   one-hot scatter (exact interleave)
        # o_ref: (Cdst, K*r^2)     fully interleaved flat output slab
        y = jnp.dot(w_ref[...], x_ref[...], preferred_element_type=jnp.float32)
        y = (y + b_ref[...]).astype(s_ref.dtype)
        acc = jnp.dot(y[0:cdst, :], s_ref[0], preferred_element_type=jnp.float32)
        for g in range(1, n_groups):                 # static unroll, r^2 matmuls
            acc = acc + jnp.dot(y[g * cdst:(g + 1) * cdst, :], s_ref[g],
                                preferred_element_type=jnp.float32)
        o_ref[...] = acc.astype(o_ref.dtype)

    return kernel


def upsample_forward(x_nchw, weight, bias, factor=2):
    """UpSample forward: Conv2d(k=1) + PixelShuffle, fused in one Pallas kernel.

    x_nchw : [B, Cin, H, W]
    weight : [Cout, Cin]  (1x1 conv kernel squeezed; Cout = factor*Cin)
    bias   : [Cout]
    returns: [B, Cout // factor**2, H*factor, W*factor]  (NCHW, like PyTorch)
    """
    B, Cin, H, W = x_nchw.shape
    Cout = weight.shape[0]
    r = int(factor)
    assert Cout % (r * r) == 0, "PixelShuffle requires Cout divisible by factor**2"
    Cdst = Cout // (r * r)

    out_dtype = x_nchw.dtype
    scat_dtype = jnp.bfloat16 if out_dtype == jnp.bfloat16 else jnp.float32

    th = _pick_row_tile(H, W, r)
    K = th * W                       # input lanes per grid step
    N = K * r * r                    # output lanes per grid step (interleaved)

    # --- tiny wrapper-side tensor prep (no HBM round trip of x) -------------
    x3 = x_nchw.reshape(B, Cin, H * W)                       # free reshape
    w_perm = jnp.transpose(weight.reshape(Cdst, r * r, Cin),
                           (1, 0, 2)).reshape(Cout, Cin).astype(x_nchw.dtype)
    b_perm = jnp.transpose(bias.reshape(Cdst, r * r), (1, 0)).reshape(Cout, 1)
    b_perm = b_perm.astype(jnp.float32)

    # One-hot scatter: S[g, t*W + w, (t*r + i)*W*r + w*r + j] = 1, g = i*r + j.
    g_idx = jnp.arange(r * r)
    i_idx = g_idx // r
    j_idx = g_idx % r
    col = jnp.arange(K)
    t_idx = col // W
    w_idx = col % W
    out_col = ((t_idx[None, :] * r + i_idx[:, None]) * (W * r)
               + w_idx[None, :] * r + j_idx[:, None])        # (r^2, K)
    scat = (jnp.arange(N)[None, None, :] == out_col[:, :, None]).astype(scat_dtype)

    # --- VMEM budget (generation-aware) + cost hint --------------------------
    in_isz = jnp.dtype(x_nchw.dtype).itemsize
    out_isz = jnp.dtype(out_dtype).itemsize
    scat_isz = jnp.dtype(scat_dtype).itemsize
    x_blk = Cin * K * in_isz
    o_blk = Cdst * N * out_isz
    s_blk = r * r * K * N * scat_isz
    w_blk = Cout * Cin * in_isz + Cout * 4
    y_tmp = Cout * K * 4 + Cdst * N * 4
    need = 2 * (x_blk + s_blk + w_blk) + 2 * o_blk + y_tmp
    cap = _vmem_capacity_bytes()
    vmem_limit = int(min(max(2 * need + (8 << 20), 32 << 20), int(cap * 0.55)))

    steps = B * (H // th)
    cost = pl.CostEstimate(
        flops=int(2 * B * H * W * Cin * Cout
                  + 2 * steps * (r * r) * Cdst * K * N),
        transcendentals=0,
        bytes_accessed=int(x3.size * in_isz
                           + B * Cdst * H * W * r * r * out_isz
                           + w_perm.size * in_isz + b_perm.size * 4
                           + scat.size * scat_isz),
    )

    kernel = _make_kernel(r * r, Cdst)
    out_flat = pl.pallas_call(
        kernel,
        out_shape=jax.ShapeDtypeStruct((B, Cdst, H * W * r * r), out_dtype),
        grid=(B, H // th),
        in_specs=[
            pl.BlockSpec((None, Cin, K), lambda b, h: (b, 0, h)),
            pl.BlockSpec((Cout, Cin), lambda b, h: (0, 0)),
            pl.BlockSpec((Cout, 1), lambda b, h: (0, 0)),
            pl.BlockSpec((r * r, K, N), lambda b, h: (0, 0, 0)),
        ],
        out_specs=pl.BlockSpec((None, Cdst, N), lambda b, h: (b, 0, h)),
        compiler_params=pltpu.CompilerParams(
            dimension_semantics=("parallel", "parallel"),
            vmem_limit_bytes=vmem_limit,
        ),
        cost_estimate=cost,
    )(x3, w_perm, b_perm, scat)

    return out_flat.reshape(B, Cdst, H * r, W * r)


def _reference(x_nchw, weight, bias, factor=2):
    """Pure-JAX reference of Conv2d(k=1) + PixelShuffle for verification."""
    B, Cin, H, W = x_nchw.shape
    Cout = weight.shape[0]
    r = factor
    Cdst = Cout // (r * r)
    y = jnp.einsum("bchw,oc->bohw", x_nchw, weight) + bias[None, :, None, None]
    y = y.reshape(B, Cdst, r, r, H, W)
    y = jnp.transpose(y, (0, 1, 4, 2, 5, 3))          # [B, Cdst, H, i, W, j]
    return y.reshape(B, Cdst, H * r, W * r)


if __name__ == "__main__":
    dim = 4
    factor = 2
    B, H, W = 2, 16, 16
    Cout = factor * dim  # conv output channels

    key = jax.random.PRNGKey(0)
    kx, kw, kb = jax.random.split(key, 3)

    x = jax.random.normal(kx, (B, dim, H, W), dtype=jnp.float32)
    bound = 1.0 / (dim ** 0.5)
    weight = jax.random.uniform(kw, (Cout, dim), minval=-bound, maxval=bound,
                                dtype=jnp.float32)
    bias = jax.random.uniform(kb, (Cout,), minval=-bound, maxval=bound,
                              dtype=jnp.float32)

    out = upsample_forward(x, weight, bias, factor=factor)
    out = jax.block_until_ready(out)

    ref = _reference(x, weight, bias, factor=factor)
    assert out.shape == (B, Cout // (factor * factor), H * factor, W * factor), out.shape
    assert jnp.allclose(out, ref, atol=1e-5, rtol=1e-5), "mismatch vs reference"

    print("KERNEL_OK")
</pallas_src>

<mosaic_0001>
module attributes {stable_mosaic.version = 11 : i64} {
  func.func @kernel(%arg0: i32, %arg1: i32, %arg2: memref<1x4x256xf32, #tpu.memory_space<vmem>>, %arg3: memref<8x4xf32, #tpu.memory_space<vmem>>, %arg4: memref<8x1xf32, #tpu.memory_space<vmem>>, %arg5: memref<4x256x1024xf32, #tpu.memory_space<vmem>>, %arg6: memref<1x2x1024xf32, #tpu.memory_space<vmem>>) attributes {dimension_semantics = [#tpu.dimension_semantics<parallel>, #tpu.dimension_semantics<parallel>], iteration_bounds = array<i64: 2, 1>, scalar_prefetch = 0 : i64, scratch_operands = 0 : i64, tpu.core_type = #tpu.core_type<tc>, window_params = [{transform_indices = @transform_0, window_bounds = array<i64: 1, 4, 256>}, {pipeline_mode = #tpu.pipeline_mode<synchronous>, transform_indices = @transform_1, window_bounds = array<i64: 8, 4>}, {pipeline_mode = #tpu.pipeline_mode<synchronous>, transform_indices = @transform_2, window_bounds = array<i64: 8, 1>}, {pipeline_mode = #tpu.pipeline_mode<synchronous>, transform_indices = @transform_3, window_bounds = array<i64: 4, 256, 1024>}, {transform_indices = @transform_4, window_bounds = array<i64: 1, 2, 1024>}]} {
    %c0 = arith.constant 0 : index
    %c0_0 = arith.constant 0 : index
    %0 = vector.load %arg3[%c0, %c0_0] : memref<8x4xf32, #tpu.memory_space<vmem>>, vector<8x4xf32>
    %c0_1 = arith.constant 0 : index
    %c0_2 = arith.constant 0 : index
    %c0_3 = arith.constant 0 : index
    %1 = vector.load %arg2[%c0_1, %c0_2, %c0_3] : memref<1x4x256xf32, #tpu.memory_space<vmem>>, vector<1x4x256xf32>
    %2 = vector.shape_cast %1 : vector<1x4x256xf32> to vector<4x256xf32>
    %cst = arith.constant dense<0.000000e+00> : vector<8x256xf32>
    %3 = tpu.matmul %0, %2, %cst {dimension_numbers = #tpu.dot_dimension_numbers<[1], [0], [0], [1], [0, 0, 1, 1], [], []>} : vector<8x4xf32>, vector<4x256xf32>, vector<8x256xf32> -> vector<8x256xf32>
    %c0_4 = arith.constant 0 : index
    %c0_5 = arith.constant 0 : index
    %4 = vector.load %arg4[%c0_4, %c0_5] : memref<8x1xf32, #tpu.memory_space<vmem>>, vector<8x1xf32>
    %5 = vector.broadcast %4 : vector<8x1xf32> to vector<8x256xf32>
    %6 = arith.addf %3, %5 : vector<8x256xf32>
    %7 = vector.extract_strided_slice %6 {offsets = [0, 0], sizes = [2, 256], strides = [1, 1]} : vector<8x256xf32> to vector<2x256xf32>
    %c0_6 = arith.constant 0 : index
    %c0_7 = arith.constant 0 : index
    %c0_8 = arith.constant 0 : index
    %8 = vector.load %arg5[%c0_6, %c0_7, %c0_8] : memref<4x256x1024xf32, #tpu.memory_space<vmem>>, vector<1x256x1024xf32>
    %9 = vector.shape_cast %8 : vector<1x256x1024xf32> to vector<256x1024xf32>
    %cst_9 = arith.constant dense<0.000000e+00> : vector<2x1024xf32>
    %10 = tpu.matmul %7, %9, %cst_9 {dimension_numbers = #tpu.dot_dimension_numbers<[1], [0], [0], [1], [0, 0, 1, 1], [], []>} : vector<2x256xf32>, vector<256x1024xf32>, vector<2x1024xf32> -> vector<2x1024xf32>
    %11 = vector.extract_strided_slice %6 {offsets = [2, 0], sizes = [2, 256], strides = [1, 1]} : vector<8x256xf32> to vector<2x256xf32>
    %c1 = arith.constant 1 : index
    %c0_10 = arith.constant 0 : index
    %c0_11 = arith.constant 0 : index
    %12 = vector.load %arg5[%c1, %c0_10, %c0_11] : memref<4x256x1024xf32, #tpu.memory_space<vmem>>, vector<1x256x1024xf32>
    %13 = vector.shape_cast %12 : vector<1x256x1024xf32> to vector<256x1024xf32>
    %cst_12 = arith.constant dense<0.000000e+00> : vector<2x1024xf32>
    %14 = tpu.matmul %11, %13, %cst_12 {dimension_numbers = #tpu.dot_dimension_numbers<[1], [0], [0], [1], [0, 0, 1, 1], [], []>} : vector<2x256xf32>, vector<256x1024xf32>, vector<2x1024xf32> -> vector<2x1024xf32>
    %15 = arith.addf %10, %14 : vector<2x1024xf32>
    %16 = vector.extract_strided_slice %6 {offsets = [4, 0], sizes = [2, 256], strides = [1, 1]} : vector<8x256xf32> to vector<2x256xf32>
    %c2 = arith.constant 2 : index
    %c0_13 = arith.constant 0 : index
    %c0_14 = arith.constant 0 : index
    %17 = vector.load %arg5[%c2, %c0_13, %c0_14] : memref<4x256x1024xf32, #tpu.memory_space<vmem>>, vector<1x256x1024xf32>
    %18 = vector.shape_cast %17 : vector<1x256x1024xf32> to vector<256x1024xf32>
    %cst_15 = arith.constant dense<0.000000e+00> : vector<2x1024xf32>
    %19 = tpu.matmul %16, %18, %cst_15 {dimension_numbers = #tpu.dot_dimension_numbers<[1], [0], [0], [1], [0, 0, 1, 1], [], []>} : vector<2x256xf32>, vector<256x1024xf32>, vector<2x1024xf32> -> vector<2x1024xf32>
    %20 = arith.addf %15, %19 : vector<2x1024xf32>
    %21 = vector.extract_strided_slice %6 {offsets = [6, 0], sizes = [2, 256], strides = [1, 1]} : vector<8x256xf32> to vector<2x256xf32>
    %c3 = arith.constant 3 : index
    %c0_16 = arith.constant 0 : index
    %c0_17 = arith.constant 0 : index
    %22 = vector.load %arg5[%c3, %c0_16, %c0_17] : memref<4x256x1024xf32, #tpu.memory_space<vmem>>, vector<1x256x1024xf32>
    %23 = vector.shape_cast %22 : vector<1x256x1024xf32> to vector<256x1024xf32>
    %cst_18 = arith.constant dense<0.000000e+00> : vector<2x1024xf32>
    %24 = tpu.matmul %21, %23, %cst_18 {dimension_numbers = #tpu.dot_dimension_numbers<[1], [0], [0], [1], [0, 0, 1, 1], [], []>} : vector<2x256xf32>, vector<256x1024xf32>, vector<2x1024xf32> -> vector<2x1024xf32>
    %25 = arith.addf %20, %24 : vector<2x1024xf32>
    %c0_19 = arith.constant 0 : index
    %c0_20 = arith.constant 0 : index
    %c0_21 = arith.constant 0 : index
    %26 = vector.load %arg6[%c0_19, %c0_20, %c0_21] : memref<1x2x1024xf32, #tpu.memory_space<vmem>>, vector<1x2x1024xf32>
    %27 = vector.shape_cast %26 : vector<1x2x1024xf32> to vector<2x1024xf32>
    %28 = vector.shape_cast %25 : vector<2x1024xf32> to vector<1x2x1024xf32>
    tpu.vector_store %arg6[%c0_19, %c0_20, %c0_21], %28 {strides = array<i32>} : memref<1x2x1024xf32, #tpu.memory_space<vmem>>, vector<1x2x1024xf32>,
    return
  }
  func.func @transform_0(%arg0: i32, %arg1: i32) -> (i32, i32, i32) {
    %c0_i32 = arith.constant 0 : i32
    %c0_i32_0 = arith.constant 0 : i32
    return %arg0, %c0_i32, %arg1 : i32, i32, i32
  }
  func.func @transform_1(%arg0: i32, %arg1: i32) -> (i32, i32) {
    %c0_i32 = arith.constant 0 : i32
    %c0_i32_0 = arith.constant 0 : i32
    %c0_i32_1 = arith.constant 0 : i32
    return %c0_i32, %c0_i32_0 : i32, i32
  }
  func.func @transform_2(%arg0: i32, %arg1: i32) -> (i32, i32) {
    %c0_i32 = arith.constant 0 : i32
    %c0_i32_0 = arith.constant 0 : i32
    %c0_i32_1 = arith.constant 0 : i32
    return %c0_i32, %c0_i32_0 : i32, i32
  }
  func.func @transform_3(%arg0: i32, %arg1: i32) -> (i32, i32, i32) {
    %c0_i32 = arith.constant 0 : i32
    %c0_i32_0 = arith.constant 0 : i32
    %c0_i32_1 = arith.constant 0 : i32
    %c0_i32_2 = arith.constant 0 : i32
    return %c0_i32, %c0_i32_0, %c0_i32_1 : i32, i32, i32
  }
  func.func @transform_4(%arg0: i32, %arg1: i32) -> (i32, i32, i32) {
    %c0_i32 = arith.constant 0 : i32
    %c0_i32_0 = arith.constant 0 : i32
    return %arg0, %c0_i32, %arg1 : i32, i32, i32
  }
}

</mosaic_0001>

<bundles_post_ra>
// kernel: tpu_custom_call.1
= control target key start
LH: loop header
LB: loop body
LE: loop exit
PB: predicated region body
PF: predicated region fallthrough
CT: control target
= control target key end

     0   :  { %9 = vsyncpa [#allocation3], 0  ;;  %s3401_s0 = inlined_call_operand.hbm [shape: f32[2,4,256], index: 0, kind: input, shape index: {}]   ;;  %s3402_s1 = inlined_call_operand.vmem [shape: f32[8,4], index: 1, kind: input, shape index: {}]   ;;  %s3403_s2 = inlined_call_operand.vmem [shape: f32[8,1], index: 2, kind: input, shape index: {}]   ;;  %s3404_s3 = inlined_call_operand.hbm [shape: f32[4,256,1024], index: 3, kind: input, shape index: {}]   ;;  %s3405_s4 = inlined_call_operand.hbm [shape: f32[2,2,1024], index: 4, kind: output, shape index: {}]  }
   0x1   :  { %11 = vsyncpa [#allocation3 + $0x1], 0 }
   0x2   :  { %12 = vsyncpa [#allocation6], 0 }
   0x3   :  { %13 = vsyncpa [#allocation4], 0 }
   0x4   :  { %15 = vsyncpa [#allocation4 + $0x1], 0  ;;  %s3067_s15 = smov 0   ;;  %s3069_s16 = smov 0  }
   0x5   :  { %s3071_s17 = smov 0   ;;  %s3073_s18 = smov 0  }
   0x6   :  { %s3075_s19 = smov 0   ;;  %s3077_s20 = smov 0  }
   0x7 LB: > { %s2790_s21 = sadd.s32 4294967295, %s3036_s20   ;;  %p2792_p0 = scmp.ge.s32.totalorder %s3036_s20, 1  ;;  %s3036_s20 = sphi %s3077_s20, %s21_s20   ;;  %s3032_s19 = sphi %s3075_s19, %s3416_s19   ;;  %s3028_s18 = sphi %s3073_s18, %s3415_s18   ;;  %s3024_s17 = sphi %s3071_s17, %s3414_s17   ;;  %s3020_s16 = sphi %s3069_s16, %s3413_s16   ;;  %s3016_s15 = sphi %s3067_s15, %s3412_s15  }
   0x8   : > { %p3099_p1 = scmp.eq.s32.totalorder %s2790_s21, 0  ;;  %p157_p2 = scmp.lt.s32.totalorder %s3036_s20, 3 }
   0x9   : > { %s174_s25 = sshll.u32 %s3404_s3, 4  ;;  %s3038_s27 = smov [#allocation5]   ;;  %s175_s25 = int_to_ptr.hbm [resolvable:$true] %s174_s25 }
   0xa   : > { %p3107_p3 = pnand %p2792_p0, %p157_p2  ;;  %s176_s28 = sshll.u32 %s3038_s27, 4  ;;  %s177_s28 = int_to_ptr.vmem [resolvable:$true] %s176_s28 }
   0xb   : > { %p2794_p6 = scmp.ge.s32.totalorder %s3036_s20, 2  ;;  %s3039_s29 = smov 1024  }
   0xc   : > { %p2821_p4 = pneg %p3107_p3  ;;  %s3040_s30 = smov 64  }
   0xd   : > { %s2791_s5 = sadd.s32 4294967294, %s3036_s20   ;;  %s33_s6 = sadd.s32 1, %s3032_s19 }
   0xe   : > { %p2822_p5 = pnand %p2821_p4, %p3099_p1  ;;  %s42_s7 = sadd.s32 1, %s3024_s17 }
   0xf   : > { %p35_p7 = scmp.ge.s32.totalorder %s33_s6, 2  ;;  %p49_p8 = scmp.ne.s32.totalorder %s3024_s17, %s3020_s16 }
  0x10   : > { %2824 = dma.hbm_to_vmem [thread:$0]  (!%p2822_p5), %s175_s25, 131072, %s177_s28, [#allocation6], %s3039_s29, %s3039_s29, %s3040_s30  }
  0x11   : > { %p50_p9 = scmp.eq.s32.totalorder %s3036_s20, 0  ;;  %p55_p10 = scmp.ne.s32.totalorder %s3020_s16, %s3016_s15 }
  0x12   : > { %s3418_s6 = smov (%p35_p7, %s33_s6), 0  ;;  %p144_p13 = scmp.eq.s32.totalorder %s2790_s21, 1 }
  0x13   : > { %p3126_p11 = por %p50_p9, %p49_p8  ;;  %p3132_p12 = por %p3099_p1, %p55_p10 }
  0x14   : > { %s37_s10 = ssub.s32 %s3032_s19, %s3418_s6  ;;  %p150_p2 = scmp.eq.s32.totalorder %s2791_s5, 1 }
  0x15   : > { %p40_p0 = scmp.eq.s32.totalorder %s37_s10, 0  ;;  %p3138_p4 = por %p144_p13, %p49_p8 }
  0x16   : > { %p2834_p5 = scmp.lt.s32.totalorder %s3036_s20, 2  ;;  %p3146_p7 = por %p150_p2, %p55_p10 }
  0x17   : > { %s3144_s12 = scalar_select %p40_p0, %s3024_s17, %s42_s7  }
  0x18   : > { %s190_s14 = sand.u32 1, %s3024_s17   ;;  %s2811_s24 = sshll.u32 %s3032_s19, 3 }
  0x19   : > { %s2795_s23 = sshll.u32 %s190_s14, 3  ;;  %s201_s21 = scalar_lea.hbm %s3401_s0, %s2811_s24 }
  0x1a   : > { %s194_s28 = scalar_lea.vmem [#allocation2], %s2795_s23  ;;  %s203_s30 = sshll.u32 %s201_s21, 4  ;;  %s204_s30 = int_to_ptr.hbm [resolvable:$true] %s203_s30 }
  0x1b   : > { %s205_s29 = sshll.u32 %s194_s28, 4  ;;  %p2826_p8 = pnand %p2834_p5, %p3126_p11  ;;  %s206_s29 = int_to_ptr.vmem [resolvable:$true] %s205_s29 }
  0x1c   : > { %s191_s5 = scalar_lea.sflag [#allocation3], %s190_s14  ;;  %214 = sbr.rel (%p3107_p3) target bundleno = 797 (0x31d), region = 36 }
  0x1d   : > { %2828 = dma.hbm_to_vmem [thread:$0]  (!%p2826_p8), %s204_s30, 128, %s206_s29, %s191_s5  }
  0x1e   : > { %s3160_s7 = sand.u32 (!%p3107_p3), 1, %s3020_s16  }
  0x1f   : > { %s2799_s10 = sshll.u32 (!%p3107_p3), %s3160_s7, 3  ;;  %s217_s24 = scalar_lea.sflag (!%p3107_p3), [#allocation3], %s3160_s7 }
  0x20   : > { %s220_s23 = scalar_lea.vmem (!%p3107_p3), [#allocation2], %s2799_s10 }
  0x21   : > { %3003 = dma.done.wait (%p3132_p12), %s217_s24, 128  }
  0x22   : > { %3005 = vsyncadd (%p3132_p12), %s217_s24, 4294967168 }
  0x23   : > { %3007 = dma.done.wait (%p3099_p1), [#allocation6], 131072  }
  0x24   : > { %3009 = vsyncadd (%p3099_p1), [#allocation6], 4294836224  ;;  %v3041_v0 = vmov 0   ;;  %v254_v1 = vld [vmem:[%s220_s23] sm:$0xff]  ;;  %v255_v2 = vld [vmem:[%s3403_s2] sm:$0xff]  ;;  %vm269_vm0 = vcmask 1043456  }
  0x25   : > { %2889 = vset.pattern.permute.xlu0 %v3041_v0  ;;  %262 = vst [vmem:[#allocation1] ss:$2 sm:$0xff] %v254_v1  ;;  %v691_v3 = vld [vmem:[#allocation5 + $0xbc0] sm:$0xff]  ;;  %v253_v11 = vld [vmem:[%s3402_s1] sm:$0xff]  ;;  %vm265_vm1 = vcmask 31744   ;;  %v693_v0 = vld [vmem:[#allocation5 + $0xbd0] sm:$0xff] }
  0x26   : > { %258 = vperm.xlu0 %2889, %v255_v2   ;;  %v819_v4 = vld [vmem:[#allocation5 + $0xfc0] sm:$0xff]  ;;  %833 = vmatpush.msra.mxu2 %v691_v3  ;;  %v692_v12 = vld [vmem:[#allocation5 + $0xbc8] sm:$0xff]  ;;  %v821_v1 = vld [vmem:[#allocation5 + $0xfd0] sm:$0xff]  ;;  %vm2665_vm2 = vcmask 1041408   ;;  %s2801_s14 = sshll.u32 %s3160_s7, 4  ;;  %vm2667_vm3 = vcmask 1045508  }
  0x27   : > { %853 = vmatpush.msra.mxu3 %v819_v4  ;;  %v683_v5 = vld [vmem:[#allocation5 + $0xb80] sm:$0xff]  ;;  %v820_v13 = vld [vmem:[#allocation5 + $0xfc8] sm:$0xff]  ;;  %v685_v4 = vld [vmem:[#allocation5 + $0xb90] sm:$0xff]  ;;  %s250_s25 = scalar_lea.vmem [#allocation7], %s2801_s14  ;;  %s2812_s27 = sshll.u32 %s3028_s18, 4 }
  0x28   : > { %v811_v6 = vld [vmem:[#allocation5 + $0xf80] sm:$0xff]  ;;  %834 = vmatpush.msra.mxu2 %v683_v5  ;;  %v684_v18 = vld [vmem:[#allocation5 + $0xb88] sm:$0xff]  ;;  %v813_v5 = vld [vmem:[#allocation5 + $0xf90] sm:$0xff]  ;;  %s2691_s29 = scalar_lea.hbm %s3405_s4, %s2812_s27  ;;  %s2693_s30 = sshll.u32 %s250_s25, 4  ;;  %s2694_s30 = int_to_ptr.vmem [resolvable:$true] %s2693_s30 }
  0x29   : > { %v675_v7 = vld [vmem:[#allocation5 + $0xb40] sm:$0xff]  ;;  %854 = vmatpush.msra.mxu3 %v811_v6  ;;  %v812_v19 = vld [vmem:[#allocation5 + $0xf88] sm:$0xff]  ;;  %s2695_s5 = sshll.u32 %s2691_s29, 4  ;;  %s2678_s18 = scalar_lea.sflag [#allocation4], %s3160_s7  ;;  %s2696_s5 = int_to_ptr.hbm [resolvable:$true] %s2695_s5 }
  0x2a   : > { %v803_v8 = vld [vmem:[#allocation5 + $0xf40] sm:$0xff]  ;;  %835 = vmatpush.msra.mxu2 %v675_v7  ;;  %v676_v22 = vld [vmem:[#allocation5 + $0xb48] sm:$0xff]  ;;  %s2964_s10 = sshra.s32 %s2696_s5, 4  ;;  %s2970_s8 = scalar_lea.hbm %s3405_s4, 32  ;;  %s2965_s10 = int_to_ptr.hbm [resolvable:$true] %s2964_s10 }
  0x2b   : > { %v667_v9 = vld [vmem:[#allocation5 + $0xb00] sm:$0xff]  ;;  %855 = vmatpush.msra.mxu3 %v803_v8  ;;  %v804_v23 = vld [vmem:[#allocation5 + $0xf48] sm:$0xff]  ;;  %v677_v8 = vld [vmem:[#allocation5 + $0xb50] sm:$0xff]  ;;  %s2966_s24 = scalar_lea.hbm %s2965_s10, 16  ;;  %p2971_p10 = scmp.lt.s32.totalorder %s2965_s10, %s3405_s4 }
  0x2c   : > { %v795_v10 = vld [vmem:[#allocation5 + $0xf00] sm:$0xff]  ;;  %v263_v14 = vld.sshfl [vmem:[#allocation1] sm:$0xff pattern:$0x75316420]  ;;  %836 = vmatpush.msra.mxu2 %v667_v9  ;;  %v805_v9 = vld [vmem:[#allocation5 + $0xf50] sm:$0xff]  ;;  %p2967_p1 = scmp.ne.s32.totalorder %s2965_s10, %s2966_s24  ;;  %p2972_p11 = scmp.lt.s32.totalorder %s2970_s8, %s2966_s24 }
  0x2d   : > { %v264_v15 = vld.sshfl [vmem:[#allocation1 + $0x8] sm:$0xff pattern:$0x75316420]  ;;  %856 = vmatpush.msra.mxu3 %v795_v10  ;;  %2802 = vmatpush.msk.msra.mxu0 %vm269_vm0, %v263_v14  ;;  %v659_v16 = vld [vmem:[#allocation5 + $0xac0] sm:$0xff]  ;;  %v668_v26 = vld [vmem:[#allocation5 + $0xb08] sm:$0xff] }
  0x2e   : > { %2804 = vmatpush.msk.msra.mxu1 %vm269_vm0, %v264_v15  ;;  %v787_v17 = vld [vmem:[#allocation5 + $0xec0] sm:$0xff]  ;;  %2803 = vmatmul.msk.f32.vlgmr.msra.gmra.mxu0 %vm265_vm1, %v253_v11  ;;  %v796_v27 = vld [vmem:[#allocation5 + $0xf08] sm:$0xff]  ;;  %v669_v14 = vld [vmem:[#allocation5 + $0xb10] sm:$0xff]  ;;  %p2968_p3 = pnand %p2967_p1, %p3138_p4  ;;  %p2973_p12 = por %p2972_p11, %p2971_p10 }
  0x2f   : > { %2805 = vmatmul.msk.f32.vlgmr.msra.gmra.mxu1 %vm265_vm1, %v253_v11  ;;  %873 = vmatpush.msrb.mxu0 %v692_v12  ;;  %v651_v20 = vld [vmem:[#allocation5 + $0xa80] sm:$0xff]  ;;  %v660_v30 = vld [vmem:[#allocation5 + $0xac8] sm:$0xff]  ;;  %v694_v12 = vld [vmem:[#allocation5 + $0xbd8] sm:$0xff] }
  0x30   : > { %893 = vmatpush.msrb.mxu1 %v820_v13  ;;  %v779_v21 = vld [vmem:[#allocation5 + $0xe80] sm:$0xff]  ;;  %837 = vmatpush.msra.mxu2 %v659_v16  ;;  %v788_v31 = vld [vmem:[#allocation5 + $0xec8] sm:$0xff]  ;;  %v822_v13 = vld [vmem:[#allocation5 + $0xfd8] sm:$0xff]  ;;  %p2969_p9 = pneg %p2968_p3 }
  0x31   : > { %857 = vmatpush.msra.mxu3 %v787_v17  ;;  %874 = vmatpush.msrb.mxu0 %v684_v18  ;;  %v643_v24 = vld [vmem:[#allocation5 + $0xa40] sm:$0xff]  ;;  %v652_v34 = vld [vmem:[#allocation5 + $0xa88] sm:$0xff]  ;;  %v797_v15 = vld [vmem:[#allocation5 + $0xf10] sm:$0xff] }
  0x32   : > { %894 = vmatpush.msrb.mxu1 %v812_v19  ;;  %v771_v25 = vld [vmem:[#allocation5 + $0xe40] sm:$0xff]  ;;  %838 = vmatpush.msra.mxu2 %v651_v20  ;;  %v780_v35 = vld [vmem:[#allocation5 + $0xe88] sm:$0xff]  ;;  %v686_v16 = vld [vmem:[#allocation5 + $0xb98] sm:$0xff]  ;;  %p2974_p13 = pnand %p2973_p12, %p2969_p9 }
  0x33   : > { %858 = vmatpush.msra.mxu3 %v779_v21  ;;  %875 = vmatpush.msrb.mxu0 %v676_v22  ;;  %v635_v28 = vld [vmem:[#allocation5 + $0xa00] sm:$0xff]  ;;  %v644_v38 = vld [vmem:[#allocation5 + $0xa48] sm:$0xff]  ;;  %v814_v17 = vld [vmem:[#allocation5 + $0xf98] sm:$0xff] }
  0x34   : > { %895 = vmatpush.msrb.mxu1 %v804_v23  ;;  %v763_v29 = vld [vmem:[#allocation5 + $0xe00] sm:$0xff]  ;;  %839 = vmatpush.msra.mxu2 %v643_v24  ;;  %v772_v39 = vld [vmem:[#allocation5 + $0xe48] sm:$0xff]  ;;  %v661_v18 = vld [vmem:[#allocation5 + $0xad0] sm:$0xff] }
  0x35   : > { %859 = vmatpush.msra.mxu3 %v771_v25  ;;  %876 = vmatpush.msrb.mxu0 %v668_v26  ;;  %v627_v32 = vld [vmem:[#allocation5 + $0x9c0] sm:$0xff]  ;;  %v636_v42 = vld [vmem:[#allocation5 + $0xa08] sm:$0xff]  ;;  %v789_v19 = vld [vmem:[#allocation5 + $0xed0] sm:$0xff] }
  0x36   : > { %896 = vmatpush.msrb.mxu1 %v796_v27  ;;  %v755_v33 = vld [vmem:[#allocation5 + $0xdc0] sm:$0xff]  ;;  %840 = vmatpush.msra.mxu2 %v635_v28  ;;  %v764_v43 = vld [vmem:[#allocation5 + $0xe08] sm:$0xff]  ;;  %v678_v20 = vld [vmem:[#allocation5 + $0xb58] sm:$0xff] }
  0x37   : > { %860 = vmatpush.msra.mxu3 %v763_v29  ;;  %877 = vmatpush.msrb.mxu0 %v660_v30  ;;  %v619_v36 = vld [vmem:[#allocation5 + $0x980] sm:$0xff]  ;;  %v628_v46 = vld [vmem:[#allocation5 + $0x9c8] sm:$0xff]  ;;  %v806_v21 = vld [vmem:[#allocation5 + $0xf58] sm:$0xff] }
  0x38   : > { %897 = vmatpush.msrb.mxu1 %v788_v31  ;;  %v747_v37 = vld [vmem:[#allocation5 + $0xd80] sm:$0xff]  ;;  %841 = vmatpush.msra.mxu2 %v627_v32  ;;  %v756_v47 = vld [vmem:[#allocation5 + $0xdc8] sm:$0xff]  ;;  %v653_v22 = vld [vmem:[#allocation5 + $0xa90] sm:$0xff] }
  0x39   : > { %861 = vmatpush.msra.mxu3 %v755_v33  ;;  %878 = vmatpush.msrb.mxu0 %v652_v34  ;;  %v611_v40 = vld [vmem:[#allocation5 + $0x940] sm:$0xff]  ;;  %v620_v50 = vld [vmem:[#allocation5 + $0x988] sm:$0xff]  ;;  %v781_v23 = vld [vmem:[#allocation5 + $0xe90] sm:$0xff] }
  0x3a   : > { %898 = vmatpush.msrb.mxu1 %v780_v35  ;;  %v739_v41 = vld [vmem:[#allocation5 + $0xd40] sm:$0xff]  ;;  %842 = vmatpush.msra.mxu2 %v619_v36  ;;  %v748_v51 = vld [vmem:[#allocation5 + $0xd88] sm:$0xff]  ;;  %v670_v24 = vld [vmem:[#allocation5 + $0xb18] sm:$0xff] }
  0x3b   : > { %862 = vmatpush.msra.mxu3 %v747_v37  ;;  %879 = vmatpush.msrb.mxu0 %v644_v38  ;;  %v603_v44 = vld [vmem:[#allocation5 + $0x900] sm:$0xff]  ;;  %v612_v54 = vld [vmem:[#allocation5 + $0x948] sm:$0xff]  ;;  %v798_v25 = vld [vmem:[#allocation5 + $0xf18] sm:$0xff] }
  0x3c   : > { %899 = vmatpush.msrb.mxu1 %v772_v39  ;;  %v731_v45 = vld [vmem:[#allocation5 + $0xd00] sm:$0xff]  ;;  %843 = vmatpush.msra.mxu2 %v611_v40  ;;  %v740_v55 = vld [vmem:[#allocation5 + $0xd48] sm:$0xff]  ;;  %v645_v26 = vld [vmem:[#allocation5 + $0xa50] sm:$0xff] }
  0x3d   : > { %863 = vmatpush.msra.mxu3 %v739_v41  ;;  %880 = vmatpush.msrb.mxu0 %v636_v42  ;;  %v595_v48 = vld [vmem:[#allocation5 + $0x8c0] sm:$0xff]  ;;  %v604_v58 = vld [vmem:[#allocation5 + $0x908] sm:$0xff]  ;;  %v773_v27 = vld [vmem:[#allocation5 + $0xe50] sm:$0xff] }
  0x3e   : > { %900 = vmatpush.msrb.mxu1 %v764_v43  ;;  %v723_v49 = vld [vmem:[#allocation5 + $0xcc0] sm:$0xff]  ;;  %844 = vmatpush.msra.mxu2 %v603_v44  ;;  %v732_v59 = vld [vmem:[#allocation5 + $0xd08] sm:$0xff]  ;;  %v662_v28 = vld [vmem:[#allocation5 + $0xad8] sm:$0xff] }
  0x3f   : > { %864 = vmatpush.msra.mxu3 %v731_v45  ;;  %881 = vmatpush.msrb.mxu0 %v628_v46  ;;  %v587_v52 = vld [vmem:[#allocation5 + $0x880] sm:$0xff]  ;;  %v596_v62 = vld [vmem:[#allocation5 + $0x8c8] sm:$0xff]  ;;  %v790_v29 = vld [vmem:[#allocation5 + $0xed8] sm:$0xff] }
  0x40   : > { %901 = vmatpush.msrb.mxu1 %v756_v47  ;;  %v715_v53 = vld [vmem:[#allocation5 + $0xc80] sm:$0xff]  ;;  %845 = vmatpush.msra.mxu2 %v595_v48  ;;  %v724_v63 = vld [vmem:[#allocation5 + $0xcc8] sm:$0xff]  ;;  %v637_v30 = vld [vmem:[#allocation5 + $0xa10] sm:$0xff] }
  0x41   : > { %865 = vmatpush.msra.mxu3 %v723_v49  ;;  %882 = vmatpush.msrb.mxu0 %v620_v50  ;;  %v579_v56 = vld [vmem:[#allocation5 + $0x840] sm:$0xff]  ;;  %v588_v2 = vld [vmem:[#allocation5 + $0x888] sm:$0xff]  ;;  %v765_v31 = vld [vmem:[#allocation5 + $0xe10] sm:$0xff] }
  0x42   : > { %902 = vmatpush.msrb.mxu1 %v748_v51  ;;  %v707_v57 = vld [vmem:[#allocation5 + $0xc40] sm:$0xff]  ;;  %846 = vmatpush.msra.mxu2 %v587_v52  ;;  %v716_v3 = vld [vmem:[#allocation5 + $0xc88] sm:$0xff]  ;;  %v654_v32 = vld [vmem:[#allocation5 + $0xa98] sm:$0xff] }
  0x43   : > { %866 = vmatpush.msra.mxu3 %v715_v53  ;;  %883 = vmatpush.msrb.mxu0 %v612_v54  ;;  %v571_v60 = vld [vmem:[#allocation5 + $0x800] sm:$0xff]  ;;  %v580_v6 = vld [vmem:[#allocation5 + $0x848] sm:$0xff]  ;;  %v782_v33 = vld [vmem:[#allocation5 + $0xe98] sm:$0xff] }
  0x44   : > { %903 = vmatpush.msrb.mxu1 %v740_v55  ;;  %v699_v61 = vld [vmem:[#allocation5 + $0xc00] sm:$0xff]  ;;  %847 = vmatpush.msra.mxu2 %v579_v56  ;;  %v708_v7 = vld [vmem:[#allocation5 + $0xc48] sm:$0xff]  ;;  %v629_v34 = vld [vmem:[#allocation5 + $0x9d0] sm:$0xff] }
  0x45   : > { %867 = vmatpush.msra.mxu3 %v707_v57  ;;  %884 = vmatpush.msrb.mxu0 %v604_v58  ;;  %v572_v10 = vld [vmem:[#allocation5 + $0x808] sm:$0xff]  ;;  %v757_v35 = vld [vmem:[#allocation5 + $0xdd0] sm:$0xff]  ;;  %v646_v36 = vld [vmem:[#allocation5 + $0xa58] sm:$0xff] }
  0x46   : > { %904 = vmatpush.msrb.mxu1 %v732_v59  ;;  %848 = vmatpush.msra.mxu2 %v571_v60  ;;  %v700_v11 = vld [vmem:[#allocation5 + $0xc08] sm:$0xff]  ;;  %v774_v37 = vld [vmem:[#allocation5 + $0xe58] sm:$0xff]  ;;  %v621_v38 = vld [vmem:[#allocation5 + $0x990] sm:$0xff] }
  0x47   : > { %868 = vmatpush.msra.mxu3 %v699_v61  ;;  %885 = vmatpush.msrb.mxu0 %v596_v62  ;;  %v749_v39 = vld [vmem:[#allocation5 + $0xd90] sm:$0xff]  ;;  %v638_v40 = vld [vmem:[#allocation5 + $0xa18] sm:$0xff] }
  0x48   : > { %905 = vmatpush.msrb.mxu1 %v724_v63  ;;  %913 = vmatpush.msrb.mxu2 %v693_v0  ;;  %v766_v41 = vld [vmem:[#allocation5 + $0xe18] sm:$0xff]  ;;  %v613_v42 = vld [vmem:[#allocation5 + $0x950] sm:$0xff] }
  0x49   : > { %933 = vmatpush.msrb.mxu3 %v821_v1  ;;  %886 = vmatpush.msrb.mxu0 %v588_v2  ;;  %v741_v43 = vld [vmem:[#allocation5 + $0xd50] sm:$0xff]  ;;  %v630_v44 = vld [vmem:[#allocation5 + $0x9d8] sm:$0xff] }
  0x4a   : > { %906 = vmatpush.msrb.mxu1 %v716_v3  ;;  %914 = vmatpush.msrb.mxu2 %v685_v4  ;;  %v758_v45 = vld [vmem:[#allocation5 + $0xdd8] sm:$0xff]  ;;  %v605_v46 = vld [vmem:[#allocation5 + $0x910] sm:$0xff] }
  0x4b   : > { %934 = vmatpush.msrb.mxu3 %v813_v5  ;;  %887 = vmatpush.msrb.mxu0 %v580_v6  ;;  %v733_v47 = vld [vmem:[#allocation5 + $0xd10] sm:$0xff]  ;;  %v622_v48 = vld [vmem:[#allocation5 + $0x998] sm:$0xff] }
  0x4c   : > { %907 = vmatpush.msrb.mxu1 %v708_v7  ;;  %915 = vmatpush.msrb.mxu2 %v677_v8  ;;  %v750_v49 = vld [vmem:[#allocation5 + $0xd98] sm:$0xff]  ;;  %v597_v50 = vld [vmem:[#allocation5 + $0x8d0] sm:$0xff] }
  0x4d   : > { %935 = vmatpush.msrb.mxu3 %v805_v9  ;;  %888 = vmatpush.msrb.mxu0 %v572_v10  ;;  %v725_v51 = vld [vmem:[#allocation5 + $0xcd0] sm:$0xff]  ;;  %v614_v52 = vld [vmem:[#allocation5 + $0x958] sm:$0xff] }
  0x4e   : > { %908 = vmatpush.msrb.mxu1 %v700_v11  ;;  %916 = vmatpush.msrb.mxu2 %v669_v14  ;;  %v742_v53 = vld [vmem:[#allocation5 + $0xd58] sm:$0xff]  ;;  %v589_v54 = vld [vmem:[#allocation5 + $0x890] sm:$0xff]  ;;  %v823_v14 = vld [vmem:[#allocation5 + $0xfe0] sm:$0xff] }
  0x4f   : > { %953 = vmatpush.msra.mxu0 %v694_v12  ;;  %936 = vmatpush.msrb.mxu3 %v797_v15  ;;  %v717_v55 = vld [vmem:[#allocation5 + $0xc90] sm:$0xff]  ;;  %v606_v56 = vld [vmem:[#allocation5 + $0x918] sm:$0xff]  ;;  %v696_v15 = vld [vmem:[#allocation5 + $0xbe8] sm:$0xff] }
  0x50   : > { %973 = vmatpush.msra.mxu1 %v822_v13  ;;  %917 = vmatpush.msrb.mxu2 %v661_v18  ;;  %v734_v57 = vld [vmem:[#allocation5 + $0xd18] sm:$0xff]  ;;  %v581_v62 = vld [vmem:[#allocation5 + $0x850] sm:$0xff]  ;;  %v695_v13 = vld [vmem:[#allocation5 + $0xbe0] sm:$0xff] }
  0x51   : > { %954 = vmatpush.msra.mxu0 %v686_v16  ;;  %937 = vmatpush.msrb.mxu3 %v789_v19  ;;  %v598_v58 = vld [vmem:[#allocation5 + $0x8d8] sm:$0xff]  ;;  %v709_v63 = vld [vmem:[#allocation5 + $0xc50] sm:$0xff]  ;;  %v824_v16 = vld [vmem:[#allocation5 + $0xfe8] sm:$0xff] }
  0x52   : > { %974 = vmatpush.msra.mxu1 %v814_v17  ;;  %918 = vmatpush.msrb.mxu2 %v653_v22  ;;  %v726_v59 = vld [vmem:[#allocation5 + $0xcd8] sm:$0xff]  ;;  %v573_v2 = vld [vmem:[#allocation5 + $0x810] sm:$0xff]  ;;  %v687_v17 = vld [vmem:[#allocation5 + $0xba0] sm:$0xff] }
  0x53   : > { %955 = vmatpush.msra.mxu0 %v678_v20  ;;  %938 = vmatpush.msrb.mxu3 %v781_v23  ;;  %v590_v60 = vld [vmem:[#allocation5 + $0x898] sm:$0xff]  ;;  %v701_v3 = vld [vmem:[#allocation5 + $0xc10] sm:$0xff]  ;;  %v815_v18 = vld [vmem:[#allocation5 + $0xfa0] sm:$0xff] }
  0x54   : > { %975 = vmatpush.msra.mxu1 %v806_v21  ;;  %919 = vmatpush.msrb.mxu2 %v645_v26  ;;  %v718_v61 = vld [vmem:[#allocation5 + $0xc98] sm:$0xff]  ;;  %v688_v19 = vld [vmem:[#allocation5 + $0xba8] sm:$0xff]  ;;  %v679_v21 = vld [vmem:[#allocation5 + $0xb60] sm:$0xff] }
  0x55   : > { %956 = vmatpush.msra.mxu0 %v670_v24  ;;  %939 = vmatpush.msrb.mxu3 %v773_v27  ;;  %v582_v0 = vld [vmem:[#allocation5 + $0x858] sm:$0xff]  ;;  %v816_v20 = vld [vmem:[#allocation5 + $0xfa8] sm:$0xff]  ;;  %v807_v22 = vld [vmem:[#allocation5 + $0xf60] sm:$0xff] }
  0x56   : > { %976 = vmatpush.msra.mxu1 %v798_v25  ;;  %920 = vmatpush.msrb.mxu2 %v637_v30  ;;  %v710_v1 = vld [vmem:[#allocation5 + $0xc58] sm:$0xff]  ;;  %v680_v23 = vld [vmem:[#allocation5 + $0xb68] sm:$0xff]  ;;  %v671_v25 = vld [vmem:[#allocation5 + $0xb20] sm:$0xff] }
  0x57   : > { %957 = vmatpush.msra.mxu0 %v662_v28  ;;  %940 = vmatpush.msrb.mxu3 %v765_v31  ;;  %v574_v4 = vld [vmem:[#allocation5 + $0x818] sm:$0xff]  ;;  %v808_v24 = vld [vmem:[#allocation5 + $0xf68] sm:$0xff]  ;;  %v799_v26 = vld [vmem:[#allocation5 + $0xf20] sm:$0xff] }
  0x58   : > { %977 = vmatpush.msra.mxu1 %v790_v29  ;;  %921 = vmatpush.msrb.mxu2 %v629_v34  ;;  %v702_v5 = vld [vmem:[#allocation5 + $0xc18] sm:$0xff]  ;;  %v672_v27 = vld [vmem:[#allocation5 + $0xb28] sm:$0xff]  ;;  %v663_v29 = vld [vmem:[#allocation5 + $0xae0] sm:$0xff] }
  0x59   : > { %958 = vmatpush.msra.mxu0 %v654_v32  ;;  %941 = vmatpush.msrb.mxu3 %v757_v35  ;;  %v800_v28 = vld [vmem:[#allocation5 + $0xf28] sm:$0xff]  ;;  %v791_v30 = vld [vmem:[#allocation5 + $0xee0] sm:$0xff] }
  0x5a   : > { %978 = vmatpush.msra.mxu1 %v782_v33  ;;  %922 = vmatpush.msrb.mxu2 %v621_v38  ;;  %v664_v31 = vld [vmem:[#allocation5 + $0xae8] sm:$0xff]  ;;  %v655_v33 = vld [vmem:[#allocation5 + $0xaa0] sm:$0xff] }
  0x5b   : > { %959 = vmatpush.msra.mxu0 %v646_v36  ;;  %942 = vmatpush.msrb.mxu3 %v749_v39  ;;  %v792_v32 = vld [vmem:[#allocation5 + $0xee8] sm:$0xff]  ;;  %v783_v34 = vld [vmem:[#allocation5 + $0xea0] sm:$0xff] }
  0x5c   : > { %979 = vmatpush.msra.mxu1 %v774_v37  ;;  %923 = vmatpush.msrb.mxu2 %v613_v42  ;;  %v656_v35 = vld [vmem:[#allocation5 + $0xaa8] sm:$0xff]  ;;  %v647_v37 = vld [vmem:[#allocation5 + $0xa60] sm:$0xff] }
  0x5d   : > { %960 = vmatpush.msra.mxu0 %v638_v40  ;;  %943 = vmatpush.msrb.mxu3 %v741_v43  ;;  %v784_v36 = vld [vmem:[#allocation5 + $0xea8] sm:$0xff]  ;;  %v775_v38 = vld [vmem:[#allocation5 + $0xe60] sm:$0xff] }
  0x5e   : > { %980 = vmatpush.msra.mxu1 %v766_v41  ;;  %924 = vmatpush.msrb.mxu2 %v605_v46  ;;  %v648_v39 = vld [vmem:[#allocation5 + $0xa68] sm:$0xff]  ;;  %v639_v41 = vld [vmem:[#allocation5 + $0xa20] sm:$0xff] }
  0x5f   : > { %961 = vmatpush.msra.mxu0 %v630_v44  ;;  %944 = vmatpush.msrb.mxu3 %v733_v47  ;;  %v776_v40 = vld [vmem:[#allocation5 + $0xe68] sm:$0xff]  ;;  %v767_v42 = vld [vmem:[#allocation5 + $0xe20] sm:$0xff] }
  0x60   : > { %981 = vmatpush.msra.mxu1 %v758_v45  ;;  %925 = vmatpush.msrb.mxu2 %v597_v50  ;;  %v640_v43 = vld [vmem:[#allocation5 + $0xa28] sm:$0xff]  ;;  %v631_v45 = vld [vmem:[#allocation5 + $0x9e0] sm:$0xff] }
  0x61   : > { %962 = vmatpush.msra.mxu0 %v622_v48  ;;  %945 = vmatpush.msrb.mxu3 %v725_v51  ;;  %v768_v44 = vld [vmem:[#allocation5 + $0xe28] sm:$0xff]  ;;  %v759_v46 = vld [vmem:[#allocation5 + $0xde0] sm:$0xff] }
  0x62   : > { %982 = vmatpush.msra.mxu1 %v750_v49  ;;  %926 = vmatpush.msrb.mxu2 %v589_v54  ;;  %v632_v47 = vld [vmem:[#allocation5 + $0x9e8] sm:$0xff]  ;;  %v623_v49 = vld [vmem:[#allocation5 + $0x9a0] sm:$0xff] }
  0x63   : > { %963 = vmatpush.msra.mxu0 %v614_v52  ;;  %946 = vmatpush.msrb.mxu3 %v717_v55  ;;  %v760_v48 = vld [vmem:[#allocation5 + $0xde8] sm:$0xff]  ;;  %v751_v50 = vld [vmem:[#allocation5 + $0xda0] sm:$0xff] }
  0x64   : > { %983 = vmatpush.msra.mxu1 %v742_v53  ;;  %927 = vmatpush.msrb.mxu2 %v581_v62  ;;  %v624_v51 = vld [vmem:[#allocation5 + $0x9a8] sm:$0xff]  ;;  %v615_v53 = vld [vmem:[#allocation5 + $0x960] sm:$0xff] }
  0x65   : > { %964 = vmatpush.msra.mxu0 %v606_v56  ;;  %947 = vmatpush.msrb.mxu3 %v709_v63  ;;  %v752_v52 = vld [vmem:[#allocation5 + $0xda8] sm:$0xff]  ;;  %v743_v54 = vld [vmem:[#allocation5 + $0xd60] sm:$0xff] }
  0x66   : > { %984 = vmatpush.msra.mxu1 %v734_v57  ;;  %928 = vmatpush.msrb.mxu2 %v573_v2  ;;  %v616_v55 = vld [vmem:[#allocation5 + $0x968] sm:$0xff]  ;;  %v607_v57 = vld [vmem:[#allocation5 + $0x920] sm:$0xff] }
  0x67   : > { %965 = vmatpush.msra.mxu0 %v598_v58  ;;  %948 = vmatpush.msrb.mxu3 %v701_v3  ;;  %v744_v56 = vld [vmem:[#allocation5 + $0xd68] sm:$0xff]  ;;  %v735_v58 = vld [vmem:[#allocation5 + $0xd20] sm:$0xff] }
  0x68   : > { %985 = vmatpush.msra.mxu1 %v726_v59  ;;  %v608_v59 = vld [vmem:[#allocation5 + $0x928] sm:$0xff]  ;;  %v727_v62 = vld [vmem:[#allocation5 + $0xce0] sm:$0xff] }
  0x69   : > { %966 = vmatpush.msra.mxu0 %v590_v60  ;;  %v736_v60 = vld [vmem:[#allocation5 + $0xd28] sm:$0xff]  ;;  %v719_v2 = vld [vmem:[#allocation5 + $0xca0] sm:$0xff] }
  0x6a   : > { %986 = vmatpush.msra.mxu1 %v718_v61  ;;  %v599_v61 = vld [vmem:[#allocation5 + $0x8e0] sm:$0xff]  ;;  %v600_v63 = vld [vmem:[#allocation5 + $0x8e8] sm:$0xff] }
  0x6b   : > { %967 = vmatpush.msra.mxu0 %v582_v0  ;;  %v728_v0 = vld [vmem:[#allocation5 + $0xce8] sm:$0xff] }
  0x6c   : > { %987 = vmatpush.msra.mxu1 %v710_v1  ;;  %v591_v1 = vld [vmem:[#allocation5 + $0x8a0] sm:$0xff]  ;;  %v592_v3 = vld [vmem:[#allocation5 + $0x8a8] sm:$0xff] }
  0x6d   : > { %968 = vmatpush.msra.mxu0 %v574_v4  ;;  %v720_v4 = vld [vmem:[#allocation5 + $0xca8] sm:$0xff] }
  0x6e   : > { %988 = vmatpush.msra.mxu1 %v702_v5  ;;  %v583_v5 = vld [vmem:[#allocation5 + $0x860] sm:$0xff] }
  0x98   : > { %v259_v6 = vpop.permute.xlu0 %258 }
  0xab   : > { %v291_v7 = vpop.f32.mrf.mxu0 }
  0xac   : > { %v311_v8 = vpop.f32.mrf.mxu1  ;;  %v3180_v9 = vadd.f32 %v291_v7, %v259_v6  ;;  %v584_v7 = vld [vmem:[#allocation5 + $0x868] sm:$0xff] }
  0xad   : > { %v3182_v10 = vadd.f32 %v311_v8, %v259_v6  ;;  %v711_v6 = vld [vmem:[#allocation5 + $0xc60] sm:$0xff]  ;;  %v712_v8 = vld [vmem:[#allocation5 + $0xc68] sm:$0xff] }
  0xae   : > { %v3185_v11 = vrot.slane %v3180_v9, 2 }
  0xaf   : > { %v3188_v12 = vrot.slane %v3182_v10, 2 }
  0xb0   : > { %849 = vmatmul.f32.vlgmr.msra.gmra.mxu2 %v3185_v11  ;;  %889 = vmatmul.f32.vlgmr.msrb.gmra.mxu0 %v3185_v11 }
  0xb1   : > { %869 = vmatmul.f32.vlgmr.msra.gmra.mxu3 %v3188_v12  ;;  %909 = vmatmul.f32.vlgmr.msrb.gmra.mxu1 %v3188_v12 }
  0xb2   : > { %993 = vmatpush.msra.mxu2 %v695_v13  ;;  %1013 = vmatpush.msra.mxu3 %v823_v14  ;;  %v575_v13 = vld [vmem:[#allocation5 + $0x820] sm:$0xff] }
  0xb3   : > { %1033 = vmatpush.msrb.mxu0 %v696_v15  ;;  %1053 = vmatpush.msrb.mxu1 %v824_v16  ;;  %v703_v14 = vld [vmem:[#allocation5 + $0xc20] sm:$0xff]  ;;  %v576_v15 = vld [vmem:[#allocation5 + $0x828] sm:$0xff] }
  0xb4   : > { %994 = vmatpush.msra.mxu2 %v687_v17  ;;  %1014 = vmatpush.msra.mxu3 %v815_v18  ;;  %v704_v16 = vld [vmem:[#allocation5 + $0xc28] sm:$0xff]  ;;  %v697_v17 = vld [vmem:[#allocation5 + $0xbf0] sm:$0xff] }
  0xb5   : > { %1034 = vmatpush.msrb.mxu0 %v688_v19  ;;  %1054 = vmatpush.msrb.mxu1 %v816_v20  ;;  %v825_v18 = vld [vmem:[#allocation5 + $0xff0] sm:$0xff]  ;;  %v698_v19 = vld [vmem:[#allocation5 + $0xbf8] sm:$0xff] }
  0xb6   : > { %995 = vmatpush.msra.mxu2 %v679_v21  ;;  %1015 = vmatpush.msra.mxu3 %v807_v22  ;;  %v826_v20 = vld [vmem:[#allocation5 + $0xff8] sm:$0xff]  ;;  %v689_v21 = vld [vmem:[#allocation5 + $0xbb0] sm:$0xff] }
  0xb7   : > { %1035 = vmatpush.msrb.mxu0 %v680_v23  ;;  %1055 = vmatpush.msrb.mxu1 %v808_v24  ;;  %v817_v22 = vld [vmem:[#allocation5 + $0xfb0] sm:$0xff]  ;;  %v690_v23 = vld [vmem:[#allocation5 + $0xbb8] sm:$0xff] }
  0xb8   : > { %996 = vmatpush.msra.mxu2 %v671_v25  ;;  %1016 = vmatpush.msra.mxu3 %v799_v26  ;;  %v818_v24 = vld [vmem:[#allocation5 + $0xfb8] sm:$0xff]  ;;  %v681_v25 = vld [vmem:[#allocation5 + $0xb70] sm:$0xff] }
  0xb9   : > { %1036 = vmatpush.msrb.mxu0 %v672_v27  ;;  %1056 = vmatpush.msrb.mxu1 %v800_v28  ;;  %v809_v26 = vld [vmem:[#allocation5 + $0xf70] sm:$0xff]  ;;  %v682_v27 = vld [vmem:[#allocation5 + $0xb78] sm:$0xff] }
  0xba   : > { %929 = vmatmul.f32.vlgmr.msrb.gmra.mxu2 %v3185_v11  ;;  %949 = vmatmul.f32.vlgmr.msrb.gmra.mxu3 %v3188_v12  ;;  %v810_v28 = vld [vmem:[#allocation5 + $0xf78] sm:$0xff] }
  0xbb   : > { %969 = vmatmul.f32.vlgmr.msra.gmra.mxu0 %v3185_v11  ;;  %989 = vmatmul.f32.vlgmr.msra.gmra.mxu1 %v3188_v12 }
  0xbc   : > { %997 = vmatpush.msra.mxu2 %v663_v29  ;;  %1017 = vmatpush.msra.mxu3 %v791_v30  ;;  %v673_v29 = vld [vmem:[#allocation5 + $0xb30] sm:$0xff] }
  0xbd   : > { %1037 = vmatpush.msrb.mxu0 %v664_v31  ;;  %1057 = vmatpush.msrb.mxu1 %v792_v32  ;;  %v801_v30 = vld [vmem:[#allocation5 + $0xf30] sm:$0xff]  ;;  %v674_v31 = vld [vmem:[#allocation5 + $0xb38] sm:$0xff] }
  0xbe   : > { %998 = vmatpush.msra.mxu2 %v655_v33  ;;  %1018 = vmatpush.msra.mxu3 %v783_v34  ;;  %v802_v32 = vld [vmem:[#allocation5 + $0xf38] sm:$0xff]  ;;  %v665_v33 = vld [vmem:[#allocation5 + $0xaf0] sm:$0xff] }
  0xbf   : > { %1038 = vmatpush.msrb.mxu0 %v656_v35  ;;  %1058 = vmatpush.msrb.mxu1 %v784_v36  ;;  %v793_v34 = vld [vmem:[#allocation5 + $0xef0] sm:$0xff]  ;;  %v666_v35 = vld [vmem:[#allocation5 + $0xaf8] sm:$0xff] }
  0xc0   : > { %999 = vmatpush.msra.mxu2 %v647_v37  ;;  %1019 = vmatpush.msra.mxu3 %v775_v38  ;;  %v794_v36 = vld [vmem:[#allocation5 + $0xef8] sm:$0xff]  ;;  %v657_v37 = vld [vmem:[#allocation5 + $0xab0] sm:$0xff] }
  0xc1   : > { %1039 = vmatpush.msrb.mxu0 %v648_v39  ;;  %1059 = vmatpush.msrb.mxu1 %v776_v40  ;;  %v785_v38 = vld [vmem:[#allocation5 + $0xeb0] sm:$0xff]  ;;  %v658_v39 = vld [vmem:[#allocation5 + $0xab8] sm:$0xff] }
  0xc2   : > { %1000 = vmatpush.msra.mxu2 %v639_v41  ;;  %1020 = vmatpush.msra.mxu3 %v767_v42  ;;  %v786_v40 = vld [vmem:[#allocation5 + $0xeb8] sm:$0xff]  ;;  %v649_v41 = vld [vmem:[#allocation5 + $0xa70] sm:$0xff] }
  0xc3   : > { %1040 = vmatpush.msrb.mxu0 %v640_v43  ;;  %1060 = vmatpush.msrb.mxu1 %v768_v44  ;;  %v777_v42 = vld [vmem:[#allocation5 + $0xe70] sm:$0xff]  ;;  %v650_v43 = vld [vmem:[#allocation5 + $0xa78] sm:$0xff] }
  0xc4   : > { %1001 = vmatpush.msra.mxu2 %v631_v45  ;;  %1021 = vmatpush.msra.mxu3 %v759_v46  ;;  %v778_v44 = vld [vmem:[#allocation5 + $0xe78] sm:$0xff]  ;;  %v641_v45 = vld [vmem:[#allocation5 + $0xa30] sm:$0xff] }
  0xc5   : > { %1041 = vmatpush.msrb.mxu0 %v632_v47  ;;  %1061 = vmatpush.msrb.mxu1 %v760_v48  ;;  %v769_v46 = vld [vmem:[#allocation5 + $0xe30] sm:$0xff]  ;;  %v642_v47 = vld [vmem:[#allocation5 + $0xa38] sm:$0xff] }
  0xc6   : > { %1002 = vmatpush.msra.mxu2 %v623_v49  ;;  %1022 = vmatpush.msra.mxu3 %v751_v50  ;;  %v770_v48 = vld [vmem:[#allocation5 + $0xe38] sm:$0xff]  ;;  %v633_v49 = vld [vmem:[#allocation5 + $0x9f0] sm:$0xff] }
  0xc7   : > { %1042 = vmatpush.msrb.mxu0 %v624_v51  ;;  %1062 = vmatpush.msrb.mxu1 %v752_v52  ;;  %v761_v50 = vld [vmem:[#allocation5 + $0xdf0] sm:$0xff]  ;;  %v634_v51 = vld [vmem:[#allocation5 + $0x9f8] sm:$0xff] }
  0xc8   : > { %1003 = vmatpush.msra.mxu2 %v615_v53  ;;  %1023 = vmatpush.msra.mxu3 %v743_v54  ;;  %v762_v52 = vld [vmem:[#allocation5 + $0xdf8] sm:$0xff]  ;;  %v625_v53 = vld [vmem:[#allocation5 + $0x9b0] sm:$0xff] }
  0xc9   : > { %1043 = vmatpush.msrb.mxu0 %v616_v55  ;;  %1063 = vmatpush.msrb.mxu1 %v744_v56  ;;  %v753_v54 = vld [vmem:[#allocation5 + $0xdb0] sm:$0xff]  ;;  %v626_v55 = vld [vmem:[#allocation5 + $0x9b8] sm:$0xff] }
  0xca   : > { %1004 = vmatpush.msra.mxu2 %v607_v57  ;;  %1024 = vmatpush.msra.mxu3 %v735_v58  ;;  %v754_v56 = vld [vmem:[#allocation5 + $0xdb8] sm:$0xff]  ;;  %v617_v57 = vld [vmem:[#allocation5 + $0x970] sm:$0xff] }
  0xcb   : > { %1044 = vmatpush.msrb.mxu0 %v608_v59  ;;  %1064 = vmatpush.msrb.mxu1 %v736_v60  ;;  %v745_v58 = vld [vmem:[#allocation5 + $0xd70] sm:$0xff]  ;;  %v618_v59 = vld [vmem:[#allocation5 + $0x978] sm:$0xff] }
  0xcc   : > { %1005 = vmatpush.msra.mxu2 %v599_v61  ;;  %1025 = vmatpush.msra.mxu3 %v727_v62  ;;  %v746_v60 = vld [vmem:[#allocation5 + $0xd78] sm:$0xff]  ;;  %v609_v61 = vld [vmem:[#allocation5 + $0x930] sm:$0xff] }
  0xcd   : > { %1045 = vmatpush.msrb.mxu0 %v600_v63  ;;  %1065 = vmatpush.msrb.mxu1 %v728_v0  ;;  %v737_v62 = vld [vmem:[#allocation5 + $0xd30] sm:$0xff]  ;;  %v610_v63 = vld [vmem:[#allocation5 + $0x938] sm:$0xff] }
  0xce   : > { %1006 = vmatpush.msra.mxu2 %v591_v1  ;;  %1026 = vmatpush.msra.mxu3 %v719_v2  ;;  %v738_v0 = vld [vmem:[#allocation5 + $0xd38] sm:$0xff]  ;;  %v601_v1 = vld [vmem:[#allocation5 + $0x8f0] sm:$0xff] }
  0xcf   : > { %1046 = vmatpush.msrb.mxu0 %v592_v3  ;;  %1066 = vmatpush.msrb.mxu1 %v720_v4  ;;  %v729_v2 = vld [vmem:[#allocation5 + $0xcf0] sm:$0xff]  ;;  %v602_v3 = vld [vmem:[#allocation5 + $0x8f8] sm:$0xff] }
  0xd0   : > { %1007 = vmatpush.msra.mxu2 %v583_v5  ;;  %1027 = vmatpush.msra.mxu3 %v711_v6  ;;  %v730_v4 = vld [vmem:[#allocation5 + $0xcf8] sm:$0xff]  ;;  %v593_v5 = vld [vmem:[#allocation5 + $0x8b0] sm:$0xff] }
  0xd1   : > { %1047 = vmatpush.msrb.mxu0 %v584_v7  ;;  %1067 = vmatpush.msrb.mxu1 %v712_v8  ;;  %v721_v6 = vld [vmem:[#allocation5 + $0xcb0] sm:$0xff]  ;;  %v594_v7 = vld [vmem:[#allocation5 + $0x8b8] sm:$0xff] }
  0xd2   : > { %1008 = vmatpush.msra.mxu2 %v575_v13  ;;  %1028 = vmatpush.msra.mxu3 %v703_v14  ;;  %v722_v8 = vld [vmem:[#allocation5 + $0xcb8] sm:$0xff]  ;;  %v585_v13 = vld [vmem:[#allocation5 + $0x870] sm:$0xff] }
  0xd3   : > { %1048 = vmatpush.msrb.mxu0 %v576_v15  ;;  %1068 = vmatpush.msrb.mxu1 %v704_v16  ;;  %v713_v14 = vld [vmem:[#allocation5 + $0xc70] sm:$0xff]  ;;  %v586_v15 = vld [vmem:[#allocation5 + $0x878] sm:$0xff] }
  0xd4   : > { %1009 = vmatmul.f32.vlgmr.msra.gmra.mxu2 %v3185_v11  ;;  %1029 = vmatmul.f32.vlgmr.msra.gmra.mxu3 %v3188_v12  ;;  %v714_v16 = vld [vmem:[#allocation5 + $0xc78] sm:$0xff] }
  0xd5   : > { %1049 = vmatmul.f32.vlgmr.msrb.gmra.mxu0 %v3185_v11  ;;  %1069 = vmatmul.f32.vlgmr.msrb.gmra.mxu1 %v3188_v12 }
  0xd6   : > { %1073 = vmatpush.msrb.mxu2 %v697_v17  ;;  %1093 = vmatpush.msrb.mxu3 %v825_v18  ;;  %v577_v17 = vld [vmem:[#allocation5 + $0x830] sm:$0xff] }
  0xd7   : > { %1113 = vmatpush.msra.mxu0 %v698_v19  ;;  %1133 = vmatpush.msra.mxu1 %v826_v20  ;;  %v705_v18 = vld [vmem:[#allocation5 + $0xc30] sm:$0xff]  ;;  %v578_v19 = vld [vmem:[#allocation5 + $0x838] sm:$0xff] }
  0xd8   : > { %1074 = vmatpush.msrb.mxu2 %v689_v21  ;;  %1094 = vmatpush.msrb.mxu3 %v817_v22  ;;  %v706_v20 = vld [vmem:[#allocation5 + $0xc38] sm:$0xff]  ;;  %v434_v21 = vld [vmem:[#allocation5 + $0x3c0] sm:$0xff] }
  0xd9   : > { %1114 = vmatpush.msra.mxu0 %v690_v23  ;;  %1134 = vmatpush.msra.mxu1 %v818_v24  ;;  %v562_v22 = vld [vmem:[#allocation5 + $0x7c0] sm:$0xff]  ;;  %v435_v23 = vld [vmem:[#allocation5 + $0x3c8] sm:$0xff] }
  0xda   : > { %1075 = vmatpush.msrb.mxu2 %v681_v25  ;;  %1095 = vmatpush.msrb.mxu3 %v809_v26  ;;  %v563_v24 = vld [vmem:[#allocation5 + $0x7c8] sm:$0xff]  ;;  %v426_v25 = vld [vmem:[#allocation5 + $0x380] sm:$0xff] }
  0xdb   : > { %1115 = vmatpush.msra.mxu0 %v682_v27  ;;  %1135 = vmatpush.msra.mxu1 %v810_v28  ;;  %v554_v26 = vld [vmem:[#allocation5 + $0x780] sm:$0xff]  ;;  %v427_v27 = vld [vmem:[#allocation5 + $0x388] sm:$0xff] }
  0xdc   : > { %1076 = vmatpush.msrb.mxu2 %v673_v29  ;;  %1096 = vmatpush.msrb.mxu3 %v801_v30  ;;  %v555_v28 = vld [vmem:[#allocation5 + $0x788] sm:$0xff]  ;;  %v418_v29 = vld [vmem:[#allocation5 + $0x340] sm:$0xff] }
  0xdd   : > { %1116 = vmatpush.msra.mxu0 %v674_v31  ;;  %1136 = vmatpush.msra.mxu1 %v802_v32  ;;  %v546_v30 = vld [vmem:[#allocation5 + $0x740] sm:$0xff]  ;;  %v419_v31 = vld [vmem:[#allocation5 + $0x348] sm:$0xff] }
  0xde   : > { %1077 = vmatpush.msrb.mxu2 %v665_v33  ;;  %1097 = vmatpush.msrb.mxu3 %v793_v34  ;;  %v547_v32 = vld [vmem:[#allocation5 + $0x748] sm:$0xff]  ;;  %v410_v33 = vld [vmem:[#allocation5 + $0x300] sm:$0xff] }
  0xdf   : > { %1117 = vmatpush.msra.mxu0 %v666_v35  ;;  %1137 = vmatpush.msra.mxu1 %v794_v36  ;;  %v539_v34 = vld [vmem:[#allocation5 + $0x708] sm:$0xff]  ;;  %v402_v35 = vld [vmem:[#allocation5 + $0x2c0] sm:$0xff] }
  0xe0   : > { %1078 = vmatpush.msrb.mxu2 %v657_v37  ;;  %1098 = vmatpush.msrb.mxu3 %v785_v38  ;;  %v530_v36 = vld [vmem:[#allocation5 + $0x6c0] sm:$0xff]  ;;  %v403_v37 = vld [vmem:[#allocation5 + $0x2c8] sm:$0xff] }
  0xe1   : > { %1118 = vmatpush.msra.mxu0 %v658_v39  ;;  %1138 = vmatpush.msra.mxu1 %v786_v40  ;;  %v531_v38 = vld [vmem:[#allocation5 + $0x6c8] sm:$0xff]  ;;  %v394_v39 = vld [vmem:[#allocation5 + $0x280] sm:$0xff] }
  0xe2   : > { %1079 = vmatpush.msrb.mxu2 %v649_v41  ;;  %1099 = vmatpush.msrb.mxu3 %v777_v42  ;;  %v522_v40 = vld [vmem:[#allocation5 + $0x680] sm:$0xff]  ;;  %v395_v41 = vld [vmem:[#allocation5 + $0x288] sm:$0xff] }
  0xe3   : > { %1119 = vmatpush.msra.mxu0 %v650_v43  ;;  %1139 = vmatpush.msra.mxu1 %v778_v44  ;;  %v523_v42 = vld [vmem:[#allocation5 + $0x688] sm:$0xff]  ;;  %v386_v43 = vld [vmem:[#allocation5 + $0x240] sm:$0xff] }
  0xe4   : > { %1080 = vmatpush.msrb.mxu2 %v641_v45  ;;  %1100 = vmatpush.msrb.mxu3 %v769_v46  ;;  %v514_v44 = vld [vmem:[#allocation5 + $0x640] sm:$0xff]  ;;  %v387_v45 = vld [vmem:[#allocation5 + $0x248] sm:$0xff] }
  0xe5   : > { %1120 = vmatpush.msra.mxu0 %v642_v47  ;;  %1140 = vmatpush.msra.mxu1 %v770_v48  ;;  %v515_v46 = vld [vmem:[#allocation5 + $0x648] sm:$0xff]  ;;  %v378_v47 = vld [vmem:[#allocation5 + $0x200] sm:$0xff] }
  0xe6   : > { %1081 = vmatpush.msrb.mxu2 %v633_v49  ;;  %1101 = vmatpush.msrb.mxu3 %v761_v50  ;;  %v506_v48 = vld [vmem:[#allocation5 + $0x600] sm:$0xff]  ;;  %v379_v49 = vld [vmem:[#allocation5 + $0x208] sm:$0xff] }
  0xe7   : > { %1121 = vmatpush.msra.mxu0 %v634_v51  ;;  %1141 = vmatpush.msra.mxu1 %v762_v52  ;;  %v507_v50 = vld [vmem:[#allocation5 + $0x608] sm:$0xff]  ;;  %v370_v51 = vld [vmem:[#allocation5 + $0x1c0] sm:$0xff] }
  0xe8   : > { %1082 = vmatpush.msrb.mxu2 %v625_v53  ;;  %1102 = vmatpush.msrb.mxu3 %v753_v54  ;;  %v498_v52 = vld [vmem:[#allocation5 + $0x5c0] sm:$0xff]  ;;  %v371_v53 = vld [vmem:[#allocation5 + $0x1c8] sm:$0xff] }
  0xe9   : > { %1122 = vmatpush.msra.mxu0 %v626_v55  ;;  %1142 = vmatpush.msra.mxu1 %v754_v56  ;;  %v499_v54 = vld [vmem:[#allocation5 + $0x5c8] sm:$0xff]  ;;  %v362_v55 = vld [vmem:[#allocation5 + $0x180] sm:$0xff] }
  0xea   : > { %1083 = vmatpush.msrb.mxu2 %v617_v57  ;;  %1103 = vmatpush.msrb.mxu3 %v745_v58  ;;  %v490_v56 = vld [vmem:[#allocation5 + $0x580] sm:$0xff]  ;;  %v363_v57 = vld [vmem:[#allocation5 + $0x188] sm:$0xff] }
  0xeb   : > { %1123 = vmatpush.msra.mxu0 %v618_v59  ;;  %1143 = vmatpush.msra.mxu1 %v746_v60  ;;  %v491_v58 = vld [vmem:[#allocation5 + $0x588] sm:$0xff]  ;;  %v354_v59 = vld [vmem:[#allocation5 + $0x140] sm:$0xff] }
  0xec   : > { %1084 = vmatpush.msrb.mxu2 %v609_v61  ;;  %1104 = vmatpush.msrb.mxu3 %v737_v62  ;;  %v482_v60 = vld [vmem:[#allocation5 + $0x540] sm:$0xff]  ;;  %v355_v61 = vld [vmem:[#allocation5 + $0x148] sm:$0xff] }
  0xed   : > { %1124 = vmatpush.msra.mxu0 %v610_v63  ;;  %1144 = vmatpush.msra.mxu1 %v738_v0  ;;  %v483_v62 = vld [vmem:[#allocation5 + $0x548] sm:$0xff]  ;;  %v346_v63 = vld [vmem:[#allocation5 + $0x100] sm:$0xff] }
  0xee   : > { %1085 = vmatpush.msrb.mxu2 %v601_v1  ;;  %1105 = vmatpush.msrb.mxu3 %v729_v2  ;;  %v474_v0 = vld [vmem:[#allocation5 + $0x500] sm:$0xff]  ;;  %v347_v1 = vld [vmem:[#allocation5 + $0x108] sm:$0xff] }
  0xef   : > { %1125 = vmatpush.msra.mxu0 %v602_v3  ;;  %1145 = vmatpush.msra.mxu1 %v730_v4  ;;  %v475_v2 = vld [vmem:[#allocation5 + $0x508] sm:$0xff]  ;;  %v338_v3 = vld [vmem:[#allocation5 + $0xc0] sm:$0xff] }
  0xf0   : > { %1086 = vmatpush.msrb.mxu2 %v593_v5  ;;  %1106 = vmatpush.msrb.mxu3 %v721_v6  ;;  %v466_v4 = vld [vmem:[#allocation5 + $0x4c0] sm:$0xff]  ;;  %v339_v5 = vld [vmem:[#allocation5 + $0xc8] sm:$0xff] }
  0xf1   : > { %1126 = vmatpush.msra.mxu0 %v594_v7  ;;  %1146 = vmatpush.msra.mxu1 %v722_v8  ;;  %v467_v6 = vld [vmem:[#allocation5 + $0x4c8] sm:$0xff]  ;;  %v330_v7 = vld [vmem:[#allocation5 + $0x80] sm:$0xff] }
  0xf2   : > { %1087 = vmatpush.msrb.mxu2 %v585_v13  ;;  %1107 = vmatpush.msrb.mxu3 %v713_v14  ;;  %v458_v8 = vld [vmem:[#allocation5 + $0x480] sm:$0xff]  ;;  %v331_v13 = vld [vmem:[#allocation5 + $0x88] sm:$0xff] }
  0xf3   : > { %1127 = vmatpush.msra.mxu0 %v586_v15  ;;  %1147 = vmatpush.msra.mxu1 %v714_v16  ;;  %v459_v14 = vld [vmem:[#allocation5 + $0x488] sm:$0xff]  ;;  %v322_v15 = vld [vmem:[#allocation5 + $0x40] sm:$0xff] }
  0xf4   : > { %1088 = vmatpush.msrb.mxu2 %v577_v17  ;;  %1108 = vmatpush.msrb.mxu3 %v705_v18  ;;  %v450_v16 = vld [vmem:[#allocation5 + $0x440] sm:$0xff]  ;;  %v323_v17 = vld [vmem:[#allocation5 + $0x48] sm:$0xff] }
  0xf5   : > { %1128 = vmatpush.msra.mxu0 %v578_v19  ;;  %1148 = vmatpush.msra.mxu1 %v706_v20  ;;  %v451_v18 = vld [vmem:[#allocation5 + $0x448] sm:$0xff]  ;;  %v314_v19 = vld [vmem:[#allocation5] sm:$0xff] }
  0xf6   : > { %1089 = vmatmul.f32.vlgmr.msrb.gmra.mxu2 %v3185_v11  ;;  %1109 = vmatmul.f32.vlgmr.msrb.gmra.mxu3 %v3188_v12  ;;  %v442_v20 = vld [vmem:[#allocation5 + $0x400] sm:$0xff] }
  0xf7   : > { %1129 = vmatmul.f32.vlgmr.msra.gmra.mxu0 %v3185_v11  ;;  %1149 = vmatmul.f32.vlgmr.msra.gmra.mxu1 %v3188_v12  ;;  %v538_v11 = vld [vmem:[#allocation5 + $0x700] sm:$0xff]  ;;  %v411_v12 = vld [vmem:[#allocation5 + $0x308] sm:$0xff] }
  0xf8   : > { %1153 = vmatpush.msra.mxu2 %v434_v21  ;;  %1173 = vmatpush.msra.mxu3 %v562_v22  ;;  %v315_v21 = vld [vmem:[#allocation5 + $0x8] sm:$0xff] }
  0xf9   : > { %1193 = vmatpush.msrb.mxu0 %v435_v23  ;;  %1213 = vmatpush.msrb.mxu1 %v563_v24  ;;  %v443_v22 = vld [vmem:[#allocation5 + $0x408] sm:$0xff]  ;;  %v436_v23 = vld [vmem:[#allocation5 + $0x3d0] sm:$0xff] }
  0xfa   : > { %1154 = vmatpush.msra.mxu2 %v426_v25  ;;  %1174 = vmatpush.msra.mxu3 %v554_v26  ;;  %v564_v24 = vld [vmem:[#allocation5 + $0x7d0] sm:$0xff]  ;;  %v437_v25 = vld [vmem:[#allocation5 + $0x3d8] sm:$0xff] }
  0xfb   : > { %1194 = vmatpush.msrb.mxu0 %v427_v27  ;;  %1214 = vmatpush.msrb.mxu1 %v555_v28  ;;  %v565_v26 = vld [vmem:[#allocation5 + $0x7d8] sm:$0xff]  ;;  %v428_v27 = vld [vmem:[#allocation5 + $0x390] sm:$0xff] }
  0xfc   : > { %1155 = vmatpush.msra.mxu2 %v418_v29  ;;  %1175 = vmatpush.msra.mxu3 %v546_v30  ;;  %v556_v28 = vld [vmem:[#allocation5 + $0x790] sm:$0xff]  ;;  %v429_v29 = vld [vmem:[#allocation5 + $0x398] sm:$0xff] }
  0xfd   : > { %1195 = vmatpush.msrb.mxu0 %v419_v31  ;;  %1215 = vmatpush.msrb.mxu1 %v547_v32  ;;  %v557_v30 = vld [vmem:[#allocation5 + $0x798] sm:$0xff]  ;;  %v420_v31 = vld [vmem:[#allocation5 + $0x350] sm:$0xff] }
  0xfe   : > { %1156 = vmatpush.msra.mxu2 %v410_v33  ;;  %1176 = vmatpush.msra.mxu3 %v538_v11  ;;  %v548_v32 = vld [vmem:[#allocation5 + $0x750] sm:$0xff]  ;;  %v421_v33 = vld [vmem:[#allocation5 + $0x358] sm:$0xff] }
  0xff   : > { %1196 = vmatpush.msrb.mxu0 %v411_v12  ;;  %1216 = vmatpush.msrb.mxu1 %v539_v34  ;;  %v549_v11 = vld [vmem:[#allocation5 + $0x758] sm:$0xff]  ;;  %v412_v12 = vld [vmem:[#allocation5 + $0x310] sm:$0xff] }
 0x100   : > { %1157 = vmatpush.msra.mxu2 %v402_v35  ;;  %1177 = vmatpush.msra.mxu3 %v530_v36  ;;  %v540_v34 = vld [vmem:[#allocation5 + $0x710] sm:$0xff]  ;;  %v413_v35 = vld [vmem:[#allocation5 + $0x318] sm:$0xff] }
 0x101   : > { %1197 = vmatpush.msrb.mxu0 %v403_v37  ;;  %1217 = vmatpush.msrb.mxu1 %v531_v38  ;;  %v541_v36 = vld [vmem:[#allocation5 + $0x718] sm:$0xff]  ;;  %v404_v37 = vld [vmem:[#allocation5 + $0x2d0] sm:$0xff] }
 0x102   : > { %1158 = vmatpush.msra.mxu2 %v394_v39  ;;  %1178 = vmatpush.msra.mxu3 %v522_v40  ;;  %v532_v38 = vld [vmem:[#allocation5 + $0x6d0] sm:$0xff]  ;;  %v405_v39 = vld [vmem:[#allocation5 + $0x2d8] sm:$0xff] }
 0x103   : > { %1198 = vmatpush.msrb.mxu0 %v395_v41  ;;  %1218 = vmatpush.msrb.mxu1 %v523_v42  ;;  %v533_v40 = vld [vmem:[#allocation5 + $0x6d8] sm:$0xff]  ;;  %v396_v41 = vld [vmem:[#allocation5 + $0x290] sm:$0xff] }
 0x104   : > { %1159 = vmatpush.msra.mxu2 %v386_v43  ;;  %1179 = vmatpush.msra.mxu3 %v514_v44  ;;  %v524_v42 = vld [vmem:[#allocation5 + $0x690] sm:$0xff]  ;;  %v397_v43 = vld [vmem:[#allocation5 + $0x298] sm:$0xff] }
 0x105   : > { %1199 = vmatpush.msrb.mxu0 %v387_v45  ;;  %1219 = vmatpush.msrb.mxu1 %v515_v46  ;;  %v525_v44 = vld [vmem:[#allocation5 + $0x698] sm:$0xff]  ;;  %v388_v45 = vld [vmem:[#allocation5 + $0x250] sm:$0xff] }
 0x106   : > { %1160 = vmatpush.msra.mxu2 %v378_v47  ;;  %1180 = vmatpush.msra.mxu3 %v506_v48  ;;  %v516_v46 = vld [vmem:[#allocation5 + $0x650] sm:$0xff]  ;;  %v389_v47 = vld [vmem:[#allocation5 + $0x258] sm:$0xff] }
 0x107   : > { %1200 = vmatpush.msrb.mxu0 %v379_v49  ;;  %1220 = vmatpush.msrb.mxu1 %v507_v50  ;;  %v517_v48 = vld [vmem:[#allocation5 + $0x658] sm:$0xff]  ;;  %v380_v49 = vld [vmem:[#allocation5 + $0x210] sm:$0xff] }
 0x108   : > { %1161 = vmatpush.msra.mxu2 %v370_v51  ;;  %1181 = vmatpush.msra.mxu3 %v498_v52  ;;  %v508_v50 = vld [vmem:[#allocation5 + $0x610] sm:$0xff]  ;;  %v381_v51 = vld [vmem:[#allocation5 + $0x218] sm:$0xff] }
 0x109   : > { %1201 = vmatpush.msrb.mxu0 %v371_v53  ;;  %1221 = vmatpush.msrb.mxu1 %v499_v54  ;;  %v509_v52 = vld [vmem:[#allocation5 + $0x618] sm:$0xff]  ;;  %v372_v53 = vld [vmem:[#allocation5 + $0x1d0] sm:$0xff] }
 0x10a   : > { %1162 = vmatpush.msra.mxu2 %v362_v55  ;;  %1182 = vmatpush.msra.mxu3 %v490_v56  ;;  %v500_v54 = vld [vmem:[#allocation5 + $0x5d0] sm:$0xff]  ;;  %v373_v55 = vld [vmem:[#allocation5 + $0x1d8] sm:$0xff] }
 0x10b   : > { %1202 = vmatpush.msrb.mxu0 %v363_v57  ;;  %1222 = vmatpush.msrb.mxu1 %v491_v58  ;;  %v501_v56 = vld [vmem:[#allocation5 + $0x5d8] sm:$0xff]  ;;  %v364_v57 = vld [vmem:[#allocation5 + $0x190] sm:$0xff] }
 0x10c   : > { %1163 = vmatpush.msra.mxu2 %v354_v59  ;;  %1183 = vmatpush.msra.mxu3 %v482_v60  ;;  %v492_v58 = vld [vmem:[#allocation5 + $0x590] sm:$0xff]  ;;  %v365_v59 = vld [vmem:[#allocation5 + $0x198] sm:$0xff] }
 0x10d   : > { %1203 = vmatpush.msrb.mxu0 %v355_v61  ;;  %1223 = vmatpush.msrb.mxu1 %v483_v62  ;;  %v493_v60 = vld [vmem:[#allocation5 + $0x598] sm:$0xff]  ;;  %v356_v61 = vld [vmem:[#allocation5 + $0x150] sm:$0xff] }
 0x10e   : > { %1164 = vmatpush.msra.mxu2 %v346_v63  ;;  %1184 = vmatpush.msra.mxu3 %v474_v0  ;;  %v484_v62 = vld [vmem:[#allocation5 + $0x550] sm:$0xff]  ;;  %v357_v63 = vld [vmem:[#allocation5 + $0x158] sm:$0xff] }
 0x10f   : > { %1204 = vmatpush.msrb.mxu0 %v347_v1  ;;  %1224 = vmatpush.msrb.mxu1 %v475_v2  ;;  %v485_v0 = vld [vmem:[#allocation5 + $0x558] sm:$0xff]  ;;  %v348_v1 = vld [vmem:[#allocation5 + $0x110] sm:$0xff] }
 0x110   : > { %1165 = vmatpush.msra.mxu2 %v338_v3  ;;  %1185 = vmatpush.msra.mxu3 %v466_v4  ;;  %v476_v2 = vld [vmem:[#allocation5 + $0x510] sm:$0xff]  ;;  %v349_v3 = vld [vmem:[#allocation5 + $0x118] sm:$0xff] }
 0x111   : > { %1205 = vmatpush.msrb.mxu0 %v339_v5  ;;  %1225 = vmatpush.msrb.mxu1 %v467_v6  ;;  %v477_v4 = vld [vmem:[#allocation5 + $0x518] sm:$0xff] }
 0x112   : > { %1166 = vmatpush.msra.mxu2 %v330_v7  ;;  %1186 = vmatpush.msra.mxu3 %v458_v8  ;;  %v340_v7 = vld [vmem:[#allocation5 + $0xd0] sm:$0xff] }
 0x113   : > { %1206 = vmatpush.msrb.mxu0 %v331_v13  ;;  %1226 = vmatpush.msrb.mxu1 %v459_v14  ;;  %v468_v8 = vld [vmem:[#allocation5 + $0x4d0] sm:$0xff]  ;;  %v341_v14 = vld [vmem:[#allocation5 + $0xd8] sm:$0xff] }
 0x114   : > { %1167 = vmatpush.msra.mxu2 %v322_v15  ;;  %1187 = vmatpush.msra.mxu3 %v450_v16  ;;  %v469_v15 = vld [vmem:[#allocation5 + $0x4d8] sm:$0xff]  ;;  %v332_v16 = vld [vmem:[#allocation5 + $0x90] sm:$0xff] }
 0x115   : > { %1207 = vmatpush.msrb.mxu0 %v323_v17  ;;  %1227 = vmatpush.msrb.mxu1 %v451_v18  ;;  %v460_v17 = vld [vmem:[#allocation5 + $0x490] sm:$0xff]  ;;  %v333_v18 = vld [vmem:[#allocation5 + $0x98] sm:$0xff] }
 0x116   : > { %1168 = vmatpush.msra.mxu2 %v314_v19  ;;  %1188 = vmatpush.msra.mxu3 %v442_v20  ;;  %v461_v19 = vld [vmem:[#allocation5 + $0x498] sm:$0xff]  ;;  %v324_v20 = vld [vmem:[#allocation5 + $0x50] sm:$0xff] }
 0x117   : > { %1208 = vmatpush.msrb.mxu0 %v315_v21  ;;  %1228 = vmatpush.msrb.mxu1 %v443_v22  ;;  %v452_v21 = vld [vmem:[#allocation5 + $0x450] sm:$0xff] }
 0x118   : > { %1169 = vmatmul.f32.vlgmr.msra.gmra.mxu2 %v3180_v9  ;;  %1189 = vmatmul.f32.vlgmr.msra.gmra.mxu3 %v3182_v10 }
 0x119   : > { %1209 = vmatmul.f32.vlgmr.msrb.gmra.mxu0 %v3180_v9  ;;  %1229 = vmatmul.f32.vlgmr.msrb.gmra.mxu1 %v3182_v10 }
 0x11a   : > { %1233 = vmatpush.msrb.mxu2 %v436_v23  ;;  %1253 = vmatpush.msrb.mxu3 %v564_v24  ;;  %v325_v24 = vld [vmem:[#allocation5 + $0x58] sm:$0xff] }
 0x11b   : > { %1273 = vmatpush.msra.mxu0 %v437_v25  ;;  %1293 = vmatpush.msra.mxu1 %v565_v26  ;;  %v453_v25 = vld [vmem:[#allocation5 + $0x458] sm:$0xff] }
 0x11c   : > { %1234 = vmatpush.msrb.mxu2 %v428_v27  ;;  %1254 = vmatpush.msrb.mxu3 %v556_v28  ;;  %v316_v27 = vld [vmem:[#allocation5 + $0x10] sm:$0xff] }
 0x11d   : > { %1274 = vmatpush.msra.mxu0 %v429_v29  ;;  %1294 = vmatpush.msra.mxu1 %v557_v30  ;;  %v444_v28 = vld [vmem:[#allocation5 + $0x410] sm:$0xff]  ;;  %v317_v29 = vld [vmem:[#allocation5 + $0x18] sm:$0xff] }
 0x11e   : > { %1235 = vmatpush.msrb.mxu2 %v420_v31  ;;  %1255 = vmatpush.msrb.mxu3 %v548_v32  ;;  %v445_v30 = vld [vmem:[#allocation5 + $0x418] sm:$0xff] }
 0x11f   : > { %1275 = vmatpush.msra.mxu0 %v421_v33  ;;  %1295 = vmatpush.msra.mxu1 %v549_v11  ;;  %v438_v33 = vld [vmem:[#allocation5 + $0x3e0] sm:$0xff] }
 0x120   : > { %1236 = vmatpush.msrb.mxu2 %v412_v12  ;;  %1256 = vmatpush.msrb.mxu3 %v540_v34  ;;  %v566_v11 = vld [vmem:[#allocation5 + $0x7e0] sm:$0xff]  ;;  %v439_v34 = vld [vmem:[#allocation5 + $0x3e8] sm:$0xff] }
 0x121   : > { %1276 = vmatpush.msra.mxu0 %v413_v35  ;;  %1296 = vmatpush.msra.mxu1 %v541_v36  ;;  %v567_v35 = vld [vmem:[#allocation5 + $0x7e8] sm:$0xff]  ;;  %v430_v36 = vld [vmem:[#allocation5 + $0x3a0] sm:$0xff] }
 0x122   : > { %1237 = vmatpush.msrb.mxu2 %v404_v37  ;;  %1257 = vmatpush.msrb.mxu3 %v532_v38  ;;  %v558_v37 = vld [vmem:[#allocation5 + $0x7a0] sm:$0xff]  ;;  %v431_v38 = vld [vmem:[#allocation5 + $0x3a8] sm:$0xff] }
 0x123   : > { %1277 = vmatpush.msra.mxu0 %v405_v39  ;;  %1297 = vmatpush.msra.mxu1 %v533_v40  ;;  %v559_v39 = vld [vmem:[#allocation5 + $0x7a8] sm:$0xff]  ;;  %v422_v40 = vld [vmem:[#allocation5 + $0x360] sm:$0xff] }
 0x124   : > { %1238 = vmatpush.msrb.mxu2 %v396_v41  ;;  %1258 = vmatpush.msrb.mxu3 %v524_v42  ;;  %v550_v41 = vld [vmem:[#allocation5 + $0x760] sm:$0xff] }
 0x125   : > { %1278 = vmatpush.msra.mxu0 %v397_v43  ;;  %1298 = vmatpush.msra.mxu1 %v525_v44  ;;  %v423_v44 = vld [vmem:[#allocation5 + $0x368] sm:$0xff] }
 0x126   : > { %1239 = vmatpush.msrb.mxu2 %v388_v45  ;;  %1259 = vmatpush.msrb.mxu3 %v516_v46  ;;  %v551_v45 = vld [vmem:[#allocation5 + $0x768] sm:$0xff] }
 0x127   : > { %1279 = vmatpush.msra.mxu0 %v389_v47  ;;  %1299 = vmatpush.msra.mxu1 %v517_v48  ;;  %v414_v47 = vld [vmem:[#allocation5 + $0x320] sm:$0xff] }
 0x128   : > { %1240 = vmatpush.msrb.mxu2 %v380_v49  ;;  %1260 = vmatpush.msrb.mxu3 %v508_v50  ;;  %v542_v48 = vld [vmem:[#allocation5 + $0x720] sm:$0xff]  ;;  %v415_v49 = vld [vmem:[#allocation5 + $0x328] sm:$0xff] }
 0x129   : > { %1280 = vmatpush.msra.mxu0 %v381_v51  ;;  %1300 = vmatpush.msra.mxu1 %v509_v52  ;;  %v543_v50 = vld [vmem:[#allocation5 + $0x728] sm:$0xff]  ;;  %v406_v51 = vld [vmem:[#allocation5 + $0x2e0] sm:$0xff] }
 0x12a   : > { %1241 = vmatpush.msrb.mxu2 %v372_v53  ;;  %1261 = vmatpush.msrb.mxu3 %v500_v54  ;;  %v534_v52 = vld [vmem:[#allocation5 + $0x6e0] sm:$0xff]  ;;  %v407_v53 = vld [vmem:[#allocation5 + $0x2e8] sm:$0xff] }
 0x12b   : > { %1281 = vmatpush.msra.mxu0 %v373_v55  ;;  %1301 = vmatpush.msra.mxu1 %v501_v56  ;;  %v535_v54 = vld [vmem:[#allocation5 + $0x6e8] sm:$0xff]  ;;  %v398_v55 = vld [vmem:[#allocation5 + $0x2a0] sm:$0xff] }
 0x12c   : > { %1242 = vmatpush.msrb.mxu2 %v364_v57  ;;  %1262 = vmatpush.msrb.mxu3 %v492_v58  ;;  %v526_v56 = vld [vmem:[#allocation5 + $0x6a0] sm:$0xff]  ;;  %v399_v57 = vld [vmem:[#allocation5 + $0x2a8] sm:$0xff] }
 0x12d   : > { %1282 = vmatpush.msra.mxu0 %v365_v59  ;;  %1302 = vmatpush.msra.mxu1 %v493_v60  ;;  %v890_v5 = vpop.f32.mrf.mxu0  ;;  %v527_v58 = vld [vmem:[#allocation5 + $0x6a8] sm:$0xff]  ;;  %v390_v59 = vld [vmem:[#allocation5 + $0x260] sm:$0xff] }
 0x12e   : > { %1243 = vmatpush.msrb.mxu2 %v356_v61  ;;  %1263 = vmatpush.msrb.mxu3 %v484_v62  ;;  %v910_v6 = vpop.f32.mrf.mxu1  ;;  %v518_v60 = vld [vmem:[#allocation5 + $0x660] sm:$0xff]  ;;  %v391_v61 = vld [vmem:[#allocation5 + $0x268] sm:$0xff] }
 0x12f   : > { %1283 = vmatpush.msra.mxu0 %v357_v63  ;;  %1303 = vmatpush.msra.mxu1 %v485_v0  ;;  %v3210_v13 = vadd.f32 %v910_v6, %v890_v5  ;;  %v519_v62 = vld [vmem:[#allocation5 + $0x668] sm:$0xff]  ;;  %v382_v63 = vld [vmem:[#allocation5 + $0x220] sm:$0xff] }
 0x130   : > { %1244 = vmatpush.msrb.mxu2 %v348_v1  ;;  %1264 = vmatpush.msrb.mxu3 %v476_v2  ;;  %v510_v0 = vld [vmem:[#allocation5 + $0x620] sm:$0xff]  ;;  %v383_v1 = vld [vmem:[#allocation5 + $0x228] sm:$0xff] }
 0x131   : > { %1284 = vmatpush.msra.mxu0 %v349_v3  ;;  %1304 = vmatpush.msra.mxu1 %v477_v4  ;;  %v511_v2 = vld [vmem:[#allocation5 + $0x628] sm:$0xff]  ;;  %v374_v3 = vld [vmem:[#allocation5 + $0x1e0] sm:$0xff] }
 0x132   : > { %1245 = vmatpush.msrb.mxu2 %v340_v7  ;;  %1265 = vmatpush.msrb.mxu3 %v468_v8  ;;  %v502_v4 = vld [vmem:[#allocation5 + $0x5e0] sm:$0xff]  ;;  %v375_v5 = vld [vmem:[#allocation5 + $0x1e8] sm:$0xff] }
 0x133   : > { %1285 = vmatpush.msra.mxu0 %v341_v14  ;;  %1305 = vmatpush.msra.mxu1 %v469_v15  ;;  %v850_v22 = vpop.f32.mrf.mxu2  ;;  %v503_v6 = vld [vmem:[#allocation5 + $0x5e8] sm:$0xff]  ;;  %v366_v7 = vld [vmem:[#allocation5 + $0x1a0] sm:$0xff] }
 0x134   : > { %v870_v23 = vpop.f32.mrf.mxu3  ;;  %1246 = vmatpush.msrb.mxu2 %v332_v16  ;;  %1266 = vmatpush.msrb.mxu3 %v460_v17  ;;  %v494_v8 = vld [vmem:[#allocation5 + $0x5a0] sm:$0xff]  ;;  %v367_v14 = vld [vmem:[#allocation5 + $0x1a8] sm:$0xff] }
 0x135   : > { %v3212_v26 = vadd.f32 %v870_v23, %v850_v22  ;;  %1286 = vmatpush.msra.mxu0 %v333_v18  ;;  %1306 = vmatpush.msra.mxu1 %v461_v19  ;;  %v495_v15 = vld [vmem:[#allocation5 + $0x5a8] sm:$0xff]  ;;  %v358_v16 = vld [vmem:[#allocation5 + $0x160] sm:$0xff] }
 0x136   : > { %1247 = vmatpush.msrb.mxu2 %v324_v20  ;;  %1267 = vmatpush.msrb.mxu3 %v452_v21  ;;  %v486_v17 = vld [vmem:[#allocation5 + $0x560] sm:$0xff]  ;;  %v359_v18 = vld [vmem:[#allocation5 + $0x168] sm:$0xff] }
 0x137   : > { %1287 = vmatpush.msra.mxu0 %v325_v24  ;;  %1307 = vmatpush.msra.mxu1 %v453_v25  ;;  %v487_v19 = vld [vmem:[#allocation5 + $0x568] sm:$0xff]  ;;  %v350_v20 = vld [vmem:[#allocation5 + $0x120] sm:$0xff] }
 0x138   : > { %1248 = vmatpush.msrb.mxu2 %v316_v27  ;;  %1268 = vmatpush.msrb.mxu3 %v444_v28  ;;  %v970_v31 = vpop.f32.mrf.mxu0  ;;  %v990_v32 = vpop.f32.mrf.mxu1  ;;  %v478_v21 = vld [vmem:[#allocation5 + $0x520] sm:$0xff]  ;;  %v351_v22 = vld [vmem:[#allocation5 + $0x128] sm:$0xff] }
 0x139   : > { %1288 = vmatpush.msra.mxu0 %v317_v29  ;;  %1308 = vmatpush.msra.mxu1 %v445_v30  ;;  %v3214_v12 = vadd.f32 %v990_v32, %v970_v31  ;;  %v479_v23 = vld [vmem:[#allocation5 + $0x528] sm:$0xff]  ;;  %v342_v24 = vld [vmem:[#allocation5 + $0xe0] sm:$0xff] }
 0x13a   : > { %1249 = vmatmul.f32.vlgmr.msrb.gmra.mxu2 %v3180_v9  ;;  %1269 = vmatmul.f32.vlgmr.msrb.gmra.mxu3 %v3182_v10  ;;  %v470_v25 = vld [vmem:[#allocation5 + $0x4e0] sm:$0xff]  ;;  %v343_v27 = vld [vmem:[#allocation5 + $0xe8] sm:$0xff] }
 0x13b   : > { %1289 = vmatmul.f32.vlgmr.msra.gmra.mxu0 %v3180_v9  ;;  %1309 = vmatmul.f32.vlgmr.msra.gmra.mxu1 %v3182_v10  ;;  %v471_v28 = vld [vmem:[#allocation5 + $0x4e8] sm:$0xff]  ;;  %v334_v31 = vld [vmem:[#allocation5 + $0xa0] sm:$0xff] }
 0x13c   : > { %1313 = vmatpush.msra.mxu2 %v438_v33  ;;  %1333 = vmatpush.msra.mxu3 %v566_v11  ;;  %v462_v32 = vld [vmem:[#allocation5 + $0x4a0] sm:$0xff]  ;;  %v335_v11 = vld [vmem:[#allocation5 + $0xa8] sm:$0xff] }
 0x13d   : > { %1353 = vmatpush.msrb.mxu0 %v439_v34  ;;  %1373 = vmatpush.msrb.mxu1 %v567_v35  ;;  %v930_v42 = vpop.f32.mrf.mxu2  ;;  %v950_v43 = vpop.f32.mrf.mxu3  ;;  %v463_v34 = vld [vmem:[#allocation5 + $0x4a8] sm:$0xff]  ;;  %v326_v35 = vld [vmem:[#allocation5 + $0x60] sm:$0xff] }
 0x13e   : > { %1314 = vmatpush.msra.mxu2 %v430_v36  ;;  %1334 = vmatpush.msra.mxu3 %v558_v37  ;;  %v3220_v46 = vadd.f32 %v950_v43, %v930_v42  ;;  %v454_v36 = vld [vmem:[#allocation5 + $0x460] sm:$0xff]  ;;  %v327_v37 = vld [vmem:[#allocation5 + $0x68] sm:$0xff] }
 0x13f   : > { %1354 = vmatpush.msrb.mxu0 %v431_v38  ;;  %1374 = vmatpush.msrb.mxu1 %v559_v39  ;;  %v455_v38 = vld [vmem:[#allocation5 + $0x468] sm:$0xff]  ;;  %v318_v39 = vld [vmem:[#allocation5 + $0x20] sm:$0xff] }
 0x140   : > { %1315 = vmatpush.msra.mxu2 %v422_v40  ;;  %1335 = vmatpush.msra.mxu3 %v550_v41  ;;  %v446_v40 = vld [vmem:[#allocation5 + $0x420] sm:$0xff]  ;;  %v319_v43 = vld [vmem:[#allocation5 + $0x28] sm:$0xff] }
 0x141   : > { %1355 = vmatpush.msrb.mxu0 %v423_v44  ;;  %1375 = vmatpush.msrb.mxu1 %v551_v45  ;;  %v447_v44 = vld [vmem:[#allocation5 + $0x428] sm:$0xff] }
 0x142   : > { %1316 = vmatpush.msra.mxu2 %v414_v47  ;;  %1336 = vmatpush.msra.mxu3 %v542_v48  ;;  %v440_v47 = vld [vmem:[#allocation5 + $0x3f0] sm:$0xff] }
 0x143   : > { %1356 = vmatpush.msrb.mxu0 %v415_v49  ;;  %1376 = vmatpush.msrb.mxu1 %v543_v50  ;;  %v568_v48 = vld [vmem:[#allocation5 + $0x7f0] sm:$0xff]  ;;  %v441_v49 = vld [vmem:[#allocation5 + $0x3f8] sm:$0xff] }
 0x144   : > { %1317 = vmatpush.msra.mxu2 %v406_v51  ;;  %1337 = vmatpush.msra.mxu3 %v534_v52  ;;  %v569_v50 = vld [vmem:[#allocation5 + $0x7f8] sm:$0xff]  ;;  %v432_v51 = vld [vmem:[#allocation5 + $0x3b0] sm:$0xff] }
 0x145   : > { %1357 = vmatpush.msrb.mxu0 %v407_v53  ;;  %1377 = vmatpush.msrb.mxu1 %v535_v54  ;;  %v560_v52 = vld [vmem:[#allocation5 + $0x7b0] sm:$0xff]  ;;  %v433_v53 = vld [vmem:[#allocation5 + $0x3b8] sm:$0xff] }
 0x146   : > { %1318 = vmatpush.msra.mxu2 %v398_v55  ;;  %1338 = vmatpush.msra.mxu3 %v526_v56  ;;  %v561_v54 = vld [vmem:[#allocation5 + $0x7b8] sm:$0xff]  ;;  %v424_v55 = vld [vmem:[#allocation5 + $0x370] sm:$0xff] }
 0x147   : > { %1358 = vmatpush.msrb.mxu0 %v399_v57  ;;  %1378 = vmatpush.msrb.mxu1 %v527_v58  ;;  %v552_v56 = vld [vmem:[#allocation5 + $0x770] sm:$0xff]  ;;  %v425_v57 = vld [vmem:[#allocation5 + $0x378] sm:$0xff] }
 0x148   : > { %1319 = vmatpush.msra.mxu2 %v390_v59  ;;  %1339 = vmatpush.msra.mxu3 %v518_v60  ;;  %v553_v58 = vld [vmem:[#allocation5 + $0x778] sm:$0xff]  ;;  %v416_v59 = vld [vmem:[#allocation5 + $0x330] sm:$0xff] }
 0x149   : > { %1359 = vmatpush.msrb.mxu0 %v391_v61  ;;  %1379 = vmatpush.msrb.mxu1 %v519_v62  ;;  %v544_v60 = vld [vmem:[#allocation5 + $0x730] sm:$0xff]  ;;  %v417_v61 = vld [vmem:[#allocation5 + $0x338] sm:$0xff] }
 0x14a   : > { %1320 = vmatpush.msra.mxu2 %v382_v63  ;;  %1340 = vmatpush.msra.mxu3 %v510_v0  ;;  %v545_v62 = vld [vmem:[#allocation5 + $0x738] sm:$0xff]  ;;  %v408_v63 = vld [vmem:[#allocation5 + $0x2f0] sm:$0xff] }
 0x14b   : > { %1360 = vmatpush.msrb.mxu0 %v383_v1  ;;  %1380 = vmatpush.msrb.mxu1 %v511_v2  ;;  %v536_v0 = vld [vmem:[#allocation5 + $0x6f0] sm:$0xff]  ;;  %v409_v1 = vld [vmem:[#allocation5 + $0x2f8] sm:$0xff] }
 0x14c   : > { %1321 = vmatpush.msra.mxu2 %v374_v3  ;;  %1341 = vmatpush.msra.mxu3 %v502_v4  ;;  %v537_v2 = vld [vmem:[#allocation5 + $0x6f8] sm:$0xff]  ;;  %v400_v3 = vld [vmem:[#allocation5 + $0x2b0] sm:$0xff] }
 0x14d   : > { %1361 = vmatpush.msrb.mxu0 %v375_v5  ;;  %1381 = vmatpush.msrb.mxu1 %v503_v6  ;;  %v528_v4 = vld [vmem:[#allocation5 + $0x6b0] sm:$0xff]  ;;  %v401_v5 = vld [vmem:[#allocation5 + $0x2b8] sm:$0xff] }
 0x14e   : > { %1322 = vmatpush.msra.mxu2 %v366_v7  ;;  %1342 = vmatpush.msra.mxu3 %v494_v8  ;;  %v529_v6 = vld [vmem:[#allocation5 + $0x6b8] sm:$0xff]  ;;  %v392_v7 = vld [vmem:[#allocation5 + $0x270] sm:$0xff] }
 0x14f   : > { %1362 = vmatpush.msrb.mxu0 %v367_v14  ;;  %1382 = vmatpush.msrb.mxu1 %v495_v15  ;;  %v520_v8 = vld [vmem:[#allocation5 + $0x670] sm:$0xff]  ;;  %v393_v14 = vld [vmem:[#allocation5 + $0x278] sm:$0xff] }
 0x150   : > { %1323 = vmatpush.msra.mxu2 %v358_v16  ;;  %1343 = vmatpush.msra.mxu3 %v486_v17  ;;  %v521_v15 = vld [vmem:[#allocation5 + $0x678] sm:$0xff]  ;;  %v384_v16 = vld [vmem:[#allocation5 + $0x230] sm:$0xff] }
 0x151   : > { %1363 = vmatpush.msrb.mxu0 %v359_v18  ;;  %1383 = vmatpush.msrb.mxu1 %v487_v19  ;;  %v512_v17 = vld [vmem:[#allocation5 + $0x630] sm:$0xff]  ;;  %v385_v18 = vld [vmem:[#allocation5 + $0x238] sm:$0xff] }
 0x152   : > { %1324 = vmatpush.msra.mxu2 %v350_v20  ;;  %1344 = vmatpush.msra.mxu3 %v478_v21  ;;  %v1050_v29 = vpop.f32.mrf.mxu0  ;;  %v1070_v30 = vpop.f32.mrf.mxu1  ;;  %v513_v19 = vld [vmem:[#allocation5 + $0x638] sm:$0xff]  ;;  %v376_v20 = vld [vmem:[#allocation5 + $0x1f0] sm:$0xff] }
 0x153   : > { %1364 = vmatpush.msrb.mxu0 %v351_v22  ;;  %1384 = vmatpush.msrb.mxu1 %v479_v23  ;;  %v3222_v33 = vadd.f32 %v1070_v30, %v1050_v29  ;;  %v504_v21 = vld [vmem:[#allocation5 + $0x5f0] sm:$0xff]  ;;  %v377_v22 = vld [vmem:[#allocation5 + $0x1f8] sm:$0xff] }
 0x154   : > { %1325 = vmatpush.msra.mxu2 %v342_v24  ;;  %1345 = vmatpush.msra.mxu3 %v470_v25  ;;  %v505_v23 = vld [vmem:[#allocation5 + $0x5f8] sm:$0xff]  ;;  %v368_v24 = vld [vmem:[#allocation5 + $0x1b0] sm:$0xff] }
 0x155   : > { %1365 = vmatpush.msrb.mxu0 %v343_v27  ;;  %1385 = vmatpush.msrb.mxu1 %v471_v28  ;;  %v496_v25 = vld [vmem:[#allocation5 + $0x5b0] sm:$0xff]  ;;  %v369_v27 = vld [vmem:[#allocation5 + $0x1b8] sm:$0xff] }
 0x156   : > { %1326 = vmatpush.msra.mxu2 %v334_v31  ;;  %1346 = vmatpush.msra.mxu3 %v462_v32  ;;  %v497_v28 = vld [vmem:[#allocation5 + $0x5b8] sm:$0xff]  ;;  %v360_v29 = vld [vmem:[#allocation5 + $0x170] sm:$0xff] }
 0x157   : > { %1366 = vmatpush.msrb.mxu0 %v335_v11  ;;  %1386 = vmatpush.msrb.mxu1 %v463_v34  ;;  %v1010_v41 = vpop.f32.mrf.mxu2  ;;  %v1030_v42 = vpop.f32.mrf.mxu3  ;;  %v488_v30 = vld [vmem:[#allocation5 + $0x570] sm:$0xff]  ;;  %v361_v31 = vld [vmem:[#allocation5 + $0x178] sm:$0xff] }
 0x158   : > { %1327 = vmatpush.msra.mxu2 %v326_v35  ;;  %1347 = vmatpush.msra.mxu3 %v454_v36  ;;  %v3224_v45 = vadd.f32 %v1030_v42, %v1010_v41  ;;  %v489_v32 = vld [vmem:[#allocation5 + $0x578] sm:$0xff]  ;;  %v352_v11 = vld [vmem:[#allocation5 + $0x130] sm:$0xff] }
 0x159   : > { %1367 = vmatpush.msrb.mxu0 %v327_v37  ;;  %1387 = vmatpush.msrb.mxu1 %v455_v38  ;;  %v480_v34 = vld [vmem:[#allocation5 + $0x530] sm:$0xff]  ;;  %v353_v35 = vld [vmem:[#allocation5 + $0x138] sm:$0xff] }
 0x15a   : > { %1328 = vmatpush.msra.mxu2 %v318_v39  ;;  %1348 = vmatpush.msra.mxu3 %v446_v40  ;;  %v481_v36 = vld [vmem:[#allocation5 + $0x538] sm:$0xff]  ;;  %v344_v37 = vld [vmem:[#allocation5 + $0xf0] sm:$0xff] }
 0x15b   : > { %1368 = vmatpush.msrb.mxu0 %v319_v43  ;;  %1388 = vmatpush.msrb.mxu1 %v447_v44  ;;  %v472_v38 = vld [vmem:[#allocation5 + $0x4f0] sm:$0xff]  ;;  %v345_v39 = vld [vmem:[#allocation5 + $0xf8] sm:$0xff] }
 0x15c   : > { %1329 = vmatmul.f32.vlgmr.msra.gmra.mxu2 %v3180_v9  ;;  %1349 = vmatmul.f32.vlgmr.msra.gmra.mxu3 %v3182_v10  ;;  %v473_v40 = vld [vmem:[#allocation5 + $0x4f8] sm:$0xff]  ;;  %v336_v43 = vld [vmem:[#allocation5 + $0xb0] sm:$0xff] }
 0x15d   : > { %1369 = vmatmul.f32.vlgmr.msrb.gmra.mxu0 %v3180_v9  ;;  %1389 = vmatmul.f32.vlgmr.msrb.gmra.mxu1 %v3182_v10  ;;  %v464_v44 = vld [vmem:[#allocation5 + $0x4b0] sm:$0xff] }
 0x15e   : > { %1393 = vmatpush.msrb.mxu2 %v440_v47  ;;  %1413 = vmatpush.msrb.mxu3 %v568_v48  ;;  %v337_v48 = vld [vmem:[#allocation5 + $0xb8] sm:$0xff] }
 0x15f   : > { %1433 = vmatpush.msra.mxu0 %v441_v49  ;;  %1453 = vmatpush.msra.mxu1 %v569_v50  ;;  %v465_v49 = vld [vmem:[#allocation5 + $0x4b8] sm:$0xff]  ;;  %v328_v50 = vld [vmem:[#allocation5 + $0x70] sm:$0xff] }
 0x160   : > { %1394 = vmatpush.msrb.mxu2 %v432_v51  ;;  %1414 = vmatpush.msrb.mxu3 %v560_v52  ;;  %v456_v51 = vld [vmem:[#allocation5 + $0x470] sm:$0xff]  ;;  %v329_v52 = vld [vmem:[#allocation5 + $0x78] sm:$0xff] }
 0x161   : > { %1434 = vmatpush.msra.mxu0 %v433_v53  ;;  %1454 = vmatpush.msra.mxu1 %v561_v54  ;;  %v457_v53 = vld [vmem:[#allocation5 + $0x478] sm:$0xff]  ;;  %v320_v54 = vld [vmem:[#allocation5 + $0x30] sm:$0xff] }
 0x162   : > { %1395 = vmatpush.msrb.mxu2 %v424_v55  ;;  %1415 = vmatpush.msrb.mxu3 %v552_v56  ;;  %v448_v55 = vld [vmem:[#allocation5 + $0x430] sm:$0xff] }
 0x163   : > { %1435 = vmatpush.msra.mxu0 %v425_v57  ;;  %1455 = vmatpush.msra.mxu1 %v553_v58  ;;  %v321_v58 = vld [vmem:[#allocation5 + $0x38] sm:$0xff] }
 0x164   : > { %1396 = vmatpush.msrb.mxu2 %v416_v59  ;;  %1416 = vmatpush.msrb.mxu3 %v544_v60  ;;  %v449_v59 = vld [vmem:[#allocation5 + $0x438] sm:$0xff] }
 0x165   : > { %1436 = vmatpush.msra.mxu0 %v417_v61  ;;  %1456 = vmatpush.msra.mxu1 %v545_v62  ;;  %v1594_v61 = vld [vmem:[#allocation5 + $0x13c0] sm:$0xff] }
 0x166   : > { %1397 = vmatpush.msrb.mxu2 %v408_v63  ;;  %1417 = vmatpush.msrb.mxu3 %v536_v0  ;;  %v1722_v62 = vld [vmem:[#allocation5 + $0x17c0] sm:$0xff]  ;;  %v1595_v63 = vld [vmem:[#allocation5 + $0x13c8] sm:$0xff] }
 0x167   : > { %1437 = vmatpush.msra.mxu0 %v409_v1  ;;  %1457 = vmatpush.msra.mxu1 %v537_v2  ;;  %v1723_v0 = vld [vmem:[#allocation5 + $0x17c8] sm:$0xff]  ;;  %v1586_v1 = vld [vmem:[#allocation5 + $0x1380] sm:$0xff] }
 0x168   : > { %1398 = vmatpush.msrb.mxu2 %v400_v3  ;;  %1418 = vmatpush.msrb.mxu3 %v528_v4  ;;  %v1714_v2 = vld [vmem:[#allocation5 + $0x1780] sm:$0xff]  ;;  %v1587_v3 = vld [vmem:[#allocation5 + $0x1388] sm:$0xff] }
 0x169   : > { %1438 = vmatpush.msra.mxu0 %v401_v5  ;;  %1458 = vmatpush.msra.mxu1 %v529_v6  ;;  %v1715_v4 = vld [vmem:[#allocation5 + $0x1788] sm:$0xff]  ;;  %v1578_v5 = vld [vmem:[#allocation5 + $0x1340] sm:$0xff] }
 0x16a   : > { %1399 = vmatpush.msrb.mxu2 %v392_v7  ;;  %1419 = vmatpush.msrb.mxu3 %v520_v8  ;;  %v1706_v6 = vld [vmem:[#allocation5 + $0x1740] sm:$0xff]  ;;  %v1579_v7 = vld [vmem:[#allocation5 + $0x1348] sm:$0xff] }
 0x16b   : > { %1439 = vmatpush.msra.mxu0 %v393_v14  ;;  %1459 = vmatpush.msra.mxu1 %v521_v15  ;;  %v1707_v8 = vld [vmem:[#allocation5 + $0x1748] sm:$0xff]  ;;  %v1570_v14 = vld [vmem:[#allocation5 + $0x1300] sm:$0xff] }
 0x16c   : > { %1400 = vmatpush.msrb.mxu2 %v384_v16  ;;  %1420 = vmatpush.msrb.mxu3 %v512_v17  ;;  %v1698_v15 = vld [vmem:[#allocation5 + $0x1700] sm:$0xff]  ;;  %v1571_v16 = vld [vmem:[#allocation5 + $0x1308] sm:$0xff] }
 0x16d   : > { %1440 = vmatpush.msra.mxu0 %v385_v18  ;;  %1460 = vmatpush.msra.mxu1 %v513_v19  ;;  %v1699_v17 = vld [vmem:[#allocation5 + $0x1708] sm:$0xff]  ;;  %v1562_v18 = vld [vmem:[#allocation5 + $0x12c0] sm:$0xff] }
 0x16e   : > { %1401 = vmatpush.msrb.mxu2 %v376_v20  ;;  %1421 = vmatpush.msrb.mxu3 %v504_v21  ;;  %v1690_v19 = vld [vmem:[#allocation5 + $0x16c0] sm:$0xff]  ;;  %v1563_v20 = vld [vmem:[#allocation5 + $0x12c8] sm:$0xff] }
 0x16f   : > { %1441 = vmatpush.msra.mxu0 %v377_v22  ;;  %1461 = vmatpush.msra.mxu1 %v505_v23  ;;  %v1691_v21 = vld [vmem:[#allocation5 + $0x16c8] sm:$0xff]  ;;  %v1554_v22 = vld [vmem:[#allocation5 + $0x1280] sm:$0xff] }
 0x170   : > { %1402 = vmatpush.msrb.mxu2 %v368_v24  ;;  %1422 = vmatpush.msrb.mxu3 %v496_v25  ;;  %v1682_v23 = vld [vmem:[#allocation5 + $0x1680] sm:$0xff]  ;;  %v1555_v24 = vld [vmem:[#allocation5 + $0x1288] sm:$0xff] }
 0x171   : > { %1442 = vmatpush.msra.mxu0 %v369_v27  ;;  %1462 = vmatpush.msra.mxu1 %v497_v28  ;;  %v1683_v25 = vld [vmem:[#allocation5 + $0x1688] sm:$0xff]  ;;  %v1546_v27 = vld [vmem:[#allocation5 + $0x1240] sm:$0xff] }
 0x172   : > { %1403 = vmatpush.msrb.mxu2 %v360_v29  ;;  %1423 = vmatpush.msrb.mxu3 %v488_v30  ;;  %v1674_v28 = vld [vmem:[#allocation5 + $0x1640] sm:$0xff]  ;;  %v1547_v29 = vld [vmem:[#allocation5 + $0x1248] sm:$0xff] }
 0x173   : > { %1443 = vmatpush.msra.mxu0 %v361_v31  ;;  %1463 = vmatpush.msra.mxu1 %v489_v32  ;;  %v1675_v30 = vld [vmem:[#allocation5 + $0x1648] sm:$0xff]  ;;  %v1538_v31 = vld [vmem:[#allocation5 + $0x1200] sm:$0xff] }
 0x174   : > { %1404 = vmatpush.msrb.mxu2 %v352_v11  ;;  %1424 = vmatpush.msrb.mxu3 %v480_v34  ;;  %v1130_v41 = vpop.f32.mrf.mxu0  ;;  %v1150_v42 = vpop.f32.mrf.mxu1  ;;  %v1666_v32 = vld [vmem:[#allocation5 + $0x1600] sm:$0xff]  ;;  %v1539_v11 = vld [vmem:[#allocation5 + $0x1208] sm:$0xff] }
 0x175   : > { %1444 = vmatpush.msra.mxu0 %v353_v35  ;;  %1464 = vmatpush.msra.mxu1 %v481_v36  ;;  %v3230_v47 = vadd.f32 %v1150_v42, %v1130_v41  ;;  %v1667_v34 = vld [vmem:[#allocation5 + $0x1608] sm:$0xff]  ;;  %v1530_v35 = vld [vmem:[#allocation5 + $0x11c0] sm:$0xff] }
 0x176   : > { %1405 = vmatpush.msrb.mxu2 %v344_v37  ;;  %1425 = vmatpush.msrb.mxu3 %v472_v38  ;;  %v1658_v36 = vld [vmem:[#allocation5 + $0x15c0] sm:$0xff]  ;;  %v1531_v37 = vld [vmem:[#allocation5 + $0x11c8] sm:$0xff] }
 0x177   : > { %1445 = vmatpush.msra.mxu0 %v345_v39  ;;  %1465 = vmatpush.msra.mxu1 %v473_v40  ;;  %v1659_v38 = vld [vmem:[#allocation5 + $0x15c8] sm:$0xff]  ;;  %v1522_v39 = vld [vmem:[#allocation5 + $0x1180] sm:$0xff] }
 0x178   : > { %1406 = vmatpush.msrb.mxu2 %v336_v43  ;;  %1426 = vmatpush.msrb.mxu3 %v464_v44  ;;  %v1650_v40 = vld [vmem:[#allocation5 + $0x1580] sm:$0xff]  ;;  %v1523_v41 = vld [vmem:[#allocation5 + $0x1188] sm:$0xff] }
 0x179   : > { %1446 = vmatpush.msra.mxu0 %v337_v48  ;;  %1466 = vmatpush.msra.mxu1 %v465_v49  ;;  %v1090_v56 = vpop.f32.mrf.mxu2  ;;  %v1110_v57 = vpop.f32.mrf.mxu3  ;;  %v1651_v42 = vld [vmem:[#allocation5 + $0x1588] sm:$0xff]  ;;  %v1514_v43 = vld [vmem:[#allocation5 + $0x1140] sm:$0xff] }
 0x17a   : > { %1407 = vmatpush.msrb.mxu2 %v328_v50  ;;  %1427 = vmatpush.msrb.mxu3 %v456_v51  ;;  %v3232_v60 = vadd.f32 %v1110_v57, %v1090_v56  ;;  %v1642_v44 = vld [vmem:[#allocation5 + $0x1540] sm:$0xff]  ;;  %v1515_v48 = vld [vmem:[#allocation5 + $0x1148] sm:$0xff] }
 0x17b   : > { %1447 = vmatpush.msra.mxu0 %v329_v52  ;;  %1467 = vmatpush.msra.mxu1 %v457_v53  ;;  %v1643_v49 = vld [vmem:[#allocation5 + $0x1548] sm:$0xff]  ;;  %v1506_v50 = vld [vmem:[#allocation5 + $0x1100] sm:$0xff] }
 0x17c   : > { %1408 = vmatpush.msrb.mxu2 %v320_v54  ;;  %1428 = vmatpush.msrb.mxu3 %v448_v55  ;;  %v1634_v51 = vld [vmem:[#allocation5 + $0x1500] sm:$0xff]  ;;  %v1507_v52 = vld [vmem:[#allocation5 + $0x1108] sm:$0xff] }
 0x17d   : > { %1448 = vmatpush.msra.mxu0 %v321_v58  ;;  %1468 = vmatpush.msra.mxu1 %v449_v59  ;;  %v1635_v53 = vld [vmem:[#allocation5 + $0x1508] sm:$0xff]  ;;  %v1498_v54 = vld [vmem:[#allocation5 + $0x10c0] sm:$0xff] }
 0x17e   : > { %1409 = vmatmul.f32.vlgmr.msrb.gmra.mxu2 %v3180_v9  ;;  %1429 = vmatmul.f32.vlgmr.msrb.gmra.mxu3 %v3182_v10  ;;  %v1626_v55 = vld [vmem:[#allocation5 + $0x14c0] sm:$0xff]  ;;  %v1499_v56 = vld [vmem:[#allocation5 + $0x10c8] sm:$0xff] }
 0x17f   : > { %1449 = vmatmul.f32.vlgmr.msra.gmra.mxu0 %v3180_v9  ;;  %1469 = vmatmul.f32.vlgmr.msra.gmra.mxu1 %v3182_v10  ;;  %v1627_v57 = vld [vmem:[#allocation5 + $0x14c8] sm:$0xff]  ;;  %v1490_v59 = vld [vmem:[#allocation5 + $0x1080] sm:$0xff] }
 0x180   : > { %1734 = vmatpush.msra.mxu2 %v1594_v61  ;;  %1754 = vmatpush.msra.mxu3 %v1722_v62  ;;  %v1618_v61 = vld [vmem:[#allocation5 + $0x1480] sm:$0xff] }
 0x181   : > { %1774 = vmatpush.msrb.mxu0 %v1595_v63  ;;  %1794 = vmatpush.msrb.mxu1 %v1723_v0  ;;  %v1491_v63 = vld [vmem:[#allocation5 + $0x1088] sm:$0xff] }
 0x182   : > { %1735 = vmatpush.msra.mxu2 %v1586_v1  ;;  %1755 = vmatpush.msra.mxu3 %v1714_v2  ;;  %v1619_v0 = vld [vmem:[#allocation5 + $0x1488] sm:$0xff]  ;;  %v1482_v2 = vld [vmem:[#allocation5 + $0x1040] sm:$0xff] }
 0x183   : > { %1775 = vmatpush.msrb.mxu0 %v1587_v3  ;;  %1795 = vmatpush.msrb.mxu1 %v1715_v4  ;;  %v1610_v3 = vld [vmem:[#allocation5 + $0x1440] sm:$0xff] }
 0x184   : > { %1736 = vmatpush.msra.mxu2 %v1578_v5  ;;  %1756 = vmatpush.msra.mxu3 %v1706_v6  ;;  %v1483_v5 = vld [vmem:[#allocation5 + $0x1048] sm:$0xff] }
 0x185   : > { %1776 = vmatpush.msrb.mxu0 %v1579_v7  ;;  %1796 = vmatpush.msrb.mxu1 %v1707_v8  ;;  %v1611_v6 = vld [vmem:[#allocation5 + $0x1448] sm:$0xff]  ;;  %v1474_v7 = vld [vmem:[#allocation5 + $0x1000] sm:$0xff] }
 0x186   : > { %1737 = vmatpush.msra.mxu2 %v1570_v14  ;;  %1757 = vmatpush.msra.mxu3 %v1698_v15  ;;  %v1602_v8 = vld [vmem:[#allocation5 + $0x1400] sm:$0xff]  ;;  %v1475_v14 = vld [vmem:[#allocation5 + $0x1008] sm:$0xff] }
 0x187   : > { %1777 = vmatpush.msrb.mxu0 %v1571_v16  ;;  %1797 = vmatpush.msrb.mxu1 %v1699_v17  ;;  %v1603_v15 = vld [vmem:[#allocation5 + $0x1408] sm:$0xff] }
 0x188   : > { %1738 = vmatpush.msra.mxu2 %v1562_v18  ;;  %1758 = vmatpush.msra.mxu3 %v1690_v19  ;;  %v3243_v18 = vrot.slane %v3180_v9, 4  ;;  %v3246_v19 = vrot.slane %v3182_v10, 4 }
 0x189   : > { %1778 = vmatpush.msrb.mxu0 %v1563_v20  ;;  %1798 = vmatpush.msrb.mxu1 %v1691_v21  ;;  %v1596_v21 = vld [vmem:[#allocation5 + $0x13d0] sm:$0xff] }
 0x18a   : > { %1739 = vmatpush.msra.mxu2 %v1554_v22  ;;  %1759 = vmatpush.msra.mxu3 %v1682_v23  ;;  %v1724_v22 = vld [vmem:[#allocation5 + $0x17d0] sm:$0xff]  ;;  %v1725_v23 = vld [vmem:[#allocation5 + $0x17d8] sm:$0xff] }
 0x18b   : > { %1779 = vmatpush.msrb.mxu0 %v1555_v24  ;;  %1799 = vmatpush.msrb.mxu1 %v1683_v25  ;;  %v1588_v24 = vld [vmem:[#allocation5 + $0x1390] sm:$0xff] }
 0x18c   : > { %1740 = vmatpush.msra.mxu2 %v1546_v27  ;;  %1760 = vmatpush.msra.mxu3 %v1674_v28  ;;  %v1716_v25 = vld [vmem:[#allocation5 + $0x1790] sm:$0xff]  ;;  %v1589_v27 = vld [vmem:[#allocation5 + $0x1398] sm:$0xff] }
 0x18d   : > { %1780 = vmatpush.msrb.mxu0 %v1547_v29  ;;  %1800 = vmatpush.msrb.mxu1 %v1675_v30  ;;  %v1717_v28 = vld [vmem:[#allocation5 + $0x1798] sm:$0xff]  ;;  %v1580_v29 = vld [vmem:[#allocation5 + $0x1350] sm:$0xff] }
 0x18e   : > { %1741 = vmatpush.msra.mxu2 %v1538_v31  ;;  %1761 = vmatpush.msra.mxu3 %v1666_v32  ;;  %v1708_v30 = vld [vmem:[#allocation5 + $0x1750] sm:$0xff]  ;;  %v1581_v31 = vld [vmem:[#allocation5 + $0x1358] sm:$0xff] }
 0x18f   : > { %1781 = vmatpush.msrb.mxu0 %v1539_v11  ;;  %1801 = vmatpush.msrb.mxu1 %v1667_v34  ;;  %v1709_v32 = vld [vmem:[#allocation5 + $0x1758] sm:$0xff]  ;;  %v1572_v11 = vld [vmem:[#allocation5 + $0x1310] sm:$0xff] }
 0x190   : > { %1742 = vmatpush.msra.mxu2 %v1530_v35  ;;  %1762 = vmatpush.msra.mxu3 %v1658_v36  ;;  %v1700_v34 = vld [vmem:[#allocation5 + $0x1710] sm:$0xff]  ;;  %v1573_v35 = vld [vmem:[#allocation5 + $0x1318] sm:$0xff] }
 0x191   : > { %1782 = vmatpush.msrb.mxu0 %v1531_v37  ;;  %1802 = vmatpush.msrb.mxu1 %v1659_v38  ;;  %v1701_v36 = vld [vmem:[#allocation5 + $0x1718] sm:$0xff]  ;;  %v1564_v37 = vld [vmem:[#allocation5 + $0x12d0] sm:$0xff] }
 0x192   : > { %1743 = vmatpush.msra.mxu2 %v1522_v39  ;;  %1763 = vmatpush.msra.mxu3 %v1650_v40  ;;  %v1692_v38 = vld [vmem:[#allocation5 + $0x16d0] sm:$0xff]  ;;  %v1565_v39 = vld [vmem:[#allocation5 + $0x12d8] sm:$0xff] }
 0x193   : > { %1783 = vmatpush.msrb.mxu0 %v1523_v41  ;;  %1803 = vmatpush.msrb.mxu1 %v1651_v42  ;;  %v1693_v40 = vld [vmem:[#allocation5 + $0x16d8] sm:$0xff]  ;;  %v1556_v41 = vld [vmem:[#allocation5 + $0x1290] sm:$0xff] }
 0x194   : > { %1744 = vmatpush.msra.mxu2 %v1514_v43  ;;  %1764 = vmatpush.msra.mxu3 %v1642_v44  ;;  %v1684_v42 = vld [vmem:[#allocation5 + $0x1690] sm:$0xff]  ;;  %v1557_v43 = vld [vmem:[#allocation5 + $0x1298] sm:$0xff] }
 0x195   : > { %1784 = vmatpush.msrb.mxu0 %v1515_v48  ;;  %1804 = vmatpush.msrb.mxu1 %v1643_v49  ;;  %v1685_v44 = vld [vmem:[#allocation5 + $0x1698] sm:$0xff]  ;;  %v1548_v48 = vld [vmem:[#allocation5 + $0x1250] sm:$0xff] }
 0x196   : > { %1745 = vmatpush.msra.mxu2 %v1506_v50  ;;  %1765 = vmatpush.msra.mxu3 %v1634_v51  ;;  %v1210_v58 = vpop.f32.mrf.mxu0  ;;  %v1230_v1 = vpop.f32.mrf.mxu1  ;;  %v1676_v49 = vld [vmem:[#allocation5 + $0x1650] sm:$0xff]  ;;  %v1549_v50 = vld [vmem:[#allocation5 + $0x1258] sm:$0xff] }
 0x197   : > { %1785 = vmatpush.msrb.mxu0 %v1507_v52  ;;  %1805 = vmatpush.msrb.mxu1 %v1635_v53  ;;  %v1211_v62 = vadd.f32 %v1210_v58, %v3210_v13  ;;  %v1677_v51 = vld [vmem:[#allocation5 + $0x1658] sm:$0xff]  ;;  %v1540_v52 = vld [vmem:[#allocation5 + $0x1210] sm:$0xff] }
 0x198   : > { %1746 = vmatpush.msra.mxu2 %v1498_v54  ;;  %1766 = vmatpush.msra.mxu3 %v1626_v55  ;;  %v1668_v53 = vld [vmem:[#allocation5 + $0x1610] sm:$0xff]  ;;  %v1541_v54 = vld [vmem:[#allocation5 + $0x1218] sm:$0xff] }
 0x199   : > { %1786 = vmatpush.msrb.mxu0 %v1499_v56  ;;  %1806 = vmatpush.msrb.mxu1 %v1627_v57  ;;  %v3239_v4 = vadd.f32 %v1230_v1, %v1211_v62  ;;  %v1669_v55 = vld [vmem:[#allocation5 + $0x1618] sm:$0xff]  ;;  %v1532_v56 = vld [vmem:[#allocation5 + $0x11d0] sm:$0xff] }
 0x19a   : > { %1747 = vmatpush.msra.mxu2 %v1490_v59  ;;  %1767 = vmatpush.msra.mxu3 %v1618_v61  ;;  %v1660_v57 = vld [vmem:[#allocation5 + $0x15d0] sm:$0xff]  ;;  %v1533_v58 = vld [vmem:[#allocation5 + $0x11d8] sm:$0xff] }
 0x19b   : > { %1787 = vmatpush.msrb.mxu0 %v1491_v63  ;;  %1807 = vmatpush.msrb.mxu1 %v1619_v0  ;;  %v1170_v13 = vpop.f32.mrf.mxu2  ;;  %v1190_v17 = vpop.f32.mrf.mxu3  ;;  %v1661_v59 = vld [vmem:[#allocation5 + $0x15d8] sm:$0xff]  ;;  %v1524_v61 = vld [vmem:[#allocation5 + $0x1190] sm:$0xff] }
 0x19c   : > { %1748 = vmatpush.msra.mxu2 %v1482_v2  ;;  %1768 = vmatpush.msra.mxu3 %v1610_v3  ;;  %v1171_v16 = vadd.f32 %v1170_v13, %v3212_v26  ;;  %v1597_v26 = vld [vmem:[#allocation5 + $0x13d8] sm:$0xff]  ;;  %v1652_v62 = vld [vmem:[#allocation5 + $0x1590] sm:$0xff] }
 0x19d   : > { %1788 = vmatpush.msrb.mxu0 %v1483_v5  ;;  %1808 = vmatpush.msrb.mxu1 %v1611_v6  ;;  %v1525_v63 = vld [vmem:[#allocation5 + $0x1198] sm:$0xff]  ;;  %v1516_v1 = vld [vmem:[#allocation5 + $0x1150] sm:$0xff] }
 0x19e   : > { %1749 = vmatpush.msra.mxu2 %v1474_v7  ;;  %1769 = vmatpush.msra.mxu3 %v1602_v8  ;;  %v3248_v20 = vadd.f32 %v1190_v17, %v1171_v16  ;;  %v1653_v0 = vld [vmem:[#allocation5 + $0x1598] sm:$0xff]  ;;  %v1644_v2 = vld [vmem:[#allocation5 + $0x1550] sm:$0xff] }
 0x19f   : > { %1789 = vmatpush.msrb.mxu0 %v1475_v14  ;;  %1809 = vmatpush.msrb.mxu1 %v1603_v15  ;;  %v1517_v3 = vld [vmem:[#allocation5 + $0x1158] sm:$0xff]  ;;  %v1508_v6 = vld [vmem:[#allocation5 + $0x1110] sm:$0xff] }
 0x1a0   : > { %1750 = vmatmul.f32.vlgmr.msra.gmra.mxu2 %v3243_v18  ;;  %1770 = vmatmul.f32.vlgmr.msra.gmra.mxu3 %v3246_v19  ;;  %v1645_v5 = vld [vmem:[#allocation5 + $0x1558] sm:$0xff]  ;;  %v1636_v7 = vld [vmem:[#allocation5 + $0x1510] sm:$0xff] }
 0x1a1   : > { %1790 = vmatmul.f32.vlgmr.msrb.gmra.mxu0 %v3243_v18  ;;  %1810 = vmatmul.f32.vlgmr.msrb.gmra.mxu1 %v3246_v19  ;;  %v1509_v8 = vld [vmem:[#allocation5 + $0x1118] sm:$0xff]  ;;  %v1500_v14 = vld [vmem:[#allocation5 + $0x10d0] sm:$0xff] }
 0x1a2   : > { %1814 = vmatpush.msrb.mxu2 %v1596_v21  ;;  %1834 = vmatpush.msrb.mxu3 %v1724_v22  ;;  %v1637_v13 = vld [vmem:[#allocation5 + $0x1518] sm:$0xff]  ;;  %v1628_v15 = vld [vmem:[#allocation5 + $0x14d0] sm:$0xff] }
 0x1a3   : > { %1854 = vmatpush.msra.mxu0 %v1597_v26  ;;  %1874 = vmatpush.msra.mxu1 %v1725_v23  ;;  %v1501_v16 = vld [vmem:[#allocation5 + $0x10d8] sm:$0xff]  ;;  %v1492_v21 = vld [vmem:[#allocation5 + $0x1090] sm:$0xff] }
 0x1a4   : > { %1815 = vmatpush.msrb.mxu2 %v1588_v24  ;;  %1835 = vmatpush.msrb.mxu3 %v1716_v25  ;;  %v1629_v17 = vld [vmem:[#allocation5 + $0x14d8] sm:$0xff]  ;;  %v1620_v22 = vld [vmem:[#allocation5 + $0x1490] sm:$0xff] }
 0x1a5   : > { %1855 = vmatpush.msra.mxu0 %v1589_v27  ;;  %1875 = vmatpush.msra.mxu1 %v1717_v28  ;;  %v1493_v26 = vld [vmem:[#allocation5 + $0x1098] sm:$0xff]  ;;  %v1484_v24 = vld [vmem:[#allocation5 + $0x1050] sm:$0xff] }
 0x1a6   : > { %1816 = vmatpush.msrb.mxu2 %v1580_v29  ;;  %1836 = vmatpush.msrb.mxu3 %v1708_v30  ;;  %v1621_v23 = vld [vmem:[#allocation5 + $0x1498] sm:$0xff]  ;;  %v1612_v25 = vld [vmem:[#allocation5 + $0x1450] sm:$0xff] }
 0x1a7   : > { %1856 = vmatpush.msra.mxu0 %v1581_v31  ;;  %1876 = vmatpush.msra.mxu1 %v1709_v32  ;;  %v1485_v27 = vld [vmem:[#allocation5 + $0x1058] sm:$0xff]  ;;  %v1476_v29 = vld [vmem:[#allocation5 + $0x1010] sm:$0xff] }
 0x1a8   : > { %1817 = vmatpush.msrb.mxu2 %v1572_v11  ;;  %1837 = vmatpush.msrb.mxu3 %v1700_v34  ;;  %v1613_v28 = vld [vmem:[#allocation5 + $0x1458] sm:$0xff]  ;;  %v1604_v30 = vld [vmem:[#allocation5 + $0x1410] sm:$0xff]  ;;  %v1598_v11 = vld [vmem:[#allocation5 + $0x13e0] sm:$0xff] }
 0x1a9   : > { %1857 = vmatpush.msra.mxu0 %v1573_v35  ;;  %1877 = vmatpush.msra.mxu1 %v1701_v36  ;;  %v1477_v31 = vld [vmem:[#allocation5 + $0x1018] sm:$0xff]  ;;  %v1726_v34 = vld [vmem:[#allocation5 + $0x17e0] sm:$0xff]  ;;  %v1599_v35 = vld [vmem:[#allocation5 + $0x13e8] sm:$0xff] }
 0x1aa   : > { %1818 = vmatpush.msrb.mxu2 %v1564_v37  ;;  %1838 = vmatpush.msrb.mxu3 %v1692_v38  ;;  %v1605_v32 = vld [vmem:[#allocation5 + $0x1418] sm:$0xff]  ;;  %v1727_v36 = vld [vmem:[#allocation5 + $0x17e8] sm:$0xff]  ;;  %v1590_v37 = vld [vmem:[#allocation5 + $0x13a0] sm:$0xff] }
 0x1ab   : > { %1858 = vmatpush.msra.mxu0 %v1565_v39  ;;  %1878 = vmatpush.msra.mxu1 %v1693_v40  ;;  %v1718_v38 = vld [vmem:[#allocation5 + $0x17a0] sm:$0xff]  ;;  %v1591_v39 = vld [vmem:[#allocation5 + $0x13a8] sm:$0xff] }
 0x1ac   : > { %1819 = vmatpush.msrb.mxu2 %v1556_v41  ;;  %1839 = vmatpush.msrb.mxu3 %v1684_v42  ;;  %v1719_v40 = vld [vmem:[#allocation5 + $0x17a8] sm:$0xff]  ;;  %v1582_v41 = vld [vmem:[#allocation5 + $0x1360] sm:$0xff] }
 0x1ad   : > { %1859 = vmatpush.msra.mxu0 %v1557_v43  ;;  %1879 = vmatpush.msra.mxu1 %v1685_v44  ;;  %v1710_v42 = vld [vmem:[#allocation5 + $0x1760] sm:$0xff]  ;;  %v1583_v43 = vld [vmem:[#allocation5 + $0x1368] sm:$0xff] }
 0x1ae   : > { %1820 = vmatpush.msrb.mxu2 %v1548_v48  ;;  %1840 = vmatpush.msrb.mxu3 %v1676_v49  ;;  %v1711_v44 = vld [vmem:[#allocation5 + $0x1768] sm:$0xff]  ;;  %v1574_v48 = vld [vmem:[#allocation5 + $0x1320] sm:$0xff] }
 0x1af   : > { %1860 = vmatpush.msra.mxu0 %v1549_v50  ;;  %1880 = vmatpush.msra.mxu1 %v1677_v51  ;;  %v1702_v49 = vld [vmem:[#allocation5 + $0x1720] sm:$0xff]  ;;  %v1575_v50 = vld [vmem:[#allocation5 + $0x1328] sm:$0xff] }
 0x1b0   : > { %1821 = vmatpush.msrb.mxu2 %v1540_v52  ;;  %1841 = vmatpush.msrb.mxu3 %v1668_v53  ;;  %v1703_v51 = vld [vmem:[#allocation5 + $0x1728] sm:$0xff]  ;;  %v1566_v52 = vld [vmem:[#allocation5 + $0x12e0] sm:$0xff] }
 0x1b1   : > { %1861 = vmatpush.msra.mxu0 %v1541_v54  ;;  %1881 = vmatpush.msra.mxu1 %v1669_v55  ;;  %v1694_v53 = vld [vmem:[#allocation5 + $0x16e0] sm:$0xff]  ;;  %v1567_v54 = vld [vmem:[#allocation5 + $0x12e8] sm:$0xff] }
 0x1b2   : > { %1822 = vmatpush.msrb.mxu2 %v1532_v56  ;;  %1842 = vmatpush.msrb.mxu3 %v1660_v57  ;;  %v1695_v55 = vld [vmem:[#allocation5 + $0x16e8] sm:$0xff]  ;;  %v1558_v56 = vld [vmem:[#allocation5 + $0x12a0] sm:$0xff] }
 0x1b3   : > { %1862 = vmatpush.msra.mxu0 %v1533_v58  ;;  %1882 = vmatpush.msra.mxu1 %v1661_v59  ;;  %v1686_v57 = vld [vmem:[#allocation5 + $0x16a0] sm:$0xff]  ;;  %v1559_v58 = vld [vmem:[#allocation5 + $0x12a8] sm:$0xff] }
 0x1b4   : > { %1823 = vmatpush.msrb.mxu2 %v1524_v61  ;;  %1843 = vmatpush.msrb.mxu3 %v1652_v62  ;;  %v1687_v59 = vld [vmem:[#allocation5 + $0x16a8] sm:$0xff]  ;;  %v1550_v61 = vld [vmem:[#allocation5 + $0x1260] sm:$0xff] }
 0x1b5   : > { %1863 = vmatpush.msra.mxu0 %v1525_v63  ;;  %1883 = vmatpush.msra.mxu1 %v1653_v0  ;;  %v1678_v62 = vld [vmem:[#allocation5 + $0x1660] sm:$0xff]  ;;  %v1551_v63 = vld [vmem:[#allocation5 + $0x1268] sm:$0xff] }
 0x1b6   : > { %1824 = vmatpush.msrb.mxu2 %v1516_v1  ;;  %1844 = vmatpush.msrb.mxu3 %v1644_v2  ;;  %v1679_v0 = vld [vmem:[#allocation5 + $0x1668] sm:$0xff]  ;;  %v1542_v1 = vld [vmem:[#allocation5 + $0x1220] sm:$0xff] }
 0x1b7   : > { %1864 = vmatpush.msra.mxu0 %v1517_v3  ;;  %1884 = vmatpush.msra.mxu1 %v1645_v5  ;;  %v1670_v2 = vld [vmem:[#allocation5 + $0x1620] sm:$0xff]  ;;  %v1543_v3 = vld [vmem:[#allocation5 + $0x1228] sm:$0xff] }
 0x1b8   : > { %1825 = vmatpush.msrb.mxu2 %v1508_v6  ;;  %1845 = vmatpush.msrb.mxu3 %v1636_v7  ;;  %v1671_v5 = vld [vmem:[#allocation5 + $0x1628] sm:$0xff]  ;;  %v1534_v6 = vld [vmem:[#allocation5 + $0x11e0] sm:$0xff] }
 0x1b9   : > { %1865 = vmatpush.msra.mxu0 %v1509_v8  ;;  %1885 = vmatpush.msra.mxu1 %v1637_v13  ;;  %v1662_v7 = vld [vmem:[#allocation5 + $0x15e0] sm:$0xff]  ;;  %v3258_v8 = vpop.f32.mrf.mxu0  ;;  %v1535_v13 = vld [vmem:[#allocation5 + $0x11e8] sm:$0xff] }
 0x1ba   : > { %1826 = vmatpush.msrb.mxu2 %v1500_v14  ;;  %1846 = vmatpush.msrb.mxu3 %v1628_v15  ;;  %v1663_v14 = vld [vmem:[#allocation5 + $0x15e8] sm:$0xff]  ;;  %v1526_v15 = vld [vmem:[#allocation5 + $0x11a0] sm:$0xff] }
 0x1bb   : > { %1866 = vmatpush.msra.mxu0 %v1501_v16  ;;  %1886 = vmatpush.msra.mxu1 %v1629_v17  ;;  %v1654_v16 = vld [vmem:[#allocation5 + $0x15a0] sm:$0xff]  ;;  %v3260_v17 = vpop.f32.mrf.mxu1 }
 0x1bc   : > { %1827 = vmatpush.msrb.mxu2 %v1492_v21  ;;  %1847 = vmatpush.msrb.mxu3 %v1620_v22  ;;  %v1527_v21 = vld [vmem:[#allocation5 + $0x11a8] sm:$0xff] }
 0x1bd   : > { %1867 = vmatpush.msra.mxu0 %v1493_v26  ;;  %1887 = vmatpush.msra.mxu1 %v1621_v23  ;;  %v1655_v22 = vld [vmem:[#allocation5 + $0x15a8] sm:$0xff]  ;;  %v1518_v26 = vld [vmem:[#allocation5 + $0x1160] sm:$0xff] }
 0x1be   : > { %1828 = vmatpush.msrb.mxu2 %v1484_v24  ;;  %1848 = vmatpush.msrb.mxu3 %v1612_v25  ;;  %v1646_v23 = vld [vmem:[#allocation5 + $0x1560] sm:$0xff]  ;;  %v1519_v24 = vld [vmem:[#allocation5 + $0x1168] sm:$0xff] }
 0x1bf   : > { %1868 = vmatpush.msra.mxu0 %v1485_v27  ;;  %1888 = vmatpush.msra.mxu1 %v1613_v28  ;;  %v1647_v25 = vld [vmem:[#allocation5 + $0x1568] sm:$0xff]  ;;  %v3262_v27 = vpop.f32.mrf.mxu2  ;;  %v1510_v28 = vld [vmem:[#allocation5 + $0x1120] sm:$0xff] }
 0x1c0   : > { %1829 = vmatpush.msrb.mxu2 %v1476_v29  ;;  %1849 = vmatpush.msrb.mxu3 %v1604_v30  ;;  %v1638_v29 = vld [vmem:[#allocation5 + $0x1520] sm:$0xff]  ;;  %v1511_v30 = vld [vmem:[#allocation5 + $0x1128] sm:$0xff] }
 0x1c1   : > { %1869 = vmatpush.msra.mxu0 %v1477_v31  ;;  %1889 = vmatpush.msra.mxu1 %v1605_v32  ;;  %v1639_v31 = vld [vmem:[#allocation5 + $0x1528] sm:$0xff]  ;;  %v3264_v32 = vpop.f32.mrf.mxu3 }
 0x1c2   : > { %1830 = vmatmul.f32.vlgmr.msrb.gmra.mxu2 %v3243_v18  ;;  %1850 = vmatmul.f32.vlgmr.msrb.gmra.mxu3 %v3246_v19 }
 0x1c3   : > { %1870 = vmatmul.f32.vlgmr.msra.gmra.mxu0 %v3243_v18  ;;  %1890 = vmatmul.f32.vlgmr.msra.gmra.mxu1 %v3246_v19 }
 0x1c4   : > { %1894 = vmatpush.msra.mxu2 %v1598_v11  ;;  %1914 = vmatpush.msra.mxu3 %v1726_v34  ;;  %v1502_v11 = vld [vmem:[#allocation5 + $0x10e0] sm:$0xff] }
 0x1c5   : > { %1934 = vmatpush.msrb.mxu0 %v1599_v35  ;;  %1954 = vmatpush.msrb.mxu1 %v1727_v36  ;;  %v1630_v34 = vld [vmem:[#allocation5 + $0x14e0] sm:$0xff]  ;;  %v1503_v35 = vld [vmem:[#allocation5 + $0x10e8] sm:$0xff] }
 0x1c6   : > { %1895 = vmatpush.msra.mxu2 %v1590_v37  ;;  %1915 = vmatpush.msra.mxu3 %v1718_v38  ;;  %v1631_v36 = vld [vmem:[#allocation5 + $0x14e8] sm:$0xff]  ;;  %v1494_v38 = vld [vmem:[#allocation5 + $0x10a0] sm:$0xff] }
 0x1c7   : > { %1935 = vmatpush.msrb.mxu0 %v1591_v39  ;;  %1955 = vmatpush.msrb.mxu1 %v1719_v40  ;;  %v1622_v39 = vld [vmem:[#allocation5 + $0x14a0] sm:$0xff] }
 0x1c8   : > { %1896 = vmatpush.msra.mxu2 %v1582_v41  ;;  %1916 = vmatpush.msra.mxu3 %v1710_v42  ;;  %v1495_v41 = vld [vmem:[#allocation5 + $0x10a8] sm:$0xff] }
 0x1c9   : > { %1936 = vmatpush.msrb.mxu0 %v1583_v43  ;;  %1956 = vmatpush.msrb.mxu1 %v1711_v44  ;;  %v1623_v42 = vld [vmem:[#allocation5 + $0x14a8] sm:$0xff]  ;;  %v1486_v44 = vld [vmem:[#allocation5 + $0x1060] sm:$0xff] }
 0x1ca   : > { %1897 = vmatpush.msra.mxu2 %v1574_v48  ;;  %1917 = vmatpush.msra.mxu3 %v1702_v49  ;;  %v1614_v48 = vld [vmem:[#allocation5 + $0x1460] sm:$0xff] }
 0x1cb   : > { %1937 = vmatpush.msrb.mxu0 %v1575_v50  ;;  %1957 = vmatpush.msrb.mxu1 %v1703_v51  ;;  %v1487_v50 = vld [vmem:[#allocation5 + $0x1068] sm:$0xff] }
 0x1cc   : > { %1898 = vmatpush.msra.mxu2 %v1566_v52  ;;  %1918 = vmatpush.msra.mxu3 %v1694_v53  ;;  %v1615_v51 = vld [vmem:[#allocation5 + $0x1468] sm:$0xff]  ;;  %v1478_v52 = vld [vmem:[#allocation5 + $0x1020] sm:$0xff] }
 0x1cd   : > { %1938 = vmatpush.msrb.mxu0 %v1567_v54  ;;  %1958 = vmatpush.msrb.mxu1 %v1695_v55  ;;  %v1606_v53 = vld [vmem:[#allocation5 + $0x1420] sm:$0xff]  ;;  %v1479_v54 = vld [vmem:[#allocation5 + $0x1028] sm:$0xff] }
 0x1ce   : > { %1899 = vmatpush.msra.mxu2 %v1558_v56  ;;  %1919 = vmatpush.msra.mxu3 %v1686_v57  ;;  %v1607_v55 = vld [vmem:[#allocation5 + $0x1428] sm:$0xff] }
 0x1cf   : > { %1939 = vmatpush.msrb.mxu0 %v1559_v58  ;;  %1959 = vmatpush.msrb.mxu1 %v1687_v59  ;;  %v1600_v59 = vld [vmem:[#allocation5 + $0x13f0] sm:$0xff] }
 0x1d0   : > { %1900 = vmatpush.msra.mxu2 %v1550_v61  ;;  %1920 = vmatpush.msra.mxu3 %v1678_v62  ;;  %v1728_v61 = vld [vmem:[#allocation5 + $0x17f0] sm:$0xff]  ;;  %v1601_v62 = vld [vmem:[#allocation5 + $0x13f8] sm:$0xff] }
 0x1d1   : > { %1940 = vmatpush.msrb.mxu0 %v1551_v63  ;;  %1960 = vmatpush.msrb.mxu1 %v1679_v0  ;;  %v1729_v63 = vld [vmem:[#allocation5 + $0x17f8] sm:$0xff]  ;;  %v1720_v0 = vld [vmem:[#allocation5 + $0x17b0] sm:$0xff] }
 0x1d2   : > { %1901 = vmatpush.msra.mxu2 %v1542_v1  ;;  %1921 = vmatpush.msra.mxu3 %v1670_v2  ;;  %v1593_v1 = vld [vmem:[#allocation5 + $0x13b8] sm:$0xff] }
 0x1d3   : > { %1941 = vmatpush.msrb.mxu0 %v1543_v3  ;;  %1961 = vmatpush.msrb.mxu1 %v1671_v5  ;;  %v1721_v2 = vld [vmem:[#allocation5 + $0x17b8] sm:$0xff]  ;;  %v1584_v3 = vld [vmem:[#allocation5 + $0x1370] sm:$0xff] }
 0x1d4   : > { %1902 = vmatpush.msra.mxu2 %v1534_v6  ;;  %1922 = vmatpush.msra.mxu3 %v1662_v7  ;;  %v1712_v5 = vld [vmem:[#allocation5 + $0x1770] sm:$0xff]  ;;  %v1585_v6 = vld [vmem:[#allocation5 + $0x1378] sm:$0xff] }
 0x1d5   : > { %1942 = vmatpush.msrb.mxu0 %v1535_v13  ;;  %1962 = vmatpush.msrb.mxu1 %v1663_v14  ;;  %v1713_v7 = vld [vmem:[#allocation5 + $0x1778] sm:$0xff]  ;;  %v1576_v13 = vld [vmem:[#allocation5 + $0x1330] sm:$0xff] }
 0x1d6   : > { %1903 = vmatpush.msra.mxu2 %v1526_v15  ;;  %1923 = vmatpush.msra.mxu3 %v1654_v16  ;;  %v1704_v14 = vld [vmem:[#allocation5 + $0x1730] sm:$0xff]  ;;  %v1577_v15 = vld [vmem:[#allocation5 + $0x1338] sm:$0xff] }
 0x1d7   : > { %1943 = vmatpush.msrb.mxu0 %v1527_v21  ;;  %1963 = vmatpush.msrb.mxu1 %v1655_v22  ;;  %v1705_v16 = vld [vmem:[#allocation5 + $0x1738] sm:$0xff]  ;;  %v1568_v21 = vld [vmem:[#allocation5 + $0x12f0] sm:$0xff] }
 0x1d8   : > { %1904 = vmatpush.msra.mxu2 %v1518_v26  ;;  %1924 = vmatpush.msra.mxu3 %v1646_v23  ;;  %v1696_v22 = vld [vmem:[#allocation5 + $0x16f0] sm:$0xff]  ;;  %v1569_v26 = vld [vmem:[#allocation5 + $0x12f8] sm:$0xff] }
 0x1d9   : > { %1944 = vmatpush.msrb.mxu0 %v1519_v24  ;;  %1964 = vmatpush.msrb.mxu1 %v1647_v25  ;;  %v1697_v23 = vld [vmem:[#allocation5 + $0x16f8] sm:$0xff]  ;;  %v1560_v24 = vld [vmem:[#allocation5 + $0x12b0] sm:$0xff] }
 0x1da   : > { %1905 = vmatpush.msra.mxu2 %v1510_v28  ;;  %1925 = vmatpush.msra.mxu3 %v1638_v29  ;;  %v1370_v37 = vpop.f32.mrf.mxu0  ;;  %v1390_v43 = vpop.f32.mrf.mxu1  ;;  %v1688_v25 = vld [vmem:[#allocation5 + $0x16b0] sm:$0xff]  ;;  %v1561_v28 = vld [vmem:[#allocation5 + $0x12b8] sm:$0xff] }
 0x1db   : > { %1945 = vmatpush.msrb.mxu0 %v1511_v30  ;;  %1965 = vmatpush.msrb.mxu1 %v1639_v31  ;;  %v1371_v40 = vadd.f32 %v1370_v37, %v3222_v33  ;;  %v1689_v29 = vld [vmem:[#allocation5 + $0x16b8] sm:$0xff]  ;;  %v1552_v30 = vld [vmem:[#allocation5 + $0x1270] sm:$0xff] }
 0x1dc   : > { %1906 = vmatpush.msra.mxu2 %v1502_v11  ;;  %1926 = vmatpush.msra.mxu3 %v1630_v34  ;;  %v1680_v31 = vld [vmem:[#allocation5 + $0x1670] sm:$0xff]  ;;  %v1553_v11 = vld [vmem:[#allocation5 + $0x1278] sm:$0xff] }
 0x1dd   : > { %1946 = vmatpush.msrb.mxu0 %v1503_v35  ;;  %1966 = vmatpush.msrb.mxu1 %v1631_v36  ;;  %v3267_v49 = vadd.f32 %v1390_v43, %v1371_v40  ;;  %v1681_v34 = vld [vmem:[#allocation5 + $0x1678] sm:$0xff]  ;;  %v1544_v35 = vld [vmem:[#allocation5 + $0x1230] sm:$0xff] }
 0x1de   : > { %1907 = vmatpush.msra.mxu2 %v1494_v38  ;;  %1927 = vmatpush.msra.mxu3 %v1622_v39  ;;  %v1672_v36 = vld [vmem:[#allocation5 + $0x1630] sm:$0xff]  ;;  %v1545_v37 = vld [vmem:[#allocation5 + $0x1238] sm:$0xff] }
 0x1df   : > { %1947 = vmatpush.msrb.mxu0 %v1495_v41  ;;  %1967 = vmatpush.msrb.mxu1 %v1623_v42  ;;  %v1330_v33 = vpop.f32.mrf.mxu2  ;;  %v1350_v57 = vpop.f32.mrf.mxu3  ;;  %v1673_v38 = vld [vmem:[#allocation5 + $0x1638] sm:$0xff]  ;;  %v1536_v39 = vld [vmem:[#allocation5 + $0x11f0] sm:$0xff] }
 0x1e0   : > { %1908 = vmatpush.msra.mxu2 %v1486_v44  ;;  %1928 = vmatpush.msra.mxu3 %v1614_v48  ;;  %v1331_v56 = vadd.f32 %v1330_v33, %v3224_v45  ;;  %v1592_v45 = vld [vmem:[#allocation5 + $0x13b0] sm:$0xff]  ;;  %v1537_v41 = vld [vmem:[#allocation5 + $0x11f8] sm:$0xff] }
 0x1e1   : > { %1948 = vmatpush.msrb.mxu0 %v1487_v50  ;;  %1968 = vmatpush.msrb.mxu1 %v1615_v51  ;;  %v1664_v40 = vld [vmem:[#allocation5 + $0x15f0] sm:$0xff]  ;;  %v1665_v42 = vld [vmem:[#allocation5 + $0x15f8] sm:$0xff] }
 0x1e2   : > { %1909 = vmatpush.msra.mxu2 %v1478_v52  ;;  %1929 = vmatpush.msra.mxu3 %v1606_v53  ;;  %v3270_v58 = vadd.f32 %v1350_v57, %v1331_v56  ;;  %v1528_v43 = vld [vmem:[#allocation5 + $0x11b0] sm:$0xff]  ;;  %v1529_v48 = vld [vmem:[#allocation5 + $0x11b8] sm:$0xff] }
 0x1e3   : > { %1949 = vmatpush.msrb.mxu0 %v1479_v54  ;;  %1969 = vmatpush.msrb.mxu1 %v1607_v55  ;;  %v1656_v44 = vld [vmem:[#allocation5 + $0x15b0] sm:$0xff]  ;;  %v1657_v50 = vld [vmem:[#allocation5 + $0x15b8] sm:$0xff] }
 0x1e4   : > { %1910 = vmatmul.f32.vlgmr.msra.gmra.mxu2 %v3243_v18  ;;  %1930 = vmatmul.f32.vlgmr.msra.gmra.mxu3 %v3246_v19  ;;  %v1520_v51 = vld [vmem:[#allocation5 + $0x1170] sm:$0xff]  ;;  %v1521_v53 = vld [vmem:[#allocation5 + $0x1178] sm:$0xff] }
 0x1e5   : > { %1950 = vmatmul.f32.vlgmr.msrb.gmra.mxu0 %v3243_v18  ;;  %1970 = vmatmul.f32.vlgmr.msrb.gmra.mxu1 %v3246_v19  ;;  %v1648_v52 = vld [vmem:[#allocation5 + $0x1570] sm:$0xff]  ;;  %v1649_v33 = vld [vmem:[#allocation5 + $0x1578] sm:$0xff] }
 0x1e6   : > { %1974 = vmatpush.msrb.mxu2 %v1600_v59  ;;  %1994 = vmatpush.msrb.mxu3 %v1728_v61  ;;  %v1512_v54 = vld [vmem:[#allocation5 + $0x1130] sm:$0xff]  ;;  %v1513_v56 = vld [vmem:[#allocation5 + $0x1138] sm:$0xff] }
 0x1e7   : > { %2014 = vmatpush.msra.mxu0 %v1601_v62  ;;  %2034 = vmatpush.msra.mxu1 %v1729_v63  ;;  %v1640_v55 = vld [vmem:[#allocation5 + $0x1530] sm:$0xff]  ;;  %v1641_v57 = vld [vmem:[#allocation5 + $0x1538] sm:$0xff] }
 0x1e8   : > { %1975 = vmatpush.msrb.mxu2 %v1592_v45  ;;  %1995 = vmatpush.msrb.mxu3 %v1720_v0  ;;  %v1504_v59 = vld [vmem:[#allocation5 + $0x10f0] sm:$0xff]  ;;  %v1505_v62 = vld [vmem:[#allocation5 + $0x10f8] sm:$0xff] }
 0x1e9   : > { %2015 = vmatpush.msra.mxu0 %v1593_v1  ;;  %2035 = vmatpush.msra.mxu1 %v1721_v2  ;;  %v1632_v61 = vld [vmem:[#allocation5 + $0x14f0] sm:$0xff]  ;;  %v1633_v63 = vld [vmem:[#allocation5 + $0x14f8] sm:$0xff] }
 0x1ea   : > { %1976 = vmatpush.msrb.mxu2 %v1584_v3  ;;  %1996 = vmatpush.msrb.mxu3 %v1712_v5  ;;  %v1496_v0 = vld [vmem:[#allocation5 + $0x10b0] sm:$0xff]  ;;  %v1497_v3 = vld [vmem:[#allocation5 + $0x10b8] sm:$0xff] }
 0x1eb   : > { %2016 = vmatpush.msra.mxu0 %v1585_v6  ;;  %2036 = vmatpush.msra.mxu1 %v1713_v7  ;;  %v1624_v1 = vld [vmem:[#allocation5 + $0x14b0] sm:$0xff]  ;;  %v1625_v5 = vld [vmem:[#allocation5 + $0x14b8] sm:$0xff] }
 0x1ec   : > { %1977 = vmatpush.msrb.mxu2 %v1576_v13  ;;  %1997 = vmatpush.msrb.mxu3 %v1704_v14  ;;  %v1488_v7 = vld [vmem:[#allocation5 + $0x1070] sm:$0xff] }
 0x1ed   : > { %2017 = vmatpush.msra.mxu0 %v1577_v15  ;;  %2037 = vmatpush.msra.mxu1 %v1705_v16  ;;  %v1616_v13 = vld [vmem:[#allocation5 + $0x1470] sm:$0xff]  ;;  %v1489_v15 = vld [vmem:[#allocation5 + $0x1078] sm:$0xff] }
 0x1ee   : > { %1978 = vmatpush.msrb.mxu2 %v1568_v21  ;;  %1998 = vmatpush.msrb.mxu3 %v1696_v22  ;;  %v1617_v16 = vld [vmem:[#allocation5 + $0x1478] sm:$0xff]  ;;  %v1480_v21 = vld [vmem:[#allocation5 + $0x1030] sm:$0xff] }
 0x1ef   : > { %2018 = vmatpush.msra.mxu0 %v1569_v26  ;;  %2038 = vmatpush.msra.mxu1 %v1697_v23  ;;  %v1608_v22 = vld [vmem:[#allocation5 + $0x1430] sm:$0xff]  ;;  %v1481_v26 = vld [vmem:[#allocation5 + $0x1038] sm:$0xff] }
 0x1f0   : > { %1979 = vmatpush.msrb.mxu2 %v1560_v24  ;;  %1999 = vmatpush.msrb.mxu3 %v1688_v25  ;;  %v1609_v23 = vld [vmem:[#allocation5 + $0x1438] sm:$0xff] }
 0x1f1   : > { %2019 = vmatpush.msra.mxu0 %v1561_v28  ;;  %2039 = vmatpush.msra.mxu1 %v1689_v29  ;;  %v2183_v29 = vld [vmem:[#allocation5 + $0x1bc0] sm:$0xff] }
 0x1f2   : > { %1980 = vmatpush.msrb.mxu2 %v1552_v30  ;;  %2000 = vmatpush.msrb.mxu3 %v1680_v31  ;;  %v2311_v30 = vld [vmem:[#allocation5 + $0x1fc0] sm:$0xff]  ;;  %v2184_v31 = vld [vmem:[#allocation5 + $0x1bc8] sm:$0xff] }
 0x1f3   : > { %2020 = vmatpush.msra.mxu0 %v1553_v11  ;;  %2040 = vmatpush.msra.mxu1 %v1681_v34  ;;  %v2312_v11 = vld [vmem:[#allocation5 + $0x1fc8] sm:$0xff]  ;;  %v2303_v34 = vld [vmem:[#allocation5 + $0x1f80] sm:$0xff] }
 0x1f4   : > { %1981 = vmatpush.msrb.mxu2 %v1544_v35  ;;  %2001 = vmatpush.msrb.mxu3 %v1672_v36  ;;  %v2176_v35 = vld [vmem:[#allocation5 + $0x1b88] sm:$0xff] }
 0x1f5   : > { %2021 = vmatpush.msra.mxu0 %v1545_v37  ;;  %2041 = vmatpush.msra.mxu1 %v1673_v38  ;;  %v2304_v36 = vld [vmem:[#allocation5 + $0x1f88] sm:$0xff]  ;;  %v2167_v37 = vld [vmem:[#allocation5 + $0x1b40] sm:$0xff] }
 0x1f6   : > { %1982 = vmatpush.msrb.mxu2 %v1536_v39  ;;  %2002 = vmatpush.msrb.mxu3 %v1664_v40  ;;  %v2295_v38 = vld [vmem:[#allocation5 + $0x1f40] sm:$0xff]  ;;  %v2168_v39 = vld [vmem:[#allocation5 + $0x1b48] sm:$0xff] }
 0x1f7   : > { %2022 = vmatpush.msra.mxu0 %v1537_v41  ;;  %2042 = vmatpush.msra.mxu1 %v1665_v42  ;;  %v2296_v40 = vld [vmem:[#allocation5 + $0x1f48] sm:$0xff]  ;;  %v2159_v41 = vld [vmem:[#allocation5 + $0x1b00] sm:$0xff] }
 0x1f8   : > { %1983 = vmatpush.msrb.mxu2 %v1528_v43  ;;  %2003 = vmatpush.msrb.mxu3 %v1656_v44  ;;  %v2288_v42 = vld [vmem:[#allocation5 + $0x1f08] sm:$0xff]  ;;  %v2151_v43 = vld [vmem:[#allocation5 + $0x1ac0] sm:$0xff] }
 0x1f9   : > { %2023 = vmatpush.msra.mxu0 %v1529_v48  ;;  %2043 = vmatpush.msra.mxu1 %v1657_v50  ;;  %v2279_v44 = vld [vmem:[#allocation5 + $0x1ec0] sm:$0xff]  ;;  %v2152_v48 = vld [vmem:[#allocation5 + $0x1ac8] sm:$0xff] }
 0x1fa   : > { %1984 = vmatpush.msrb.mxu2 %v1520_v51  ;;  %2004 = vmatpush.msrb.mxu3 %v1648_v52  ;;  %v2280_v50 = vld [vmem:[#allocation5 + $0x1ec8] sm:$0xff]  ;;  %v2143_v51 = vld [vmem:[#allocation5 + $0x1a80] sm:$0xff] }
 0x1fb   : > { %2024 = vmatpush.msra.mxu0 %v1521_v53  ;;  %2044 = vmatpush.msra.mxu1 %v1649_v33  ;;  %v2271_v52 = vld [vmem:[#allocation5 + $0x1e80] sm:$0xff]  ;;  %v2144_v53 = vld [vmem:[#allocation5 + $0x1a88] sm:$0xff] }
 0x1fc   : > { %1985 = vmatpush.msrb.mxu2 %v1512_v54  ;;  %2005 = vmatpush.msrb.mxu3 %v1640_v55  ;;  %v1450_v45 = vpop.f32.mrf.mxu0  ;;  %v1470_v6 = vpop.f32.mrf.mxu1  ;;  %v2272_v33 = vld [vmem:[#allocation5 + $0x1e88] sm:$0xff]  ;;  %v2135_v54 = vld [vmem:[#allocation5 + $0x1a40] sm:$0xff] }
 0x1fd   : > { %2025 = vmatpush.msra.mxu0 %v1513_v56  ;;  %2045 = vmatpush.msra.mxu1 %v1641_v57  ;;  %v1451_v2 = vadd.f32 %v1450_v45, %v3230_v47  ;;  %v2263_v55 = vld [vmem:[#allocation5 + $0x1e40] sm:$0xff]  ;;  %v2136_v56 = vld [vmem:[#allocation5 + $0x1a48] sm:$0xff] }
 0x1fe   : > { %1986 = vmatpush.msrb.mxu2 %v1504_v59  ;;  %2006 = vmatpush.msrb.mxu3 %v1632_v61  ;;  %v2264_v57 = vld [vmem:[#allocation5 + $0x1e48] sm:$0xff]  ;;  %v2127_v59 = vld [vmem:[#allocation5 + $0x1a00] sm:$0xff] }
 0x1ff   : > { %2026 = vmatpush.msra.mxu0 %v1505_v62  ;;  %2046 = vmatpush.msra.mxu1 %v1633_v63  ;;  %v3277_v14 = vadd.f32 %v1470_v6, %v1451_v2  ;;  %v2255_v61 = vld [vmem:[#allocation5 + $0x1e00] sm:$0xff]  ;;  %v2128_v62 = vld [vmem:[#allocation5 + $0x1a08] sm:$0xff] }
 0x200   : > { %1987 = vmatpush.msrb.mxu2 %v1496_v0  ;;  %2007 = vmatpush.msrb.mxu3 %v1624_v1  ;;  %v2256_v63 = vld [vmem:[#allocation5 + $0x1e08] sm:$0xff]  ;;  %v2119_v45 = vld [vmem:[#allocation5 + $0x19c0] sm:$0xff] }
 0x201   : > { %2027 = vmatpush.msra.mxu0 %v1497_v3  ;;  %2047 = vmatpush.msra.mxu1 %v1625_v5  ;;  %v1410_v47 = vpop.f32.mrf.mxu2  ;;  %v1430_v25 = vpop.f32.mrf.mxu3  ;;  %v2247_v0 = vld [vmem:[#allocation5 + $0x1dc0] sm:$0xff]  ;;  %v2120_v1 = vld [vmem:[#allocation5 + $0x19c8] sm:$0xff] }
 0x202   : > { %1988 = vmatpush.msrb.mxu2 %v1488_v7  ;;  %2008 = vmatpush.msrb.mxu3 %v1616_v13  ;;  %v1411_v24 = vadd.f32 %v1410_v47, %v3232_v60  ;;  %v2175_v60 = vld [vmem:[#allocation5 + $0x1b80] sm:$0xff]  ;;  %v2248_v2 = vld [vmem:[#allocation5 + $0x1dc8] sm:$0xff] }
 0x203   : > { %2028 = vmatpush.msra.mxu0 %v1489_v15  ;;  %2048 = vmatpush.msra.mxu1 %v1617_v16  ;;  %v2111_v3 = vld [vmem:[#allocation5 + $0x1980] sm:$0xff]  ;;  %v2112_v6 = vld [vmem:[#allocation5 + $0x1988] sm:$0xff] }
 0x204   : > { %1989 = vmatpush.msrb.mxu2 %v1480_v21  ;;  %2009 = vmatpush.msrb.mxu3 %v1608_v22  ;;  %v3280_v28 = vadd.f32 %v1430_v25, %v1411_v24  ;;  %v2239_v5 = vld [vmem:[#allocation5 + $0x1d80] sm:$0xff]  ;;  %v2240_v7 = vld [vmem:[#allocation5 + $0x1d88] sm:$0xff] }
 0x205   : > { %2029 = vmatpush.msra.mxu0 %v1481_v26  ;;  %2049 = vmatpush.msra.mxu1 %v1609_v23  ;;  %v2103_v13 = vld [vmem:[#allocation5 + $0x1940] sm:$0xff]  ;;  %v2104_v16 = vld [vmem:[#allocation5 + $0x1948] sm:$0xff] }
 0x206   : > { %1990 = vmatmul.f32.vlgmr.msrb.gmra.mxu2 %v3243_v18  ;;  %2010 = vmatmul.f32.vlgmr.msrb.gmra.mxu3 %v3246_v19  ;;  %v2231_v15 = vld [vmem:[#allocation5 + $0x1d40] sm:$0xff]  ;;  %v2232_v21 = vld [vmem:[#allocation5 + $0x1d48] sm:$0xff] }
 0x207   : > { %2030 = vmatmul.f32.vlgmr.msra.gmra.mxu0 %v3243_v18  ;;  %2050 = vmatmul.f32.vlgmr.msra.gmra.mxu1 %v3246_v19  ;;  %v2287_v18 = vld [vmem:[#allocation5 + $0x1f00] sm:$0xff]  ;;  %v2160_v19 = vld [vmem:[#allocation5 + $0x1b08] sm:$0xff] }
 0x208   : > { %2323 = vmatpush.msra.mxu2 %v2183_v29  ;;  %2343 = vmatpush.msra.mxu3 %v2311_v30  ;;  %v2095_v22 = vld [vmem:[#allocation5 + $0x1900] sm:$0xff]  ;;  %v2096_v26 = vld [vmem:[#allocation5 + $0x1908] sm:$0xff] }
 0x209   : > { %2363 = vmatpush.msrb.mxu0 %v2184_v31  ;;  %2383 = vmatpush.msrb.mxu1 %v2312_v11  ;;  %v2223_v47 = vld [vmem:[#allocation5 + $0x1d00] sm:$0xff]  ;;  %v2224_v23 = vld [vmem:[#allocation5 + $0x1d08] sm:$0xff] }
 0x20a   : > { %2324 = vmatpush.msra.mxu2 %v2175_v60  ;;  %2344 = vmatpush.msra.mxu3 %v2303_v34  ;;  %v2087_v24 = vld [vmem:[#allocation5 + $0x18c0] sm:$0xff]  ;;  %v2088_v29 = vld [vmem:[#allocation5 + $0x18c8] sm:$0xff] }
 0x20b   : > { %2364 = vmatpush.msrb.mxu0 %v2176_v35  ;;  %2384 = vmatpush.msrb.mxu1 %v2304_v36  ;;  %v2215_v25 = vld [vmem:[#allocation5 + $0x1cc0] sm:$0xff]  ;;  %v2216_v30 = vld [vmem:[#allocation5 + $0x1cc8] sm:$0xff] }
 0x20c   : > { %2325 = vmatpush.msra.mxu2 %v2167_v37  ;;  %2345 = vmatpush.msra.mxu3 %v2295_v38  ;;  %v2079_v31 = vld [vmem:[#allocation5 + $0x1880] sm:$0xff]  ;;  %v2080_v60 = vld [vmem:[#allocation5 + $0x1888] sm:$0xff] }
 0x20d   : > { %2365 = vmatpush.msrb.mxu0 %v2168_v39  ;;  %2385 = vmatpush.msrb.mxu1 %v2296_v40  ;;  %v2207_v11 = vld [vmem:[#allocation5 + $0x1c80] sm:$0xff]  ;;  %v2208_v34 = vld [vmem:[#allocation5 + $0x1c88] sm:$0xff] }
 0x20e   : > { %2326 = vmatpush.msra.mxu2 %v2159_v41  ;;  %2346 = vmatpush.msra.mxu3 %v2287_v18  ;;  %v2071_v35 = vld [vmem:[#allocation5 + $0x1840] sm:$0xff]  ;;  %v2072_v37 = vld [vmem:[#allocation5 + $0x1848] sm:$0xff] }
 0x20f   : > { %2366 = vmatpush.msrb.mxu0 %v2160_v19  ;;  %2386 = vmatpush.msrb.mxu1 %v2288_v42  ;;  %v2199_v36 = vld [vmem:[#allocation5 + $0x1c40] sm:$0xff]  ;;  %v2200_v38 = vld [vmem:[#allocation5 + $0x1c48] sm:$0xff]  ;;  %v3287_v19 = vrot.slane %v3180_v9, 6  ;;  %v3290_v42 = vrot.slane %v3182_v10, 6  ;;  %v2305_v9 = vld [vmem:[#allocation5 + $0x1f90] sm:$0xff] }
 0x210   : > { %2327 = vmatpush.msra.mxu2 %v2151_v43  ;;  %2347 = vmatpush.msra.mxu3 %v2279_v44  ;;  %v2063_v39 = vld [vmem:[#allocation5 + $0x1800] sm:$0xff]  ;;  %v2064_v41 = vld [vmem:[#allocation5 + $0x1808] sm:$0xff]  ;;  %v2185_v43 = vld [vmem:[#allocation5 + $0x1bd0] sm:$0xff] }
 0x211   : > { %2367 = vmatpush.msrb.mxu0 %v2152_v48  ;;  %2387 = vmatpush.msrb.mxu1 %v2280_v50  ;;  %v2191_v40 = vld [vmem:[#allocation5 + $0x1c00] sm:$0xff]  ;;  %v2192_v18 = vld [vmem:[#allocation5 + $0x1c08] sm:$0xff]  ;;  %v2313_v44 = vld [vmem:[#allocation5 + $0x1fd0] sm:$0xff] }
 0x212   : > { %2328 = vmatpush.msra.mxu2 %v2143_v51  ;;  %2348 = vmatpush.msra.mxu3 %v2271_v52  ;;  %v2186_v48 = vld [vmem:[#allocation5 + $0x1bd8] sm:$0xff]  ;;  %v2177_v51 = vld [vmem:[#allocation5 + $0x1b90] sm:$0xff] }
 0x213   : > { %2368 = vmatpush.msrb.mxu0 %v2144_v53  ;;  %2388 = vmatpush.msrb.mxu1 %v2272_v33  ;;  %v2314_v50 = vld [vmem:[#allocation5 + $0x1fd8] sm:$0xff]  ;;  %v2169_v53 = vld [vmem:[#allocation5 + $0x1b50] sm:$0xff] }
 0x214   : > { %2329 = vmatpush.msra.mxu2 %v2135_v54  ;;  %2349 = vmatpush.msra.mxu3 %v2263_v55  ;;  %v2178_v10 = vld [vmem:[#allocation5 + $0x1b98] sm:$0xff]  ;;  %v2297_v33 = vld [vmem:[#allocation5 + $0x1f50] sm:$0xff] }
 0x215   : > { %2369 = vmatpush.msrb.mxu0 %v2136_v56  ;;  %2389 = vmatpush.msrb.mxu1 %v2264_v57  ;;  %v2306_v52 = vld [vmem:[#allocation5 + $0x1f98] sm:$0xff]  ;;  %v2161_v56 = vld [vmem:[#allocation5 + $0x1b10] sm:$0xff] }
 0x216   : > { %2330 = vmatpush.msra.mxu2 %v2127_v59  ;;  %2350 = vmatpush.msra.mxu3 %v2255_v61  ;;  %v2170_v54 = vld [vmem:[#allocation5 + $0x1b58] sm:$0xff]  ;;  %v2289_v57 = vld [vmem:[#allocation5 + $0x1f10] sm:$0xff] }
 0x217   : > { %2370 = vmatpush.msrb.mxu0 %v2128_v62  ;;  %2390 = vmatpush.msrb.mxu1 %v2256_v63  ;;  %v2298_v55 = vld [vmem:[#allocation5 + $0x1f58] sm:$0xff]  ;;  %v2153_v62 = vld [vmem:[#allocation5 + $0x1ad0] sm:$0xff] }
 0x218   : > { %2331 = vmatpush.msra.mxu2 %v2119_v45  ;;  %2351 = vmatpush.msra.mxu3 %v2247_v0  ;;  %v2162_v59 = vld [vmem:[#allocation5 + $0x1b18] sm:$0xff]  ;;  %v2281_v63 = vld [vmem:[#allocation5 + $0x1ed0] sm:$0xff] }
 0x219   : > { %2371 = vmatpush.msrb.mxu0 %v2120_v1  ;;  %2391 = vmatpush.msrb.mxu1 %v2248_v2  ;;  %v2290_v61 = vld [vmem:[#allocation5 + $0x1f18] sm:$0xff]  ;;  %v2145_v1 = vld [vmem:[#allocation5 + $0x1a90] sm:$0xff] }
 0x21a   : > { %2332 = vmatpush.msra.mxu2 %v2111_v3  ;;  %2352 = vmatpush.msra.mxu3 %v2239_v5  ;;  %v2154_v45 = vld [vmem:[#allocation5 + $0x1ad8] sm:$0xff]  ;;  %v2273_v2 = vld [vmem:[#allocation5 + $0x1e90] sm:$0xff] }
 0x21b   : > { %2372 = vmatpush.msrb.mxu0 %v2112_v6  ;;  %2392 = vmatpush.msrb.mxu1 %v2240_v7  ;;  %v2282_v0 = vld [vmem:[#allocation5 + $0x1ed8] sm:$0xff]  ;;  %v2137_v6 = vld [vmem:[#allocation5 + $0x1a50] sm:$0xff] }
 0x21c   : > { %2333 = vmatpush.msra.mxu2 %v2103_v13  ;;  %2353 = vmatpush.msra.mxu3 %v2231_v15  ;;  %v2146_v3 = vld [vmem:[#allocation5 + $0x1a98] sm:$0xff]  ;;  %v2265_v7 = vld [vmem:[#allocation5 + $0x1e50] sm:$0xff] }
 0x21d   : > { %2373 = vmatpush.msrb.mxu0 %v2104_v16  ;;  %2393 = vmatpush.msrb.mxu1 %v2232_v21  ;;  %v2274_v5 = vld [vmem:[#allocation5 + $0x1e98] sm:$0xff]  ;;  %v2129_v16 = vld [vmem:[#allocation5 + $0x1a10] sm:$0xff] }
 0x21e   : > { %2334 = vmatpush.msra.mxu2 %v2095_v22  ;;  %2354 = vmatpush.msra.mxu3 %v2223_v47  ;;  %v2138_v13 = vld [vmem:[#allocation5 + $0x1a58] sm:$0xff]  ;;  %v2257_v21 = vld [vmem:[#allocation5 + $0x1e10] sm:$0xff] }
 0x21f   : > { %2374 = vmatpush.msrb.mxu0 %v2096_v26  ;;  %2394 = vmatpush.msrb.mxu1 %v2224_v23  ;;  %v2266_v15 = vld [vmem:[#allocation5 + $0x1e58] sm:$0xff]  ;;  %v2121_v26 = vld [vmem:[#allocation5 + $0x19d0] sm:$0xff] }
 0x220   : > { %2335 = vmatpush.msra.mxu2 %v2087_v24  ;;  %2355 = vmatpush.msra.mxu3 %v2215_v25  ;;  %v2130_v22 = vld [vmem:[#allocation5 + $0x1a18] sm:$0xff]  ;;  %v2249_v23 = vld [vmem:[#allocation5 + $0x1dd0] sm:$0xff] }
 0x221   : > { %2375 = vmatpush.msrb.mxu0 %v2088_v29  ;;  %2395 = vmatpush.msrb.mxu1 %v2216_v30  ;;  %v2258_v47 = vld [vmem:[#allocation5 + $0x1e18] sm:$0xff]  ;;  %v2113_v29 = vld [vmem:[#allocation5 + $0x1990] sm:$0xff] }
 0x222   : > { %2336 = vmatpush.msra.mxu2 %v2079_v31  ;;  %2356 = vmatpush.msra.mxu3 %v2207_v11  ;;  %v2122_v24 = vld [vmem:[#allocation5 + $0x19d8] sm:$0xff]  ;;  %v2241_v30 = vld [vmem:[#allocation5 + $0x1d90] sm:$0xff] }
 0x223   : > { %2376 = vmatpush.msrb.mxu0 %v2080_v60  ;;  %2396 = vmatpush.msrb.mxu1 %v2208_v34  ;;  %v2250_v25 = vld [vmem:[#allocation5 + $0x1dd8] sm:$0xff]  ;;  %v2105_v60 = vld [vmem:[#allocation5 + $0x1950] sm:$0xff] }
 0x224   : > { %2337 = vmatpush.msra.mxu2 %v2071_v35  ;;  %2357 = vmatpush.msra.mxu3 %v2199_v36  ;;  %v2114_v31 = vld [vmem:[#allocation5 + $0x1998] sm:$0xff]  ;;  %v2233_v34 = vld [vmem:[#allocation5 + $0x1d50] sm:$0xff] }
 0x225   : > { %2377 = vmatpush.msrb.mxu0 %v2072_v37  ;;  %2397 = vmatpush.msrb.mxu1 %v2200_v38  ;;  %v2242_v11 = vld [vmem:[#allocation5 + $0x1d98] sm:$0xff]  ;;  %v2097_v37 = vld [vmem:[#allocation5 + $0x1910] sm:$0xff] }
 0x226   : > { %2338 = vmatpush.msra.mxu2 %v2063_v39  ;;  %2358 = vmatpush.msra.mxu3 %v2191_v40  ;;  %v2106_v35 = vld [vmem:[#allocation5 + $0x1958] sm:$0xff]  ;;  %v2225_v38 = vld [vmem:[#allocation5 + $0x1d10] sm:$0xff] }
 0x227   : > { %2378 = vmatpush.msrb.mxu0 %v2064_v41  ;;  %2398 = vmatpush.msrb.mxu1 %v2192_v18  ;;  %v2234_v36 = vld [vmem:[#allocation5 + $0x1d58] sm:$0xff]  ;;  %v2089_v41 = vld [vmem:[#allocation5 + $0x18d0] sm:$0xff] }
 0x228   : > { %2339 = vmatmul.f32.vlgmr.msra.gmra.mxu2 %v3287_v19  ;;  %2359 = vmatmul.f32.vlgmr.msra.gmra.mxu3 %v3290_v42  ;;  %v2098_v39 = vld [vmem:[#allocation5 + $0x1918] sm:$0xff]  ;;  %v2217_v18 = vld [vmem:[#allocation5 + $0x1cd0] sm:$0xff] }
 0x229   : > { %2379 = vmatmul.f32.vlgmr.msrb.gmra.mxu0 %v3287_v19  ;;  %2399 = vmatmul.f32.vlgmr.msrb.gmra.mxu1 %v3290_v42  ;;  %v2226_v40 = vld [vmem:[#allocation5 + $0x1d18] sm:$0xff] }
 0x22a   : > { %2403 = vmatpush.msrb.mxu2 %v2185_v43  ;;  %2423 = vmatpush.msrb.mxu3 %v2313_v44  ;;  %v2090_v43 = vld [vmem:[#allocation5 + $0x18d8] sm:$0xff] }
 0x22b   : > { %2443 = vmatpush.msra.mxu0 %v2186_v48  ;;  %2463 = vmatpush.msra.mxu1 %v2314_v50  ;;  %v2218_v44 = vld [vmem:[#allocation5 + $0x1cd8] sm:$0xff]  ;;  %v2081_v48 = vld [vmem:[#allocation5 + $0x1890] sm:$0xff] }
 0x22c   : > { %2404 = vmatpush.msrb.mxu2 %v2177_v51  ;;  %2424 = vmatpush.msrb.mxu3 %v2305_v9  ;;  %v2209_v50 = vld [vmem:[#allocation5 + $0x1c90] sm:$0xff]  ;;  %v2082_v51 = vld [vmem:[#allocation5 + $0x1898] sm:$0xff] }
 0x22d   : > { %2444 = vmatpush.msra.mxu0 %v2178_v10  ;;  %2464 = vmatpush.msra.mxu1 %v2306_v52  ;;  %v2210_v9 = vld [vmem:[#allocation5 + $0x1c98] sm:$0xff]  ;;  %v2073_v10 = vld [vmem:[#allocation5 + $0x1850] sm:$0xff] }
 0x22e   : > { %2405 = vmatpush.msrb.mxu2 %v2169_v53  ;;  %2425 = vmatpush.msrb.mxu3 %v2297_v33  ;;  %v2201_v52 = vld [vmem:[#allocation5 + $0x1c50] sm:$0xff]  ;;  %v2074_v53 = vld [vmem:[#allocation5 + $0x1858] sm:$0xff] }
 0x22f   : > { %2445 = vmatpush.msra.mxu0 %v2170_v54  ;;  %2465 = vmatpush.msra.mxu1 %v2298_v55  ;;  %v2202_v33 = vld [vmem:[#allocation5 + $0x1c58] sm:$0xff]  ;;  %v2065_v54 = vld [vmem:[#allocation5 + $0x1810] sm:$0xff] }
 0x230   : > { %2406 = vmatpush.msrb.mxu2 %v2161_v56  ;;  %2426 = vmatpush.msrb.mxu3 %v2289_v57  ;;  %v2193_v55 = vld [vmem:[#allocation5 + $0x1c10] sm:$0xff]  ;;  %v2066_v56 = vld [vmem:[#allocation5 + $0x1818] sm:$0xff] }
 0x231   : > { %2446 = vmatpush.msra.mxu0 %v2162_v59  ;;  %2466 = vmatpush.msra.mxu1 %v2290_v61  ;;  %v2194_v57 = vld [vmem:[#allocation5 + $0x1c18] sm:$0xff]  ;;  %v2187_v59 = vld [vmem:[#allocation5 + $0x1be0] sm:$0xff] }
 0x232   : > { %2407 = vmatpush.msrb.mxu2 %v2153_v62  ;;  %2427 = vmatpush.msrb.mxu3 %v2281_v63  ;;  %v2315_v61 = vld [vmem:[#allocation5 + $0x1fe0] sm:$0xff]  ;;  %v2188_v62 = vld [vmem:[#allocation5 + $0x1be8] sm:$0xff] }
 0x233   : > { %2447 = vmatpush.msra.mxu0 %v2154_v45  ;;  %2467 = vmatpush.msra.mxu1 %v2282_v0  ;;  %v2316_v63 = vld [vmem:[#allocation5 + $0x1fe8] sm:$0xff]  ;;  %v2179_v45 = vld [vmem:[#allocation5 + $0x1ba0] sm:$0xff] }
 0x234   : > { %2408 = vmatpush.msrb.mxu2 %v2145_v1  ;;  %2428 = vmatpush.msrb.mxu3 %v2273_v2  ;;  %v2307_v0 = vld [vmem:[#allocation5 + $0x1fa0] sm:$0xff]  ;;  %v2180_v1 = vld [vmem:[#allocation5 + $0x1ba8] sm:$0xff] }
 0x235   : > { %2448 = vmatpush.msra.mxu0 %v2146_v3  ;;  %2468 = vmatpush.msra.mxu1 %v2274_v5  ;;  %v2308_v2 = vld [vmem:[#allocation5 + $0x1fa8] sm:$0xff]  ;;  %v2171_v3 = vld [vmem:[#allocation5 + $0x1b60] sm:$0xff] }
 0x236   : > { %2409 = vmatpush.msrb.mxu2 %v2137_v6  ;;  %2429 = vmatpush.msrb.mxu3 %v2265_v7  ;;  %v2299_v5 = vld [vmem:[#allocation5 + $0x1f60] sm:$0xff]  ;;  %v2172_v6 = vld [vmem:[#allocation5 + $0x1b68] sm:$0xff] }
 0x237   : > { %2449 = vmatpush.msra.mxu0 %v2138_v13  ;;  %2469 = vmatpush.msra.mxu1 %v2266_v15  ;;  %v2300_v7 = vld [vmem:[#allocation5 + $0x1f68] sm:$0xff]  ;;  %v2163_v13 = vld [vmem:[#allocation5 + $0x1b20] sm:$0xff] }
 0x238   : > { %2410 = vmatpush.msrb.mxu2 %v2129_v16  ;;  %2430 = vmatpush.msrb.mxu3 %v2257_v21  ;;  %v2291_v15 = vld [vmem:[#allocation5 + $0x1f20] sm:$0xff]  ;;  %v2164_v16 = vld [vmem:[#allocation5 + $0x1b28] sm:$0xff] }
 0x239   : > { %2450 = vmatpush.msra.mxu0 %v2130_v22  ;;  %2470 = vmatpush.msra.mxu1 %v2258_v47  ;;  %v2292_v21 = vld [vmem:[#allocation5 + $0x1f28] sm:$0xff]  ;;  %v2155_v22 = vld [vmem:[#allocation5 + $0x1ae0] sm:$0xff] }
 0x23a   : > { %2411 = vmatpush.msrb.mxu2 %v2121_v26  ;;  %2431 = vmatpush.msrb.mxu3 %v2249_v23  ;;  %v2283_v47 = vld [vmem:[#allocation5 + $0x1ee0] sm:$0xff]  ;;  %v3300_v26 = vpop.f32.mrf.mxu0  ;;  %v3302_v23 = vpop.f32.mrf.mxu1 }
 0x23b   : > { %2451 = vmatpush.msra.mxu0 %v2122_v24  ;;  %2471 = vmatpush.msra.mxu1 %v2250_v25  ;;  %v2156_v24 = vld [vmem:[#allocation5 + $0x1ae8] sm:$0xff] }
 0x23c   : > { %2412 = vmatpush.msrb.mxu2 %v2113_v29  ;;  %2432 = vmatpush.msrb.mxu3 %v2241_v30  ;;  %v2284_v25 = vld [vmem:[#allocation5 + $0x1ee8] sm:$0xff]  ;;  %v2147_v29 = vld [vmem:[#allocation5 + $0x1aa0] sm:$0xff] }
 0x23d   : > { %2452 = vmatpush.msra.mxu0 %v2114_v31  ;;  %2472 = vmatpush.msra.mxu1 %v2242_v11  ;;  %v2275_v30 = vld [vmem:[#allocation5 + $0x1ea0] sm:$0xff]  ;;  %v2148_v31 = vld [vmem:[#allocation5 + $0x1aa8] sm:$0xff] }
 0x23e   : > { %2413 = vmatpush.msrb.mxu2 %v2105_v60  ;;  %2433 = vmatpush.msrb.mxu3 %v2233_v34  ;;  %v2276_v11 = vld [vmem:[#allocation5 + $0x1ea8] sm:$0xff]  ;;  %v2139_v60 = vld [vmem:[#allocation5 + $0x1a60] sm:$0xff] }
 0x23f   : > { %2453 = vmatpush.msra.mxu0 %v2106_v35  ;;  %2473 = vmatpush.msra.mxu1 %v2234_v36  ;;  %v2267_v34 = vld [vmem:[#allocation5 + $0x1e60] sm:$0xff]  ;;  %v2140_v35 = vld [vmem:[#allocation5 + $0x1a68] sm:$0xff] }
 0x240   : > { %2414 = vmatpush.msrb.mxu2 %v2097_v37  ;;  %2434 = vmatpush.msrb.mxu3 %v2225_v38  ;;  %v2268_v36 = vld [vmem:[#allocation5 + $0x1e68] sm:$0xff]  ;;  %v3304_v37 = vpop.f32.mrf.mxu2  ;;  %v3306_v38 = vpop.f32.mrf.mxu3 }
 0x241   : > { %2454 = vmatpush.msra.mxu0 %v2098_v39  ;;  %2474 = vmatpush.msra.mxu1 %v2226_v40  ;;  %v2131_v39 = vld [vmem:[#allocation5 + $0x1a20] sm:$0xff] }
 0x242   : > { %2415 = vmatpush.msrb.mxu2 %v2089_v41  ;;  %2435 = vmatpush.msrb.mxu3 %v2217_v18  ;;  %v2259_v40 = vld [vmem:[#allocation5 + $0x1e20] sm:$0xff]  ;;  %v2132_v41 = vld [vmem:[#allocation5 + $0x1a28] sm:$0xff] }
 0x243   : > { %2455 = vmatpush.msra.mxu0 %v2090_v43  ;;  %2475 = vmatpush.msra.mxu1 %v2218_v44  ;;  %v2260_v18 = vld [vmem:[#allocation5 + $0x1e28] sm:$0xff]  ;;  %v2123_v43 = vld [vmem:[#allocation5 + $0x19e0] sm:$0xff] }
 0x244   : > { %2416 = vmatpush.msrb.mxu2 %v2081_v48  ;;  %2436 = vmatpush.msrb.mxu3 %v2209_v50  ;;  %v2251_v44 = vld [vmem:[#allocation5 + $0x1de0] sm:$0xff]  ;;  %v3308_v48 = vpop.f32.mrf.mxu0  ;;  %v3310_v50 = vpop.f32.mrf.mxu1 }
 0x245   : > { %2456 = vmatpush.msra.mxu0 %v2082_v51  ;;  %2476 = vmatpush.msra.mxu1 %v2210_v9  ;;  %v2124_v51 = vld [vmem:[#allocation5 + $0x19e8] sm:$0xff] }
 0x246   : > { %2417 = vmatpush.msrb.mxu2 %v2073_v10  ;;  %2437 = vmatpush.msrb.mxu3 %v2201_v52  ;;  %v2252_v9 = vld [vmem:[#allocation5 + $0x1de8] sm:$0xff]  ;;  %v2115_v10 = vld [vmem:[#allocation5 + $0x19a0] sm:$0xff] }
 0x247   : > { %2457 = vmatpush.msra.mxu0 %v2074_v53  ;;  %2477 = vmatpush.msra.mxu1 %v2202_v33  ;;  %v2243_v52 = vld [vmem:[#allocation5 + $0x1da0] sm:$0xff]  ;;  %v2116_v53 = vld [vmem:[#allocation5 + $0x19a8] sm:$0xff] }
 0x248   : > { %2418 = vmatpush.msrb.mxu2 %v2065_v54  ;;  %2438 = vmatpush.msrb.mxu3 %v2193_v55  ;;  %v2244_v33 = vld [vmem:[#allocation5 + $0x1da8] sm:$0xff]  ;;  %v2107_v54 = vld [vmem:[#allocation5 + $0x1960] sm:$0xff] }
 0x249   : > { %2458 = vmatpush.msra.mxu0 %v2066_v56  ;;  %2478 = vmatpush.msra.mxu1 %v2194_v57  ;;  %v2235_v55 = vld [vmem:[#allocation5 + $0x1d60] sm:$0xff]  ;;  %v2108_v56 = vld [vmem:[#allocation5 + $0x1968] sm:$0xff] }
 0x24a   : > { %2419 = vmatmul.f32.vlgmr.msrb.gmra.mxu2 %v3287_v19  ;;  %2439 = vmatmul.f32.vlgmr.msrb.gmra.mxu3 %v3290_v42  ;;  %v2236_v57 = vld [vmem:[#allocation5 + $0x1d68] sm:$0xff] }
 0x24b   : > { %2459 = vmatmul.f32.vlgmr.msra.gmra.mxu0 %v3287_v19  ;;  %2479 = vmatmul.f32.vlgmr.msra.gmra.mxu1 %v3290_v42 }
 0x24c   : > { %2483 = vmatpush.msra.mxu2 %v2187_v59  ;;  %2503 = vmatpush.msra.mxu3 %v2315_v61  ;;  %v3312_v59 = vpop.f32.mrf.mxu2  ;;  %v3314_v61 = vpop.f32.mrf.mxu3 }
 0x24d   : > { %2523 = vmatpush.msrb.mxu0 %v2188_v62  ;;  %2543 = vmatpush.msrb.mxu1 %v2316_v63  ;;  %v2099_v62 = vld [vmem:[#allocation5 + $0x1920] sm:$0xff] }
 0x24e   : > { %2484 = vmatpush.msra.mxu2 %v2179_v45  ;;  %2504 = vmatpush.msra.mxu3 %v2307_v0  ;;  %v2227_v63 = vld [vmem:[#allocation5 + $0x1d20] sm:$0xff]  ;;  %v2100_v45 = vld [vmem:[#allocation5 + $0x1928] sm:$0xff] }
 0x24f   : > { %2524 = vmatpush.msrb.mxu0 %v2180_v1  ;;  %2544 = vmatpush.msrb.mxu1 %v2308_v2  ;;  %v2228_v0 = vld [vmem:[#allocation5 + $0x1d28] sm:$0xff]  ;;  %v2091_v1 = vld [vmem:[#allocation5 + $0x18e0] sm:$0xff] }
 0x250   : > { %2485 = vmatpush.msra.mxu2 %v2171_v3  ;;  %2505 = vmatpush.msra.mxu3 %v2299_v5  ;;  %v2219_v2 = vld [vmem:[#allocation5 + $0x1ce0] sm:$0xff]  ;;  %v2092_v3 = vld [vmem:[#allocation5 + $0x18e8] sm:$0xff] }
 0x251   : > { %2525 = vmatpush.msrb.mxu0 %v2172_v6  ;;  %2545 = vmatpush.msrb.mxu1 %v2300_v7  ;;  %v2220_v5 = vld [vmem:[#allocation5 + $0x1ce8] sm:$0xff] }
 0x252   : > { %2486 = vmatpush.msra.mxu2 %v2163_v13  ;;  %2506 = vmatpush.msra.mxu3 %v2291_v15  ;;  %v2083_v13 = vld [vmem:[#allocation5 + $0x18a0] sm:$0xff] }
 0x253   : > { %2526 = vmatpush.msrb.mxu0 %v2164_v16  ;;  %2546 = vmatpush.msrb.mxu1 %v2292_v21  ;;  %v2211_v15 = vld [vmem:[#allocation5 + $0x1ca0] sm:$0xff]  ;;  %v2084_v21 = vld [vmem:[#allocation5 + $0x18a8] sm:$0xff] }
 0x254   : > { %2487 = vmatpush.msra.mxu2 %v2155_v22  ;;  %2507 = vmatpush.msra.mxu3 %v2283_v47  ;;  %v2212_v22 = vld [vmem:[#allocation5 + $0x1ca8] sm:$0xff]  ;;  %v2075_v47 = vld [vmem:[#allocation5 + $0x1860] sm:$0xff] }
 0x255   : > { %2527 = vmatpush.msrb.mxu0 %v2156_v24  ;;  %2547 = vmatpush.msrb.mxu1 %v2284_v25  ;;  %v2203_v24 = vld [vmem:[#allocation5 + $0x1c60] sm:$0xff] }
 0x256   : > { %2488 = vmatpush.msra.mxu2 %v2147_v29  ;;  %2508 = vmatpush.msra.mxu3 %v2275_v30  ;;  %v2076_v29 = vld [vmem:[#allocation5 + $0x1868] sm:$0xff] }
 0x257   : > { %2528 = vmatpush.msrb.mxu0 %v2148_v31  ;;  %2548 = vmatpush.msrb.mxu1 %v2276_v11  ;;  %v2204_v30 = vld [vmem:[#allocation5 + $0x1c68] sm:$0xff]  ;;  %v2067_v31 = vld [vmem:[#allocation5 + $0x1820] sm:$0xff] }
 0x258   : > { %2489 = vmatpush.msra.mxu2 %v2139_v60  ;;  %2509 = vmatpush.msra.mxu3 %v2267_v34  ;;  %v2195_v11 = vld [vmem:[#allocation5 + $0x1c20] sm:$0xff] }
 0x259   : > { %2529 = vmatpush.msrb.mxu0 %v2140_v35  ;;  %2549 = vmatpush.msrb.mxu1 %v2268_v36  ;;  %v2068_v35 = vld [vmem:[#allocation5 + $0x1828] sm:$0xff] }
 0x25a   : > { %2490 = vmatpush.msra.mxu2 %v2131_v39  ;;  %2510 = vmatpush.msra.mxu3 %v2259_v40  ;;  %v2196_v36 = vld [vmem:[#allocation5 + $0x1c28] sm:$0xff]  ;;  %v2189_v40 = vld [vmem:[#allocation5 + $0x1bf0] sm:$0xff] }
 0x25b   : > { %2530 = vmatpush.msrb.mxu0 %v2132_v41  ;;  %2550 = vmatpush.msrb.mxu1 %v2260_v18  ;;  %v2317_v41 = vld [vmem:[#allocation5 + $0x1ff0] sm:$0xff]  ;;  %v2190_v18 = vld [vmem:[#allocation5 + $0x1bf8] sm:$0xff] }
 0x25c   : > { %2491 = vmatpush.msra.mxu2 %v2123_v43  ;;  %2511 = vmatpush.msra.mxu3 %v2251_v44  ;;  %v2318_v43 = vld [vmem:[#allocation5 + $0x1ff8] sm:$0xff]  ;;  %v2181_v44 = vld [vmem:[#allocation5 + $0x1bb0] sm:$0xff] }
 0x25d   : > { %2531 = vmatpush.msrb.mxu0 %v2124_v51  ;;  %2551 = vmatpush.msrb.mxu1 %v2252_v9  ;;  %v2309_v51 = vld [vmem:[#allocation5 + $0x1fb0] sm:$0xff]  ;;  %v2310_v9 = vld [vmem:[#allocation5 + $0x1fb8] sm:$0xff] }
 0x25e   : > { %2492 = vmatpush.msra.mxu2 %v2115_v10  ;;  %2512 = vmatpush.msra.mxu3 %v2243_v52  ;;  %v2173_v10 = vld [vmem:[#allocation5 + $0x1b70] sm:$0xff] }
 0x25f   : > { %2532 = vmatpush.msrb.mxu0 %v2116_v53  ;;  %2552 = vmatpush.msrb.mxu1 %v2244_v33  ;;  %v2301_v52 = vld [vmem:[#allocation5 + $0x1f70] sm:$0xff]  ;;  %v2174_v53 = vld [vmem:[#allocation5 + $0x1b78] sm:$0xff] }
 0x260   : > { %2493 = vmatpush.msra.mxu2 %v2107_v54  ;;  %2513 = vmatpush.msra.mxu3 %v2235_v55  ;;  %v2302_v33 = vld [vmem:[#allocation5 + $0x1f78] sm:$0xff]  ;;  %v2165_v54 = vld [vmem:[#allocation5 + $0x1b30] sm:$0xff] }
 0x261   : > { %2533 = vmatpush.msrb.mxu0 %v2108_v56  ;;  %2553 = vmatpush.msrb.mxu1 %v2236_v57  ;;  %v2293_v55 = vld [vmem:[#allocation5 + $0x1f30] sm:$0xff]  ;;  %v2166_v56 = vld [vmem:[#allocation5 + $0x1b38] sm:$0xff] }
 0x262   : > { %2494 = vmatpush.msra.mxu2 %v2099_v62  ;;  %2514 = vmatpush.msra.mxu3 %v2227_v63  ;;  %v1951_v6 = vpop.f32.mrf.mxu0  ;;  %v1971_v7 = vpop.f32.mrf.mxu1  ;;  %v2294_v57 = vld [vmem:[#allocation5 + $0x1f38] sm:$0xff]  ;;  %v2157_v62 = vld [vmem:[#allocation5 + $0x1af0] sm:$0xff] }
 0x263   : > { %2534 = vmatpush.msrb.mxu0 %v2100_v45  ;;  %2554 = vmatpush.msrb.mxu1 %v2228_v0  ;;  %v1972_v16 = vadd.f32 %v1971_v7, %v1951_v6  ;;  %v2285_v63 = vld [vmem:[#allocation5 + $0x1ef0] sm:$0xff]  ;;  %v2158_v45 = vld [vmem:[#allocation5 + $0x1af8] sm:$0xff] }
 0x264   : > { %2495 = vmatpush.msra.mxu2 %v2091_v1  ;;  %2515 = vmatpush.msra.mxu3 %v2219_v2  ;;  %v2286_v0 = vld [vmem:[#allocation5 + $0x1ef8] sm:$0xff]  ;;  %v2149_v1 = vld [vmem:[#allocation5 + $0x1ab0] sm:$0xff] }
 0x265   : > { %2535 = vmatpush.msrb.mxu0 %v2092_v3  ;;  %2555 = vmatpush.msrb.mxu1 %v2220_v5  ;;  %v3317_v25 = vadd.f32 %v1972_v16, %v3267_v49  ;;  %v2277_v2 = vld [vmem:[#allocation5 + $0x1eb0] sm:$0xff]  ;;  %v2150_v3 = vld [vmem:[#allocation5 + $0x1ab8] sm:$0xff] }
 0x266   : > { %2496 = vmatpush.msra.mxu2 %v2083_v13  ;;  %2516 = vmatpush.msra.mxu3 %v2211_v15  ;;  %v2278_v5 = vld [vmem:[#allocation5 + $0x1eb8] sm:$0xff]  ;;  %v2141_v6 = vld [vmem:[#allocation5 + $0x1a70] sm:$0xff] }
 0x267   : > { %2536 = vmatpush.msrb.mxu0 %v2084_v21  ;;  %2556 = vmatpush.msrb.mxu1 %v2212_v22  ;;  %v1911_v60 = vpop.f32.mrf.mxu2  ;;  %v1931_v34 = vpop.f32.mrf.mxu3  ;;  %v2269_v7 = vld [vmem:[#allocation5 + $0x1e70] sm:$0xff]  ;;  %v2142_v13 = vld [vmem:[#allocation5 + $0x1a78] sm:$0xff] }
 0x268   : > { %2497 = vmatpush.msra.mxu2 %v2075_v47  ;;  %2517 = vmatpush.msra.mxu3 %v2203_v24  ;;  %v1932_v39 = vadd.f32 %v1931_v34, %v1911_v60  ;;  %v2270_v15 = vld [vmem:[#allocation5 + $0x1e78] sm:$0xff]  ;;  %v2133_v16 = vld [vmem:[#allocation5 + $0x1a30] sm:$0xff] }
 0x269   : > { %2537 = vmatpush.msrb.mxu0 %v2076_v29  ;;  %2557 = vmatpush.msrb.mxu1 %v2204_v30  ;;  %v2261_v21 = vld [vmem:[#allocation5 + $0x1e30] sm:$0xff]  ;;  %v2134_v22 = vld [vmem:[#allocation5 + $0x1a38] sm:$0xff] }
 0x26a   : > { %2498 = vmatpush.msra.mxu2 %v2067_v31  ;;  %2518 = vmatpush.msra.mxu3 %v2195_v11  ;;  %v3320_v49 = vadd.f32 %v1932_v39, %v3270_v58  ;;  %v2182_v58 = vld [vmem:[#allocation5 + $0x1bb8] sm:$0xff]  ;;  %v2125_v24 = vld [vmem:[#allocation5 + $0x19f0] sm:$0xff] }
 0x26b   : > { %2538 = vmatpush.msrb.mxu0 %v2068_v35  ;;  %2558 = vmatpush.msrb.mxu1 %v2196_v36  ;;  %v2262_v47 = vld [vmem:[#allocation5 + $0x1e38] sm:$0xff]  ;;  %v2253_v29 = vld [vmem:[#allocation5 + $0x1df0] sm:$0xff] }
 0x26c   : > { %2499 = vmatmul.f32.vlgmr.msra.gmra.mxu2 %v3287_v19  ;;  %2519 = vmatmul.f32.vlgmr.msra.gmra.mxu3 %v3290_v42  ;;  %v2126_v30 = vld [vmem:[#allocation5 + $0x19f8] sm:$0xff]  ;;  %v2117_v11 = vld [vmem:[#allocation5 + $0x19b0] sm:$0xff] }
 0x26d   : > { %2539 = vmatmul.f32.vlgmr.msrb.gmra.mxu0 %v3287_v19  ;;  %2559 = vmatmul.f32.vlgmr.msrb.gmra.mxu1 %v3290_v42  ;;  %v2254_v31 = vld [vmem:[#allocation5 + $0x1df8] sm:$0xff]  ;;  %v2245_v60 = vld [vmem:[#allocation5 + $0x1db0] sm:$0xff] }
 0x26e   : > { %2563 = vmatpush.msrb.mxu2 %v2189_v40  ;;  %2583 = vmatpush.msrb.mxu3 %v2317_v41  ;;  %v2118_v34 = vld [vmem:[#allocation5 + $0x19b8] sm:$0xff]  ;;  %v2109_v36 = vld [vmem:[#allocation5 + $0x1970] sm:$0xff] }
 0x26f   : > { %2603 = vmatpush.msra.mxu0 %v2190_v18  ;;  %2623 = vmatpush.msra.mxu1 %v2318_v43  ;;  %v2246_v35 = vld [vmem:[#allocation5 + $0x1db8] sm:$0xff]  ;;  %v2237_v39 = vld [vmem:[#allocation5 + $0x1d70] sm:$0xff] }
 0x270   : > { %2564 = vmatpush.msrb.mxu2 %v2181_v44  ;;  %2584 = vmatpush.msrb.mxu3 %v2309_v51  ;;  %v2110_v40 = vld [vmem:[#allocation5 + $0x1978] sm:$0xff]  ;;  %v2101_v18 = vld [vmem:[#allocation5 + $0x1930] sm:$0xff] }
 0x271   : > { %2604 = vmatpush.msra.mxu0 %v2182_v58  ;;  %2624 = vmatpush.msra.mxu1 %v2310_v9  ;;  %v2238_v41 = vld [vmem:[#allocation5 + $0x1d78] sm:$0xff]  ;;  %v2229_v43 = vld [vmem:[#allocation5 + $0x1d30] sm:$0xff] }
 0x272   : > { %2565 = vmatpush.msrb.mxu2 %v2173_v10  ;;  %2585 = vmatpush.msrb.mxu3 %v2301_v52  ;;  %v2102_v44 = vld [vmem:[#allocation5 + $0x1938] sm:$0xff]  ;;  %v2093_v58 = vld [vmem:[#allocation5 + $0x18f0] sm:$0xff] }
 0x273   : > { %2605 = vmatpush.msra.mxu0 %v2174_v53  ;;  %2625 = vmatpush.msra.mxu1 %v2302_v33  ;;  %v2230_v51 = vld [vmem:[#allocation5 + $0x1d38] sm:$0xff]  ;;  %v2221_v9 = vld [vmem:[#allocation5 + $0x1cf0] sm:$0xff] }
 0x274   : > { %2566 = vmatpush.msrb.mxu2 %v2165_v54  ;;  %2586 = vmatpush.msrb.mxu3 %v2293_v55  ;;  %v2094_v10 = vld [vmem:[#allocation5 + $0x18f8] sm:$0xff]  ;;  %v2085_v54 = vld [vmem:[#allocation5 + $0x18b0] sm:$0xff] }
 0x275   : > { %2606 = vmatpush.msra.mxu0 %v2166_v56  ;;  %2626 = vmatpush.msra.mxu1 %v2294_v57  ;;  %v2222_v52 = vld [vmem:[#allocation5 + $0x1cf8] sm:$0xff]  ;;  %v2213_v55 = vld [vmem:[#allocation5 + $0x1cb0] sm:$0xff] }
 0x276   : > { %2567 = vmatpush.msrb.mxu2 %v2157_v62  ;;  %2587 = vmatpush.msrb.mxu3 %v2285_v63  ;;  %v2086_v57 = vld [vmem:[#allocation5 + $0x18b8] sm:$0xff]  ;;  %v2077_v63 = vld [vmem:[#allocation5 + $0x1870] sm:$0xff] }
 0x277   : > { %2607 = vmatpush.msra.mxu0 %v2158_v45  ;;  %2627 = vmatpush.msra.mxu1 %v2286_v0  ;;  %v2214_v62 = vld [vmem:[#allocation5 + $0x1cb8] sm:$0xff]  ;;  %v2205_v45 = vld [vmem:[#allocation5 + $0x1c70] sm:$0xff] }
 0x278   : > { %2568 = vmatpush.msrb.mxu2 %v2149_v1  ;;  %2588 = vmatpush.msrb.mxu3 %v2277_v2  ;;  %v2078_v1 = vld [vmem:[#allocation5 + $0x1878] sm:$0xff] }
 0x279   : > { %2608 = vmatpush.msra.mxu0 %v2150_v3  ;;  %2628 = vmatpush.msra.mxu1 %v2278_v5  ;;  %v2206_v2 = vld [vmem:[#allocation5 + $0x1c78] sm:$0xff]  ;;  %v2069_v3 = vld [vmem:[#allocation5 + $0x1830] sm:$0xff] }
 0x27a   : > { %2569 = vmatpush.msrb.mxu2 %v2141_v6  ;;  %2589 = vmatpush.msrb.mxu3 %v2269_v7  ;;  %v2197_v5 = vld [vmem:[#allocation5 + $0x1c30] sm:$0xff] }
 0x27b   : > { %2609 = vmatpush.msra.mxu0 %v2142_v13  ;;  %2629 = vmatpush.msra.mxu1 %v2270_v15  ;;  %v2070_v13 = vld [vmem:[#allocation5 + $0x1838] sm:$0xff] }
 0x27c   : > { %2570 = vmatpush.msrb.mxu2 %v2133_v16  ;;  %2590 = vmatpush.msrb.mxu3 %v2261_v21  ;;  %v2198_v15 = vld [vmem:[#allocation5 + $0x1c38] sm:$0xff]  ;;  %v1812_v21 = vadd.f32 %v3302_v23, %v3300_v26  ;;  %v1291_v26 = vadd.f32 %v3258_v8, %v3214_v12  ;;  %v1892_v23 = vadd.f32 %v3310_v50, %v3308_v48 }
 0x27d   : > { %2610 = vmatpush.msra.mxu0 %v2134_v22  ;;  %2630 = vmatpush.msra.mxu1 %v2262_v47 }
 0x27e   : > { %2571 = vmatpush.msrb.mxu2 %v2125_v24  ;;  %2591 = vmatpush.msrb.mxu3 %v2253_v29  ;;  %v2055_v29 = vadd.f32 %v1812_v21, %v3239_v4  ;;  %v1251_v4 = vadd.f32 %v3262_v27, %v3220_v46 }
 0x27f   : > { %2611 = vmatpush.msra.mxu0 %v2126_v30  ;;  %2631 = vmatpush.msra.mxu1 %v2254_v31 }
 0x280   : > { %2572 = vmatpush.msrb.mxu2 %v2117_v11  ;;  %2592 = vmatpush.msrb.mxu3 %v2245_v60 }
 0x281   : > { %2612 = vmatpush.msra.mxu0 %v2118_v34  ;;  %2632 = vmatpush.msra.mxu1 %v2246_v35 }
 0x282   : > { %2573 = vmatpush.msrb.mxu2 %v2109_v36  ;;  %2593 = vmatpush.msrb.mxu3 %v2237_v39  ;;  %v1852_v36 = vadd.f32 %v3314_v61, %v3312_v59 }
 0x283   : > { %2613 = vmatpush.msra.mxu0 %v2110_v40  ;;  %2633 = vmatpush.msra.mxu1 %v2238_v41  ;;  %v1271_v40 = vadd.f32 %v3264_v32, %v1251_v4 }
 0x284   : > { %2574 = vmatpush.msrb.mxu2 %v2101_v18  ;;  %2594 = vmatpush.msrb.mxu3 %v2229_v43  ;;  %v2031_v53 = vpop.f32.mrf.mxu0  ;;  %v2051_v33 = vpop.f32.mrf.mxu1 }
 0x285   : > { %2614 = vmatpush.msra.mxu0 %v2102_v44  ;;  %2634 = vmatpush.msra.mxu1 %v2230_v51  ;;  %v2052_v56 = vadd.f32 %v2051_v33, %v2031_v53  ;;  %v2056_v8 = vadd.f32 %v1852_v36, %v1271_v40 }
 0x286   : > { %2575 = vmatpush.msrb.mxu2 %v2093_v58  ;;  %2595 = vmatpush.msrb.mxu3 %v2221_v9 }
 0x287   : > { %2615 = vmatpush.msra.mxu0 %v2094_v10  ;;  %2635 = vmatpush.msra.mxu1 %v2222_v52  ;;  %v3327_v0 = vadd.f32 %v2052_v56, %v3277_v14 }
 0x288   : > { %2576 = vmatpush.msrb.mxu2 %v2085_v54  ;;  %2596 = vmatpush.msrb.mxu3 %v2213_v55 }
 0x289   : > { %2616 = vmatpush.msra.mxu0 %v2086_v57  ;;  %2636 = vmatpush.msra.mxu1 %v2214_v62  ;;  %v1991_v6 = vpop.f32.mrf.mxu2  ;;  %v2011_v7 = vpop.f32.mrf.mxu3 }
 0x28a   : > { %2577 = vmatpush.msrb.mxu2 %v2077_v63  ;;  %2597 = vmatpush.msrb.mxu3 %v2205_v45  ;;  %v2012_v16 = vadd.f32 %v2011_v7, %v1991_v6 }
 0x28b   : > { %2617 = vmatpush.msra.mxu0 %v2078_v1  ;;  %2637 = vmatpush.msra.mxu1 %v2206_v2 }
 0x28c   : > { %2578 = vmatpush.msrb.mxu2 %v2069_v3  ;;  %2598 = vmatpush.msrb.mxu3 %v2197_v5  ;;  %v3330_v14 = vadd.f32 %v2012_v16, %v3280_v28  ;;  %v1772_v28 = vadd.f32 %v3306_v38, %v3304_v37 }
 0x28d   : > { %2618 = vmatpush.msra.mxu0 %v2070_v13  ;;  %2638 = vmatpush.msra.mxu1 %v2198_v15 }
 0x28e   : > { %2579 = vmatmul.f32.vlgmr.msrb.gmra.mxu2 %v3287_v19  ;;  %2599 = vmatmul.f32.vlgmr.msrb.gmra.mxu3 %v3290_v42  ;;  %v2054_v60 = vadd.f32 %v1772_v28, %v3248_v20  ;;  %v1311_v20 = vadd.f32 %v3260_v17, %v1291_v26 }
 0x28f   : > { %2619 = vmatmul.f32.vlgmr.msra.gmra.mxu0 %v3287_v19  ;;  %2639 = vmatmul.f32.vlgmr.msra.gmra.mxu1 %v3290_v42 }
 0x290   : > { %v2057_v41 = vadd.f32 %v1892_v23, %v1311_v20 }
 0x2a6   : > { %v2380_v22 = vpop.f32.mrf.mxu0  ;;  %v2400_v47 = vpop.f32.mrf.mxu1 }
 0x2a7   : > { %v2401_v24 = vadd.f32 %v2400_v47, %v2380_v22 }
 0x2a9   : > { %v2644_v30 = vadd.f32 %v2401_v24, %v2055_v29 }
 0x2ab   : > { %v2340_v31 = vpop.f32.mrf.mxu2  ;;  %v2360_v11 = vpop.f32.mrf.mxu3  ;;  %v2659_v19 = vrot.slane %v2644_v30, 6 }
 0x2ac   : > { %v2361_v34 = vadd.f32 %v2360_v11, %v2340_v31 }
 0x2ae   : > { %v2643_v42 = vadd.f32 %v2361_v34, %v2054_v60 }
 0x2b0   : > { %v2666_v35 = vsel %vm2665_vm2, %v2643_v42, %v2659_v19 }
 0x2c8   : > { %v2460_v37 = vpop.f32.mrf.mxu0  ;;  %v2480_v38 = vpop.f32.mrf.mxu1 }
 0x2c9   : > { %v2481_v39 = vadd.f32 %v2480_v38, %v2460_v37 }
 0x2cb   : > { %v2646_v43 = vadd.f32 %v2481_v39, %v2057_v41 }
 0x2cd   : > { %v2420_v18 = vpop.f32.mrf.mxu2  ;;  %v2440_v12 = vpop.f32.mrf.mxu3  ;;  %v2661_v27 = vrot.slane %v2646_v43, 2 }
 0x2ce   : > { %v2441_v44 = vadd.f32 %v2440_v12, %v2420_v18 }
 0x2d0   : > { %v2645_v46 = vadd.f32 %v2441_v44, %v2056_v8 }
 0x2d2   : > { %v2660_v48 = vrot.slane %v2645_v46, 4 }
 0x2d4   : > { %v2668_v50 = vsel %vm2667_vm3, %v2660_v48, %v2661_v27 }
 0x2d5   : > { %v2669_v17 = vsel %vm269_vm0, %v2666_v35, %v2668_v50 }
 0x2d6   : > { %2675 = vst [vmem:[%s250_s25] sm:$0xff] %v2669_v17 }
 0x2ea   : > { %v2540_v59 = vpop.f32.mrf.mxu0  ;;  %v2560_v32 = vpop.f32.mrf.mxu1 }
 0x2eb   : > { %v2561_v61 = vadd.f32 %v2560_v32, %v2540_v59 }
 0x2ed   : > { %v2648_v51 = vadd.f32 %v2561_v61, %v3317_v25 }
 0x2ef   : > { %v2500_v58 = vpop.f32.mrf.mxu2  ;;  %v2520_v9 = vpop.f32.mrf.mxu3  ;;  %v2662_v52 = vrot.slane %v2648_v51, 6 }
 0x2f0   : > { %v2521_v10 = vadd.f32 %v2520_v9, %v2500_v58 }
 0x2f2   : > { %v2647_v53 = vadd.f32 %v2521_v10, %v3320_v49 }
 0x2f4   : > { %v2670_v33 = vsel %vm2665_vm2, %v2647_v53, %v2662_v52 }
 0x30c   : > { %v2620_v54 = vpop.f32.mrf.mxu0  ;;  %v2640_v55 = vpop.f32.mrf.mxu1 }
 0x30d   : > { %v2641_v56 = vadd.f32 %v2640_v55, %v2620_v54 }
 0x30f   : > { %v2650_v63 = vadd.f32 %v2641_v56, %v3327_v0 }
 0x311   : > { %v2580_v57 = vpop.f32.mrf.mxu2  ;;  %v2600_v62 = vpop.f32.mrf.mxu3  ;;  %v2664_v49 = vrot.slane %v2650_v63, 2 }
 0x312   : > { %v2601_v45 = vadd.f32 %v2600_v62, %v2580_v57 }
 0x314   : > { %v2649_v25 = vadd.f32 %v2601_v45, %v3330_v14 }
 0x316   : > { %v2663_v1 = vrot.slane %v2649_v25, 4 }
 0x318   : > { %v2671_v2 = vsel %vm2667_vm3, %v2663_v1, %v2664_v49 }
 0x319   : > { %v2672_v3 = vsel %vm269_vm0, %v2670_v33, %v2671_v2 }
 0x31a   : > { %2676 = vst [vmem:[%s250_s25 + $0x8] sm:$0xff] %v2672_v3 }
 0x31b   : > { %2977 = shalt.err (!%p2974_p13)
}
 0x31c   : > { %2819 = dma.vmem_to_hbm [thread:$0]  (%p3138_p4), %s2694_s30, 256, %s2696_s5, %s2678_s18  }
 0x31d PF: > { %s2707_s7 = sand.u32 1, %s3016_s15   ;;  %p2830_p0 = pnand %p2794_p6, %p3146_p7 }
 0x31e   : > { %s2708_s14 = scalar_lea.sflag [#allocation4], %s2707_s7 }
 0x31f   : > { %p2831_p2 = pneg %p2830_p0 }
 0x321   : > { %3011 = dma.done.wait (%p2831_p2), %s2708_s14, 256  }
 0x322   : > { %3013 = vsyncadd (%p2831_p2), %s2708_s14, 4294967040  ;;  %s21_s20 = sadd.s32 1, %s3036_s20   ;;  %s3412_s15 = smov %s3020_s16 }
 0x323   : > { %p18_p5 = scmp.ge.s32.totalorder %s21_s20, 4   ;;  %s3413_s16 = smov %s3024_s17 }
 0x324   : > { %s3414_s17 = smov %s3144_s12  ;;  %s3415_s18 = smov %s3032_s19 }
 0x325   : > { %s3416_s19 = smov %s3418_s6  ;;  %20 = sbr.rel (!%p18_p5) target bundleno = 7 (0x7), region = 88 }
 0x32a   :  { %2714 = vsyncpa [#allocation3], 1 }
 0x32b   :  { %2716 = vsyncpa [#allocation3 + $0x1], 1 }
 0x32c   :  { %2717 = vsyncpa [#allocation6], 1 }
 0x32d   :  { %2718 = vsyncpa [#allocation4], 1 }
 0x32e   :  { %2720 = vsyncpa [#allocation4 + $0x1], 1 }

</bundles_post_ra>
